<compile_context>
chip_gen: v5e
topology: v5e:2x2
jax: 0.10.0
libtpu: 0.0.40
codegen_flags: <defaults>
</compile_context>

<pallas_src>
import jax
import jax.numpy as jnp
from jax import lax
from jax.experimental import pallas as pl
from jax.experimental.pallas import tpu as pltpu

# ----------------------------- config ---------------------------------------
NUM_DIGITS = 10
SEQ_LEN = 8
SEQ_FEATURES_DIM = 32        # H   (bi-LSTM hidden)
SORT_SEQ_FEATURES_DIM = 32   # H2  (sort-LSTM hidden)
HIDDEN_DIM = 32
OUT_DIM = 1
BATCH = 2

BP = 8                                           # batch rows per grid block (one sublane group)
_TBL_ROWS = ((2 * NUM_DIGITS + 7) // 8) * 8      # 24: padded [fwd|bwd] one-hot width
_WB_ROWS = _TBL_ROWS + 2 * SEQ_FEATURES_DIM      # 88: table + block-diag W_hh
_WM_ROWS = ((SEQ_FEATURES_DIM + SORT_SEQ_FEATURES_DIM + 1 + 7) // 8) * 8                 # 72
_WS_LANES = max(SEQ_FEATURES_DIM, HIDDEN_DIM)                                            # 32
_WS_ROWS = ((SEQ_FEATURES_DIM + SORT_SEQ_FEATURES_DIM + HIDDEN_DIM + 3 + 7) // 8) * 8    # 104

# Batcher odd-even mergesort network for 8 elements (19 comparators, ascending).
_SORT_NET_8 = (
    (0, 1), (2, 3), (4, 5), (6, 7),
    (0, 2), (1, 3), (4, 6), (5, 7),
    (1, 2), (5, 6),
    (0, 4), (1, 5), (2, 6), (3, 7),
    (2, 4), (3, 5),
    (1, 2), (3, 4), (5, 6),
)


# --------------------------- fused forward kernel ----------------------------
def fused_forward_kernel(x_ref,        # (BP, T) int32 digits (one batch block)
                         wbig_ref,     # (_WB_ROWS, 8H): [one-hot gate table ; block-diag Whh]
                         wmid_ref,     # (_WM_ROWS, 4H2): [wih2 ; whh2 ; b2] (gates [i,f,o,g])
                         wsml_ref,     # (_WS_ROWS, 32): [waf ; whid ; wout ; baf ; bhid ; bout]
                         y_ref,        # out: (BP, OUT_DIM)
                         gx_scr,       # VMEM (T*BP, 8H)  bi-LSTM input gates slab
                         hseq_scr,     # VMEM (T*BP, 2H)  [fwd|bwd] per-time outputs
                         gx2_scr):     # VMEM (T*BP, 4H2) sort-LSTM input gates slab
    f32 = jnp.float32
    Bp, T = x_ref.shape
    H, H2 = SEQ_FEATURES_DIM, SORT_SEQ_FEATURES_DIM
    HID = HIDDEN_DIM
    D = NUM_DIGITS

    # ---- (1) bi-LSTM input projection: ONE (T*Bp, 2D) x (2D, 8H) matmul ------
    # Row r = k*Bp + b of the one-hot holds [onehot(x[b,k]) | onehot(x[b,T-1-k])],
    # so a single dot against the packed table yields, per step k, both the fwd
    # gates (input at time k) and the bwd gates (input at time T-1-k), with the
    # combined LSTM bias (b_ih + b_hh) baked into the table rows.
    xv = x_ref[...]                                              # (Bp, T) int32
    lane = lax.broadcasted_iota(jnp.int32, (Bp, _TBL_ROWS), 1)
    blocks = []
    for k in range(T):
        df = xv[:, k:k + 1]                                      # fwd digit @ t = k
        db = xv[:, T - 1 - k:T - k]                              # bwd digit @ t = T-1-k
        hit = ((lane < D) & (lane == df)) | (
            (lane >= D) & (lane < 2 * D) & (lane == db + D))
        blocks.append(hit.astype(f32))
    onehot = jnp.concatenate(blocks, axis=0)                     # (T*Bp, _TBL_ROWS)
    tbl = wbig_ref[0:_TBL_ROWS, :]                               # (_TBL_ROWS, 8H)
    gx_scr[...] = jnp.dot(onehot, tbl, preferred_element_type=f32)

    # ---- (2) merged fwd/bwd recurrence: one block-diag dot per step ----------
    # Gate lane order (H-wide blocks): [i_f i_b | f_f f_b | o_f o_b | g_f g_b];
    # h_cat / c_cat lane order:        [fwd | bwd]
    whh_cat = wbig_ref[_TBL_ROWS:_TBL_ROWS + 2 * H, :]           # (2H, 8H)
    h_cat = jnp.zeros((Bp, 2 * H), f32)
    c_cat = jnp.zeros((Bp, 2 * H), f32)
    for k in range(T):
        g = gx_scr[k * Bp:(k + 1) * Bp, :] + jnp.dot(
            h_cat, whh_cat, preferred_element_type=f32)          # (Bp, 8H)
        sig = jax.nn.sigmoid(g[:, 0:6 * H])                      # i|f|o in one wide EUP pass
        gg = jnp.tanh(g[:, 6 * H:8 * H])                         # g gate
        c_cat = sig[:, 2 * H:4 * H] * c_cat + sig[:, 0:2 * H] * gg
        h_cat = sig[:, 4 * H:6 * H] * jnp.tanh(c_cat)
        # stash outputs: fwd half belongs to time k, bwd half to time T-1-k
        hseq_scr[k * Bp:(k + 1) * Bp, 0:H] = h_cat[:, 0:H]
        hseq_scr[(T - 1 - k) * Bp:(T - k) * Bp, H:2 * H] = h_cat[:, H:2 * H]

    # ---- (3) bidirectionalMerge='avg' + afterFeatures as one slab matmul -----
    hseq = hseq_scr[...]                                         # (T*Bp, 2H)
    merged = (hseq[:, 0:H] + hseq[:, H:2 * H]) * 0.5             # (T*Bp, H)
    waf = wsml_ref[0:H, 0:H]                                     # (H, H)
    baf = wsml_ref[H + H2 + HID:H + H2 + HID + 1, 0:H]           # (1, H)
    s_slab = jnp.maximum(
        jnp.dot(merged, waf, preferred_element_type=f32) + baf, 0.0)

    # ---- (4) torch.sort(s, dim=1): compare-exchange network over T-blocks ----
    s = [s_slab[t * Bp:(t + 1) * Bp, :] for t in range(T)]
    for (a, b) in _SORT_NET_8:
        lo = jnp.minimum(s[a], s[b])
        hi = jnp.maximum(s[a], s[b])
        s[a] = lo
        s[b] = hi
    s_sorted = jnp.concatenate(s, axis=0)                        # (T*Bp, H)

    # ---- (5) sort-LSTM: slab input projection + unrolled recurrence ----------
    # Gate lane order (H2-wide blocks): [i | f | o | g]
    wih2 = wmid_ref[0:H, :]                                      # (H, 4H2)
    whh2 = wmid_ref[H:H + H2, :]                                 # (H2, 4H2)
    b2 = wmid_ref[H + H2:H + H2 + 1, :]                          # (1, 4H2)
    gx2_scr[...] = jnp.dot(s_sorted, wih2, preferred_element_type=f32) + b2
    h2 = jnp.zeros((Bp, H2), f32)
    c2 = jnp.zeros((Bp, H2), f32)
    for t in range(T):
        g = gx2_scr[t * Bp:(t + 1) * Bp, :] + jnp.dot(
            h2, whh2, preferred_element_type=f32)                # (Bp, 4H2)
        sig = jax.nn.sigmoid(g[:, 0:3 * H2])
        gg = jnp.tanh(g[:, 3 * H2:4 * H2])
        c2 = sig[:, H2:2 * H2] * c2 + sig[:, 0:H2] * gg
        h2 = sig[:, 2 * H2:3 * H2] * jnp.tanh(c2)

    # ---- (6) head: x[:, -1, :] -> hidden Linear+ReLU -> outLayer -> sigmoid ---
    whid = wsml_ref[H:H + H2, 0:HID]                             # (H2, HID)
    bhid = wsml_ref[H + H2 + HID + 1:H + H2 + HID + 2, 0:HID]    # (1, HID)
    z = jnp.maximum(jnp.dot(h2, whid, preferred_element_type=f32) + bhid, 0.0)
    wout = wsml_ref[H + H2:H + H2 + HID, :]                      # (HID, 32), lanes >= OUT are 0
    bout = wsml_ref[H + H2 + HID + 2:H + H2 + HID + 3, 0:OUT_DIM]
    y = jnp.dot(z, wout, preferred_element_type=f32)[:, 0:OUT_DIM] + bout
    if OUT_DIM == 1:
        y = jax.nn.sigmoid(y)
    y_ref[...] = y


# ------------------------------- wrapper -------------------------------------
def _replicated_spec(shape):
    return pl.BlockSpec(shape, lambda i: (0, 0))


@jax.jit
def my_model_forward(x_digits, kp):
    """x_digits: (B, SEQ_LEN) integer digits in [0, NUM_DIGITS). Returns (B, OUT_DIM)."""
    B, T = x_digits.shape
    assert T == SEQ_LEN
    nb = pl.cdiv(B, BP)
    bpad = nb * BP
    x_pad = jnp.pad(x_digits.astype(jnp.int32), ((0, bpad - B), (0, 0)))

    out = pl.pallas_call(
        fused_forward_kernel,
        out_shape=jax.ShapeDtypeStruct((bpad, OUT_DIM), jnp.float32),
        grid=(nb,),
        in_specs=[
            pl.BlockSpec((BP, T), lambda i: (i, 0)),
            _replicated_spec(kp["w_big"].shape),
            _replicated_spec(kp["w_mid"].shape),
            _replicated_spec(kp["w_small"].shape),
        ],
        out_specs=pl.BlockSpec((BP, OUT_DIM), lambda i: (i, 0)),
        scratch_shapes=[
            pltpu.VMEM((T * BP, 8 * SEQ_FEATURES_DIM), jnp.float32),        # gx slab
            pltpu.VMEM((T * BP, 2 * SEQ_FEATURES_DIM), jnp.float32),        # bi-LSTM outputs
            pltpu.VMEM((T * BP, 4 * SORT_SEQ_FEATURES_DIM), jnp.float32),   # sort-LSTM gx slab
        ],
        compiler_params=pltpu.CompilerParams(
            dimension_semantics=("parallel",)),   # batch blocks shard across TCs (v7x)
    )(x_pad, kp["w_big"], kp["w_mid"], kp["w_small"])
    return out[:B]


def prep_kernel_params(p):
    """One-time repack of raw params into 3 lane-aligned kernel slabs.

    NOTE: PyTorch LSTMs carry separate b_ih / b_hh biases; here the combined
    bias (b_ih + b_hh) is baked into the bi-LSTM one-hot row table and kept as
    one row for the sort-LSTM.  When porting real PyTorch weights, pass the sum.
    """
    H, H2, D = SEQ_FEATURES_DIM, SORT_SEQ_FEATURES_DIM, NUM_DIGITS
    f32 = jnp.float32

    def g4(w):   # split (., 4H) columns into PyTorch gate order i, f, g, o
        n = w.shape[1] // 4
        return w[:, 0:n], w[:, n:2 * n], w[:, 2 * n:3 * n], w[:, 3 * n:4 * n]

    # --- w_big: [ one-hot gate table (bias baked) ; block-diag Whh ] ----------
    # target column blocks (H wide): [i_f, i_b, f_f, f_b, o_f, o_b, g_f, g_b]
    wf = (p["wih_f"] + p["b_f"]).astype(f32)       # (D, 4H)
    wb = (p["wih_b"] + p["b_b"]).astype(f32)
    i_f, f_f, g_f, o_f = g4(wf)
    i_b, f_b, g_b, o_b = g4(wb)
    zD = jnp.zeros((D, H), f32)
    tbl = jnp.concatenate([
        jnp.concatenate([i_f, zD, f_f, zD, o_f, zD, g_f, zD], axis=1),
        jnp.concatenate([zD, i_b, zD, f_b, zD, o_b, zD, g_b], axis=1),
    ], axis=0)                                     # (2D, 8H)
    tbl = jnp.pad(tbl, ((0, _TBL_ROWS - 2 * D), (0, 0)))

    ih_f, fh_f, gh_f, oh_f = g4(p["whh_f"].astype(f32))
    ih_b, fh_b, gh_b, oh_b = g4(p["whh_b"].astype(f32))
    zH = jnp.zeros((H, H), f32)
    whh_cat = jnp.concatenate([
        jnp.concatenate([ih_f, zH, fh_f, zH, oh_f, zH, gh_f, zH], axis=1),
        jnp.concatenate([zH, ih_b, zH, fh_b, zH, oh_b, zH, gh_b], axis=1),
    ], axis=0)                                     # (2H, 8H) block-diagonal
    w_big = jnp.concatenate([tbl, whh_cat], axis=0)          # (_WB_ROWS, 8H)

    # --- w_mid: sort-LSTM, gate columns permuted [i,f,g,o] -> [i,f,o,g] --------
    def perm_ifog(w):
        i, f, g, o = g4(w.astype(f32))
        return jnp.concatenate([i, f, o, g], axis=1)
    w_mid = jnp.concatenate(
        [perm_ifog(p["wih2"]), perm_ifog(p["whh2"]), perm_ifog(p["b2"])], axis=0)
    w_mid = jnp.pad(w_mid, ((0, _WM_ROWS - w_mid.shape[0]), (0, 0)))

    # --- w_small: afterFeatures / hidden / out weights + biases (32 lanes) ----
    def lanes(w):
        return jnp.pad(w.astype(f32), ((0, 0), (0, _WS_LANES - w.shape[1])))
    w_small = jnp.concatenate([
        lanes(p["waf"]), lanes(p["whid"]), lanes(p["wout"]),
        lanes(p["baf"]), lanes(p["bhid"]), lanes(p["bout"]),
    ], axis=0)
    w_small = jnp.pad(w_small, ((0, _WS_ROWS - w_small.shape[0]), (0, 0)))

    return {"w_big": w_big, "w_mid": w_mid, "w_small": w_small}


# -------------------------- pure-JAX reference --------------------------------
def _ref_lstm(x_seq, wih, whh, b, H):
    T, B, _ = x_seq.shape
    h = jnp.zeros((B, H), jnp.float32)
    c = jnp.zeros((B, H), jnp.float32)
    outs = []
    for t in range(T):
        g = x_seq[t] @ wih + h @ whh + b
        i = jax.nn.sigmoid(g[:, :H])
        f = jax.nn.sigmoid(g[:, H:2 * H])
        gg = jnp.tanh(g[:, 2 * H:3 * H])
        o = jax.nn.sigmoid(g[:, 3 * H:])
        c = f * c + i * gg
        h = o * jnp.tanh(c)
        outs.append(h)
    return jnp.stack(outs, 0), h


def ref_forward(x_digits, p):
    onehot = jax.nn.one_hot(x_digits, NUM_DIGITS, dtype=jnp.float32)
    x_tbd = jnp.transpose(onehot, (1, 0, 2))
    H = SEQ_FEATURES_DIM
    fwd, _ = _ref_lstm(x_tbd, p["wih_f"], p["whh_f"], p["b_f"], H)
    bwd_rev, _ = _ref_lstm(x_tbd[::-1], p["wih_b"], p["whh_b"], p["b_b"], H)
    bwd = bwd_rev[::-1]
    s = (fwd + bwd) * 0.5
    s = jnp.maximum(s @ p["waf"] + p["baf"], 0.0)
    s = jnp.sort(s, axis=0)   # == torch.sort(s, dim=1) in (B, T, H) layout
    _, h = _ref_lstm(s, p["wih2"], p["whh2"], p["b2"], SORT_SEQ_FEATURES_DIM)
    z = jnp.maximum(h @ p["whid"] + p["bhid"], 0.0)
    y = z @ p["wout"] + p["bout"]
    if OUT_DIM == 1:
        y = jax.nn.sigmoid(y)
    return y


# ------------------------------ param init ------------------------------------
def init_params(key):
    # NOTE: PyTorch LSTMs have separate b_ih/b_hh; here a single combined bias
    # is used.  When porting real PyTorch weights, pass b_ih + b_hh.
    H, H2 = SEQ_FEATURES_DIM, SORT_SEQ_FEATURES_DIM
    D = NUM_DIGITS
    ks = list(jax.random.split(key, 16))

    def u(k, shape, fan):
        s = 1.0 / jnp.sqrt(jnp.float32(fan))
        return jax.random.uniform(k, shape, jnp.float32, -s, s)

    return {
        # seqLayer (bidirectional LSTM), weights stored transposed: (in, 4H)
        "wih_f": u(ks[0], (D, 4 * H), H), "whh_f": u(ks[1], (H, 4 * H), H),
        "b_f":   u(ks[2], (1, 4 * H), H),
        "wih_b": u(ks[3], (D, 4 * H), H), "whh_b": u(ks[4], (H, 4 * H), H),
        "b_b":   u(ks[5], (1, 4 * H), H),
        # afterFeatures Linear
        "waf": u(ks[6], (H, H), H), "baf": u(ks[7], (1, H), H),
        # sortSeqLayer (unidirectional LSTM)
        "wih2": u(ks[8], (H, 4 * H2), H2), "whh2": u(ks[9], (H2, 4 * H2), H2),
        "b2":   u(ks[10], (1, 4 * H2), H2),
        # hidden Linear + outLayer
        "whid": u(ks[11], (H2, HIDDEN_DIM), H2), "bhid": u(ks[12], (1, HIDDEN_DIM), H2),
        "wout": u(ks[13], (HIDDEN_DIM, OUT_DIM), HIDDEN_DIM),
        "bout": u(ks[14], (1, OUT_DIM), HIDDEN_DIM),
    }


# --------------------------------- main ----------------------------------------
if __name__ == "__main__":
    key = jax.random.PRNGKey(0)
    k_x, k_p = jax.random.split(key)
    params = init_params(k_p)
    kparams = prep_kernel_params(params)      # one-time repack, outside the hot path
    x_digits = jax.random.randint(k_x, (BATCH, SEQ_LEN), 0, NUM_DIGITS, dtype=jnp.int32)

    y = my_model_forward(x_digits, kparams)
    y = jax.block_until_ready(y)

    y_ref = ref_forward(x_digits, params)
    assert y.shape == (BATCH, OUT_DIM)
    assert jnp.allclose(y, y_ref, atol=1e-4, rtol=1e-4), (y, y_ref)

    print("KERNEL_OK")
</pallas_src>

<mosaic_0001>
module attributes {stable_mosaic.version = 11 : i64} {
  func.func @fused_forward_kernel(%arg0: i32, %arg1: memref<8x8xi32, #tpu.memory_space<vmem>>, %arg2: memref<88x256xf32, #tpu.memory_space<vmem>>, %arg3: memref<72x128xf32, #tpu.memory_space<vmem>>, %arg4: memref<104x32xf32, #tpu.memory_space<vmem>>, %arg5: memref<8x1xf32, #tpu.memory_space<vmem>>, %arg6: memref<64x256xf32, #tpu.memory_space<vmem>>, %arg7: memref<64x64xf32, #tpu.memory_space<vmem>>, %arg8: memref<64x128xf32, #tpu.memory_space<vmem>>) attributes {dimension_semantics = [#tpu.dimension_semantics<parallel>], iteration_bounds = array<i64: 1>, scalar_prefetch = 0 : i64, scratch_operands = 3 : i64, tpu.core_type = #tpu.core_type<tc>, window_params = [{transform_indices = @transform_0, window_bounds = array<i64: 8, 8>}, {pipeline_mode = #tpu.pipeline_mode<synchronous>, transform_indices = @transform_1, window_bounds = array<i64: 88, 256>}, {pipeline_mode = #tpu.pipeline_mode<synchronous>, transform_indices = @transform_2, window_bounds = array<i64: 72, 128>}, {pipeline_mode = #tpu.pipeline_mode<synchronous>, transform_indices = @transform_3, window_bounds = array<i64: 104, 32>}, {transform_indices = @transform_4, window_bounds = array<i64: 8, 1>}]} {
    %c0 = arith.constant 0 : index
    %c0_0 = arith.constant 0 : index
    %0 = vector.load %arg1[%c0, %c0_0] : memref<8x8xi32, #tpu.memory_space<vmem>>, vector<8x8xi32>
    %1 = tpu.iota {dimensions = array<i32: 1>} : vector<8x24xi32>
    %2 = vector.extract_strided_slice %0 {offsets = [0, 0], sizes = [8, 1], strides = [1, 1]} : vector<8x8xi32> to vector<8x1xi32>
    %3 = vector.extract_strided_slice %0 {offsets = [0, 7], sizes = [8, 1], strides = [1, 1]} : vector<8x8xi32> to vector<8x1xi32>
    %c10_i32 = arith.constant 10 : i32
    %4 = vector.broadcast %c10_i32 : i32 to vector<8x24xi32>
    %5 = arith.cmpi slt, %1, %4 : vector<8x24xi32>
    %6 = vector.broadcast %2 : vector<8x1xi32> to vector<8x24xi32>
    %7 = arith.cmpi eq, %1, %6 : vector<8x24xi32>
    %8 = arith.andi %5, %7 : vector<8x24xi1>
    %c10_i32_1 = arith.constant 10 : i32
    %9 = vector.broadcast %c10_i32_1 : i32 to vector<8x24xi32>
    %10 = arith.cmpi sge, %1, %9 : vector<8x24xi32>
    %c20_i32 = arith.constant 20 : i32
    %11 = vector.broadcast %c20_i32 : i32 to vector<8x24xi32>
    %12 = arith.cmpi slt, %1, %11 : vector<8x24xi32>
    %13 = arith.andi %10, %12 : vector<8x24xi1>
    %c10_i32_2 = arith.constant 10 : i32
    %14 = vector.broadcast %c10_i32_2 : i32 to vector<8x1xi32>
    %15 = arith.addi %3, %14 : vector<8x1xi32>
    %16 = vector.broadcast %15 : vector<8x1xi32> to vector<8x24xi32>
    %17 = arith.cmpi eq, %1, %16 : vector<8x24xi32>
    %18 = arith.andi %13, %17 : vector<8x24xi1>
    %19 = arith.ori %8, %18 : vector<8x24xi1>
    %20 = arith.extui %19 : vector<8x24xi1> to vector<8x24xi32>
    %21 = arith.sitofp %20 : vector<8x24xi32> to vector<8x24xf32>
    %22 = vector.extract_strided_slice %0 {offsets = [0, 1], sizes = [8, 1], strides = [1, 1]} : vector<8x8xi32> to vector<8x1xi32>
    %23 = vector.extract_strided_slice %0 {offsets = [0, 6], sizes = [8, 1], strides = [1, 1]} : vector<8x8xi32> to vector<8x1xi32>
    %c10_i32_3 = arith.constant 10 : i32
    %24 = vector.broadcast %c10_i32_3 : i32 to vector<8x24xi32>
    %25 = arith.cmpi slt, %1, %24 : vector<8x24xi32>
    %26 = vector.broadcast %22 : vector<8x1xi32> to vector<8x24xi32>
    %27 = arith.cmpi eq, %1, %26 : vector<8x24xi32>
    %28 = arith.andi %25, %27 : vector<8x24xi1>
    %c10_i32_4 = arith.constant 10 : i32
    %29 = vector.broadcast %c10_i32_4 : i32 to vector<8x24xi32>
    %30 = arith.cmpi sge, %1, %29 : vector<8x24xi32>
    %c20_i32_5 = arith.constant 20 : i32
    %31 = vector.broadcast %c20_i32_5 : i32 to vector<8x24xi32>
    %32 = arith.cmpi slt, %1, %31 : vector<8x24xi32>
    %33 = arith.andi %30, %32 : vector<8x24xi1>
    %c10_i32_6 = arith.constant 10 : i32
    %34 = vector.broadcast %c10_i32_6 : i32 to vector<8x1xi32>
    %35 = arith.addi %23, %34 : vector<8x1xi32>
    %36 = vector.broadcast %35 : vector<8x1xi32> to vector<8x24xi32>
    %37 = arith.cmpi eq, %1, %36 : vector<8x24xi32>
    %38 = arith.andi %33, %37 : vector<8x24xi1>
    %39 = arith.ori %28, %38 : vector<8x24xi1>
    %40 = arith.extui %39 : vector<8x24xi1> to vector<8x24xi32>
    %41 = arith.sitofp %40 : vector<8x24xi32> to vector<8x24xf32>
    %42 = vector.extract_strided_slice %0 {offsets = [0, 2], sizes = [8, 1], strides = [1, 1]} : vector<8x8xi32> to vector<8x1xi32>
    %43 = vector.extract_strided_slice %0 {offsets = [0, 5], sizes = [8, 1], strides = [1, 1]} : vector<8x8xi32> to vector<8x1xi32>
    %c10_i32_7 = arith.constant 10 : i32
    %44 = vector.broadcast %c10_i32_7 : i32 to vector<8x24xi32>
    %45 = arith.cmpi slt, %1, %44 : vector<8x24xi32>
    %46 = vector.broadcast %42 : vector<8x1xi32> to vector<8x24xi32>
    %47 = arith.cmpi eq, %1, %46 : vector<8x24xi32>
    %48 = arith.andi %45, %47 : vector<8x24xi1>
    %c10_i32_8 = arith.constant 10 : i32
    %49 = vector.broadcast %c10_i32_8 : i32 to vector<8x24xi32>
    %50 = arith.cmpi sge, %1, %49 : vector<8x24xi32>
    %c20_i32_9 = arith.constant 20 : i32
    %51 = vector.broadcast %c20_i32_9 : i32 to vector<8x24xi32>
    %52 = arith.cmpi slt, %1, %51 : vector<8x24xi32>
    %53 = arith.andi %50, %52 : vector<8x24xi1>
    %c10_i32_10 = arith.constant 10 : i32
    %54 = vector.broadcast %c10_i32_10 : i32 to vector<8x1xi32>
    %55 = arith.addi %43, %54 : vector<8x1xi32>
    %56 = vector.broadcast %55 : vector<8x1xi32> to vector<8x24xi32>
    %57 = arith.cmpi eq, %1, %56 : vector<8x24xi32>
    %58 = arith.andi %53, %57 : vector<8x24xi1>
    %59 = arith.ori %48, %58 : vector<8x24xi1>
    %60 = arith.extui %59 : vector<8x24xi1> to vector<8x24xi32>
    %61 = arith.sitofp %60 : vector<8x24xi32> to vector<8x24xf32>
    %62 = vector.extract_strided_slice %0 {offsets = [0, 3], sizes = [8, 1], strides = [1, 1]} : vector<8x8xi32> to vector<8x1xi32>
    %63 = vector.extract_strided_slice %0 {offsets = [0, 4], sizes = [8, 1], strides = [1, 1]} : vector<8x8xi32> to vector<8x1xi32>
    %c10_i32_11 = arith.constant 10 : i32
    %64 = vector.broadcast %c10_i32_11 : i32 to vector<8x24xi32>
    %65 = arith.cmpi slt, %1, %64 : vector<8x24xi32>
    %66 = vector.broadcast %62 : vector<8x1xi32> to vector<8x24xi32>
    %67 = arith.cmpi eq, %1, %66 : vector<8x24xi32>
    %68 = arith.andi %65, %67 : vector<8x24xi1>
    %c10_i32_12 = arith.constant 10 : i32
    %69 = vector.broadcast %c10_i32_12 : i32 to vector<8x24xi32>
    %70 = arith.cmpi sge, %1, %69 : vector<8x24xi32>
    %c20_i32_13 = arith.constant 20 : i32
    %71 = vector.broadcast %c20_i32_13 : i32 to vector<8x24xi32>
    %72 = arith.cmpi slt, %1, %71 : vector<8x24xi32>
    %73 = arith.andi %70, %72 : vector<8x24xi1>
    %c10_i32_14 = arith.constant 10 : i32
    %74 = vector.broadcast %c10_i32_14 : i32 to vector<8x1xi32>
    %75 = arith.addi %63, %74 : vector<8x1xi32>
    %76 = vector.broadcast %75 : vector<8x1xi32> to vector<8x24xi32>
    %77 = arith.cmpi eq, %1, %76 : vector<8x24xi32>
    %78 = arith.andi %73, %77 : vector<8x24xi1>
    %79 = arith.ori %68, %78 : vector<8x24xi1>
    %80 = arith.extui %79 : vector<8x24xi1> to vector<8x24xi32>
    %81 = arith.sitofp %80 : vector<8x24xi32> to vector<8x24xf32>
    %82 = vector.extract_strided_slice %0 {offsets = [0, 4], sizes = [8, 1], strides = [1, 1]} : vector<8x8xi32> to vector<8x1xi32>
    %83 = vector.extract_strided_slice %0 {offsets = [0, 3], sizes = [8, 1], strides = [1, 1]} : vector<8x8xi32> to vector<8x1xi32>
    %c10_i32_15 = arith.constant 10 : i32
    %84 = vector.broadcast %c10_i32_15 : i32 to vector<8x24xi32>
    %85 = arith.cmpi slt, %1, %84 : vector<8x24xi32>
    %86 = vector.broadcast %82 : vector<8x1xi32> to vector<8x24xi32>
    %87 = arith.cmpi eq, %1, %86 : vector<8x24xi32>
    %88 = arith.andi %85, %87 : vector<8x24xi1>
    %c10_i32_16 = arith.constant 10 : i32
    %89 = vector.broadcast %c10_i32_16 : i32 to vector<8x24xi32>
    %90 = arith.cmpi sge, %1, %89 : vector<8x24xi32>
    %c20_i32_17 = arith.constant 20 : i32
    %91 = vector.broadcast %c20_i32_17 : i32 to vector<8x24xi32>
    %92 = arith.cmpi slt, %1, %91 : vector<8x24xi32>
    %93 = arith.andi %90, %92 : vector<8x24xi1>
    %c10_i32_18 = arith.constant 10 : i32
    %94 = vector.broadcast %c10_i32_18 : i32 to vector<8x1xi32>
    %95 = arith.addi %83, %94 : vector<8x1xi32>
    %96 = vector.broadcast %95 : vector<8x1xi32> to vector<8x24xi32>
    %97 = arith.cmpi eq, %1, %96 : vector<8x24xi32>
    %98 = arith.andi %93, %97 : vector<8x24xi1>
    %99 = arith.ori %88, %98 : vector<8x24xi1>
    %100 = arith.extui %99 : vector<8x24xi1> to vector<8x24xi32>
    %101 = arith.sitofp %100 : vector<8x24xi32> to vector<8x24xf32>
    %102 = vector.extract_strided_slice %0 {offsets = [0, 5], sizes = [8, 1], strides = [1, 1]} : vector<8x8xi32> to vector<8x1xi32>
    %103 = vector.extract_strided_slice %0 {offsets = [0, 2], sizes = [8, 1], strides = [1, 1]} : vector<8x8xi32> to vector<8x1xi32>
    %c10_i32_19 = arith.constant 10 : i32
    %104 = vector.broadcast %c10_i32_19 : i32 to vector<8x24xi32>
    %105 = arith.cmpi slt, %1, %104 : vector<8x24xi32>
    %106 = vector.broadcast %102 : vector<8x1xi32> to vector<8x24xi32>
    %107 = arith.cmpi eq, %1, %106 : vector<8x24xi32>
    %108 = arith.andi %105, %107 : vector<8x24xi1>
    %c10_i32_20 = arith.constant 10 : i32
    %109 = vector.broadcast %c10_i32_20 : i32 to vector<8x24xi32>
    %110 = arith.cmpi sge, %1, %109 : vector<8x24xi32>
    %c20_i32_21 = arith.constant 20 : i32
    %111 = vector.broadcast %c20_i32_21 : i32 to vector<8x24xi32>
    %112 = arith.cmpi slt, %1, %111 : vector<8x24xi32>
    %113 = arith.andi %110, %112 : vector<8x24xi1>
    %c10_i32_22 = arith.constant 10 : i32
    %114 = vector.broadcast %c10_i32_22 : i32 to vector<8x1xi32>
    %115 = arith.addi %103, %114 : vector<8x1xi32>
    %116 = vector.broadcast %115 : vector<8x1xi32> to vector<8x24xi32>
    %117 = arith.cmpi eq, %1, %116 : vector<8x24xi32>
    %118 = arith.andi %113, %117 : vector<8x24xi1>
    %119 = arith.ori %108, %118 : vector<8x24xi1>
    %120 = arith.extui %119 : vector<8x24xi1> to vector<8x24xi32>
    %121 = arith.sitofp %120 : vector<8x24xi32> to vector<8x24xf32>
    %122 = vector.extract_strided_slice %0 {offsets = [0, 6], sizes = [8, 1], strides = [1, 1]} : vector<8x8xi32> to vector<8x1xi32>
    %123 = vector.extract_strided_slice %0 {offsets = [0, 1], sizes = [8, 1], strides = [1, 1]} : vector<8x8xi32> to vector<8x1xi32>
    %c10_i32_23 = arith.constant 10 : i32
    %124 = vector.broadcast %c10_i32_23 : i32 to vector<8x24xi32>
    %125 = arith.cmpi slt, %1, %124 : vector<8x24xi32>
    %126 = vector.broadcast %122 : vector<8x1xi32> to vector<8x24xi32>
    %127 = arith.cmpi eq, %1, %126 : vector<8x24xi32>
    %128 = arith.andi %125, %127 : vector<8x24xi1>
    %c10_i32_24 = arith.constant 10 : i32
    %129 = vector.broadcast %c10_i32_24 : i32 to vector<8x24xi32>
    %130 = arith.cmpi sge, %1, %129 : vector<8x24xi32>
    %c20_i32_25 = arith.constant 20 : i32
    %131 = vector.broadcast %c20_i32_25 : i32 to vector<8x24xi32>
    %132 = arith.cmpi slt, %1, %131 : vector<8x24xi32>
    %133 = arith.andi %130, %132 : vector<8x24xi1>
    %c10_i32_26 = arith.constant 10 : i32
    %134 = vector.broadcast %c10_i32_26 : i32 to vector<8x1xi32>
    %135 = arith.addi %123, %134 : vector<8x1xi32>
    %136 = vector.broadcast %135 : vector<8x1xi32> to vector<8x24xi32>
    %137 = arith.cmpi eq, %1, %136 : vector<8x24xi32>
    %138 = arith.andi %133, %137 : vector<8x24xi1>
    %139 = arith.ori %128, %138 : vector<8x24xi1>
    %140 = arith.extui %139 : vector<8x24xi1> to vector<8x24xi32>
    %141 = arith.sitofp %140 : vector<8x24xi32> to vector<8x24xf32>
    %142 = vector.extract_strided_slice %0 {offsets = [0, 7], sizes = [8, 1], strides = [1, 1]} : vector<8x8xi32> to vector<8x1xi32>
    %143 = vector.extract_strided_slice %0 {offsets = [0, 0], sizes = [8, 1], strides = [1, 1]} : vector<8x8xi32> to vector<8x1xi32>
    %c10_i32_27 = arith.constant 10 : i32
    %144 = vector.broadcast %c10_i32_27 : i32 to vector<8x24xi32>
    %145 = arith.cmpi slt, %1, %144 : vector<8x24xi32>
    %146 = vector.broadcast %142 : vector<8x1xi32> to vector<8x24xi32>
    %147 = arith.cmpi eq, %1, %146 : vector<8x24xi32>
    %148 = arith.andi %145, %147 : vector<8x24xi1>
    %c10_i32_28 = arith.constant 10 : i32
    %149 = vector.broadcast %c10_i32_28 : i32 to vector<8x24xi32>
    %150 = arith.cmpi sge, %1, %149 : vector<8x24xi32>
    %c20_i32_29 = arith.constant 20 : i32
    %151 = vector.broadcast %c20_i32_29 : i32 to vector<8x24xi32>
    %152 = arith.cmpi slt, %1, %151 : vector<8x24xi32>
    %153 = arith.andi %150, %152 : vector<8x24xi1>
    %c10_i32_30 = arith.constant 10 : i32
    %154 = vector.broadcast %c10_i32_30 : i32 to vector<8x1xi32>
    %155 = arith.addi %143, %154 : vector<8x1xi32>
    %156 = vector.broadcast %155 : vector<8x1xi32> to vector<8x24xi32>
    %157 = arith.cmpi eq, %1, %156 : vector<8x24xi32>
    %158 = arith.andi %153, %157 : vector<8x24xi1>
    %159 = arith.ori %148, %158 : vector<8x24xi1>
    %160 = arith.extui %159 : vector<8x24xi1> to vector<8x24xi32>
    %161 = arith.sitofp %160 : vector<8x24xi32> to vector<8x24xf32>
    %162 = tpu.concatenate %21, %41, %61, %81, %101, %121, %141, %161 in 0 : vector<8x24xf32>, vector<8x24xf32>, vector<8x24xf32>, vector<8x24xf32>, vector<8x24xf32>, vector<8x24xf32>, vector<8x24xf32>, vector<8x24xf32> -> vector<64x24xf32>
    %c0_31 = arith.constant 0 : index
    %c0_32 = arith.constant 0 : index
    %163 = vector.load %arg2[%c0_31, %c0_32] : memref<88x256xf32, #tpu.memory_space<vmem>>, vector<24x256xf32>
    %cst = arith.constant dense<0.000000e+00> : vector<64x256xf32>
    %164 = tpu.matmul %162, %163, %cst {dimension_numbers = #tpu.dot_dimension_numbers<[1], [0], [0], [1], [0, 0, 1, 1], [], []>} : vector<64x24xf32>, vector<24x256xf32>, vector<64x256xf32> -> vector<64x256xf32>
    %c0_33 = arith.constant 0 : index
    %c0_34 = arith.constant 0 : index
    %165 = vector.load %arg6[%c0_33, %c0_34] : memref<64x256xf32, #tpu.memory_space<vmem>>, vector<64x256xf32>
    tpu.vector_store %arg6[%c0_33, %c0_34], %164 {strides = array<i32>} : memref<64x256xf32, #tpu.memory_space<vmem>>, vector<64x256xf32>,
    %c24 = arith.constant 24 : index
    %c0_35 = arith.constant 0 : index
    %166 = vector.load %arg2[%c24, %c0_35] : memref<88x256xf32, #tpu.memory_space<vmem>>, vector<64x256xf32>
    %cst_36 = arith.constant 0.000000e+00 : f32
    %167 = vector.broadcast %cst_36 : f32 to vector<8x64xf32>
    %cst_37 = arith.constant 0.000000e+00 : f32
    %168 = vector.broadcast %cst_37 : f32 to vector<8x64xf32>
    %c0_38 = arith.constant 0 : index
    %c0_39 = arith.constant 0 : index
    %169 = vector.load %arg6[%c0_38, %c0_39] : memref<64x256xf32, #tpu.memory_space<vmem>>, vector<8x256xf32>
    %cst_40 = arith.constant dense<0.000000e+00> : vector<8x256xf32>
    %170 = tpu.matmul %167, %166, %cst_40 {dimension_numbers = #tpu.dot_dimension_numbers<[1], [0], [0], [1], [0, 0, 1, 1], [], []>} : vector<8x64xf32>, vector<64x256xf32>, vector<8x256xf32> -> vector<8x256xf32>
    %171 = arith.addf %169, %170 : vector<8x256xf32>
    %172 = vector.extract_strided_slice %171 {offsets = [0, 0], sizes = [8, 192], strides = [1, 1]} : vector<8x256xf32> to vector<8x192xf32>
    %173 = arith.negf %172 : vector<8x192xf32>
    %174 = math.exp %173 : vector<8x192xf32>
    %cst_41 = arith.constant 1.000000e+00 : f32
    %175 = vector.broadcast %cst_41 : f32 to vector<8x192xf32>
    %176 = arith.addf %175, %174 : vector<8x192xf32>
    %177 = arith.divf %175, %176 : vector<8x192xf32>
    %178 = vector.extract_strided_slice %171 {offsets = [0, 192], sizes = [8, 64], strides = [1, 1]} : vector<8x256xf32> to vector<8x64xf32>
    %179 = math.tanh %178 : vector<8x64xf32>
    %180 = vector.extract_strided_slice %177 {offsets = [0, 64], sizes = [8, 64], strides = [1, 1]} : vector<8x192xf32> to vector<8x64xf32>
    %181 = arith.mulf %180, %168 : vector<8x64xf32>
    %182 = vector.extract_strided_slice %177 {offsets = [0, 0], sizes = [8, 64], strides = [1, 1]} : vector<8x192xf32> to vector<8x64xf32>
    %183 = arith.mulf %182, %179 : vector<8x64xf32>
    %184 = arith.addf %181, %183 : vector<8x64xf32>
    %185 = vector.extract_strided_slice %177 {offsets = [0, 128], sizes = [8, 64], strides = [1, 1]} : vector<8x192xf32> to vector<8x64xf32>
    %186 = math.tanh %184 : vector<8x64xf32>
    %187 = arith.mulf %185, %186 : vector<8x64xf32>
    %188 = vector.extract_strided_slice %187 {offsets = [0, 0], sizes = [8, 32], strides = [1, 1]} : vector<8x64xf32> to vector<8x32xf32>
    %c0_42 = arith.constant 0 : index
    %c0_43 = arith.constant 0 : index
    %189 = vector.load %arg7[%c0_42, %c0_43] : memref<64x64xf32, #tpu.memory_space<vmem>>, vector<8x32xf32>
    tpu.vector_store %arg7[%c0_42, %c0_43], %188 {strides = array<i32>} : memref<64x64xf32, #tpu.memory_space<vmem>>, vector<8x32xf32>,
    %190 = vector.extract_strided_slice %187 {offsets = [0, 32], sizes = [8, 32], strides = [1, 1]} : vector<8x64xf32> to vector<8x32xf32>
    %c56 = arith.constant 56 : index
    %c32 = arith.constant 32 : index
    %191 = vector.load %arg7[%c56, %c32] : memref<64x64xf32, #tpu.memory_space<vmem>>, vector<8x32xf32>
    tpu.vector_store %arg7[%c56, %c32], %190 {strides = array<i32>} : memref<64x64xf32, #tpu.memory_space<vmem>>, vector<8x32xf32>,
    %c8 = arith.constant 8 : index
    %c0_44 = arith.constant 0 : index
    %192 = vector.load %arg6[%c8, %c0_44] : memref<64x256xf32, #tpu.memory_space<vmem>>, vector<8x256xf32>
    %cst_45 = arith.constant dense<0.000000e+00> : vector<8x256xf32>
    %193 = tpu.matmul %187, %166, %cst_45 {dimension_numbers = #tpu.dot_dimension_numbers<[1], [0], [0], [1], [0, 0, 1, 1], [], []>} : vector<8x64xf32>, vector<64x256xf32>, vector<8x256xf32> -> vector<8x256xf32>
    %194 = arith.addf %192, %193 : vector<8x256xf32>
    %195 = vector.extract_strided_slice %194 {offsets = [0, 0], sizes = [8, 192], strides = [1, 1]} : vector<8x256xf32> to vector<8x192xf32>
    %196 = arith.negf %195 : vector<8x192xf32>
    %197 = math.exp %196 : vector<8x192xf32>
    %cst_46 = arith.constant 1.000000e+00 : f32
    %198 = vector.broadcast %cst_46 : f32 to vector<8x192xf32>
    %199 = arith.addf %198, %197 : vector<8x192xf32>
    %200 = arith.divf %198, %199 : vector<8x192xf32>
    %201 = vector.extract_strided_slice %194 {offsets = [0, 192], sizes = [8, 64], strides = [1, 1]} : vector<8x256xf32> to vector<8x64xf32>
    %202 = math.tanh %201 : vector<8x64xf32>
    %203 = vector.extract_strided_slice %200 {offsets = [0, 64], sizes = [8, 64], strides = [1, 1]} : vector<8x192xf32> to vector<8x64xf32>
    %204 = arith.mulf %203, %184 : vector<8x64xf32>
    %205 = vector.extract_strided_slice %200 {offsets = [0, 0], sizes = [8, 64], strides = [1, 1]} : vector<8x192xf32> to vector<8x64xf32>
    %206 = arith.mulf %205, %202 : vector<8x64xf32>
    %207 = arith.addf %204, %206 : vector<8x64xf32>
    %208 = vector.extract_strided_slice %200 {offsets = [0, 128], sizes = [8, 64], strides = [1, 1]} : vector<8x192xf32> to vector<8x64xf32>
    %209 = math.tanh %207 : vector<8x64xf32>
    %210 = arith.mulf %208, %209 : vector<8x64xf32>
    %211 = vector.extract_strided_slice %210 {offsets = [0, 0], sizes = [8, 32], strides = [1, 1]} : vector<8x64xf32> to vector<8x32xf32>
    %c8_47 = arith.constant 8 : index
    %c0_48 = arith.constant 0 : index
    %212 = vector.load %arg7[%c8_47, %c0_48] : memref<64x64xf32, #tpu.memory_space<vmem>>, vector<8x32xf32>
    tpu.vector_store %arg7[%c8_47, %c0_48], %211 {strides = array<i32>} : memref<64x64xf32, #tpu.memory_space<vmem>>, vector<8x32xf32>,
    %213 = vector.extract_strided_slice %210 {offsets = [0, 32], sizes = [8, 32], strides = [1, 1]} : vector<8x64xf32> to vector<8x32xf32>
    %c48 = arith.constant 48 : index
    %c32_49 = arith.constant 32 : index
    %214 = vector.load %arg7[%c48, %c32_49] : memref<64x64xf32, #tpu.memory_space<vmem>>, vector<8x32xf32>
    tpu.vector_store %arg7[%c48, %c32_49], %213 {strides = array<i32>} : memref<64x64xf32, #tpu.memory_space<vmem>>, vector<8x32xf32>,
    %c16 = arith.constant 16 : index
    %c0_50 = arith.constant 0 : index
    %215 = vector.load %arg6[%c16, %c0_50] : memref<64x256xf32, #tpu.memory_space<vmem>>, vector<8x256xf32>
    %cst_51 = arith.constant dense<0.000000e+00> : vector<8x256xf32>
    %216 = tpu.matmul %210, %166, %cst_51 {dimension_numbers = #tpu.dot_dimension_numbers<[1], [0], [0], [1], [0, 0, 1, 1], [], []>} : vector<8x64xf32>, vector<64x256xf32>, vector<8x256xf32> -> vector<8x256xf32>
    %217 = arith.addf %215, %216 : vector<8x256xf32>
    %218 = vector.extract_strided_slice %217 {offsets = [0, 0], sizes = [8, 192], strides = [1, 1]} : vector<8x256xf32> to vector<8x192xf32>
    %219 = arith.negf %218 : vector<8x192xf32>
    %220 = math.exp %219 : vector<8x192xf32>
    %cst_52 = arith.constant 1.000000e+00 : f32
    %221 = vector.broadcast %cst_52 : f32 to vector<8x192xf32>
    %222 = arith.addf %221, %220 : vector<8x192xf32>
    %223 = arith.divf %221, %222 : vector<8x192xf32>
    %224 = vector.extract_strided_slice %217 {offsets = [0, 192], sizes = [8, 64], strides = [1, 1]} : vector<8x256xf32> to vector<8x64xf32>
    %225 = math.tanh %224 : vector<8x64xf32>
    %226 = vector.extract_strided_slice %223 {offsets = [0, 64], sizes = [8, 64], strides = [1, 1]} : vector<8x192xf32> to vector<8x64xf32>
    %227 = arith.mulf %226, %207 : vector<8x64xf32>
    %228 = vector.extract_strided_slice %223 {offsets = [0, 0], sizes = [8, 64], strides = [1, 1]} : vector<8x192xf32> to vector<8x64xf32>
    %229 = arith.mulf %228, %225 : vector<8x64xf32>
    %230 = arith.addf %227, %229 : vector<8x64xf32>
    %231 = vector.extract_strided_slice %223 {offsets = [0, 128], sizes = [8, 64], strides = [1, 1]} : vector<8x192xf32> to vector<8x64xf32>
    %232 = math.tanh %230 : vector<8x64xf32>
    %233 = arith.mulf %231, %232 : vector<8x64xf32>
    %234 = vector.extract_strided_slice %233 {offsets = [0, 0], sizes = [8, 32], strides = [1, 1]} : vector<8x64xf32> to vector<8x32xf32>
    %c16_53 = arith.constant 16 : index
    %c0_54 = arith.constant 0 : index
    %235 = vector.load %arg7[%c16_53, %c0_54] : memref<64x64xf32, #tpu.memory_space<vmem>>, vector<8x32xf32>
    tpu.vector_store %arg7[%c16_53, %c0_54], %234 {strides = array<i32>} : memref<64x64xf32, #tpu.memory_space<vmem>>, vector<8x32xf32>,
    %236 = vector.extract_strided_slice %233 {offsets = [0, 32], sizes = [8, 32], strides = [1, 1]} : vector<8x64xf32> to vector<8x32xf32>
    %c40 = arith.constant 40 : index
    %c32_55 = arith.constant 32 : index
    %237 = vector.load %arg7[%c40, %c32_55] : memref<64x64xf32, #tpu.memory_space<vmem>>, vector<8x32xf32>
    tpu.vector_store %arg7[%c40, %c32_55], %236 {strides = array<i32>} : memref<64x64xf32, #tpu.memory_space<vmem>>, vector<8x32xf32>,
    %c24_56 = arith.constant 24 : index
    %c0_57 = arith.constant 0 : index
    %238 = vector.load %arg6[%c24_56, %c0_57] : memref<64x256xf32, #tpu.memory_space<vmem>>, vector<8x256xf32>
    %cst_58 = arith.constant dense<0.000000e+00> : vector<8x256xf32>
    %239 = tpu.matmul %233, %166, %cst_58 {dimension_numbers = #tpu.dot_dimension_numbers<[1], [0], [0], [1], [0, 0, 1, 1], [], []>} : vector<8x64xf32>, vector<64x256xf32>, vector<8x256xf32> -> vector<8x256xf32>
    %240 = arith.addf %238, %239 : vector<8x256xf32>
    %241 = vector.extract_strided_slice %240 {offsets = [0, 0], sizes = [8, 192], strides = [1, 1]} : vector<8x256xf32> to vector<8x192xf32>
    %242 = arith.negf %241 : vector<8x192xf32>
    %243 = math.exp %242 : vector<8x192xf32>
    %cst_59 = arith.constant 1.000000e+00 : f32
    %244 = vector.broadcast %cst_59 : f32 to vector<8x192xf32>
    %245 = arith.addf %244, %243 : vector<8x192xf32>
    %246 = arith.divf %244, %245 : vector<8x192xf32>
    %247 = vector.extract_strided_slice %240 {offsets = [0, 192], sizes = [8, 64], strides = [1, 1]} : vector<8x256xf32> to vector<8x64xf32>
    %248 = math.tanh %247 : vector<8x64xf32>
    %249 = vector.extract_strided_slice %246 {offsets = [0, 64], sizes = [8, 64], strides = [1, 1]} : vector<8x192xf32> to vector<8x64xf32>
    %250 = arith.mulf %249, %230 : vector<8x64xf32>
    %251 = vector.extract_strided_slice %246 {offsets = [0, 0], sizes = [8, 64], strides = [1, 1]} : vector<8x192xf32> to vector<8x64xf32>
    %252 = arith.mulf %251, %248 : vector<8x64xf32>
    %253 = arith.addf %250, %252 : vector<8x64xf32>
    %254 = vector.extract_strided_slice %246 {offsets = [0, 128], sizes = [8, 64], strides = [1, 1]} : vector<8x192xf32> to vector<8x64xf32>
    %255 = math.tanh %253 : vector<8x64xf32>
    %256 = arith.mulf %254, %255 : vector<8x64xf32>
    %257 = vector.extract_strided_slice %256 {offsets = [0, 0], sizes = [8, 32], strides = [1, 1]} : vector<8x64xf32> to vector<8x32xf32>
    %c24_60 = arith.constant 24 : index
    %c0_61 = arith.constant 0 : index
    %258 = vector.load %arg7[%c24_60, %c0_61] : memref<64x64xf32, #tpu.memory_space<vmem>>, vector<8x32xf32>
    tpu.vector_store %arg7[%c24_60, %c0_61], %257 {strides = array<i32>} : memref<64x64xf32, #tpu.memory_space<vmem>>, vector<8x32xf32>,
    %259 = vector.extract_strided_slice %256 {offsets = [0, 32], sizes = [8, 32], strides = [1, 1]} : vector<8x64xf32> to vector<8x32xf32>
    %c32_62 = arith.constant 32 : index
    %c32_63 = arith.constant 32 : index
    %260 = vector.load %arg7[%c32_62, %c32_63] : memref<64x64xf32, #tpu.memory_space<vmem>>, vector<8x32xf32>
    tpu.vector_store %arg7[%c32_62, %c32_63], %259 {strides = array<i32>} : memref<64x64xf32, #tpu.memory_space<vmem>>, vector<8x32xf32>,
    %c32_64 = arith.constant 32 : index
    %c0_65 = arith.constant 0 : index
    %261 = vector.load %arg6[%c32_64, %c0_65] : memref<64x256xf32, #tpu.memory_space<vmem>>, vector<8x256xf32>
    %cst_66 = arith.constant dense<0.000000e+00> : vector<8x256xf32>
    %262 = tpu.matmul %256, %166, %cst_66 {dimension_numbers = #tpu.dot_dimension_numbers<[1], [0], [0], [1], [0, 0, 1, 1], [], []>} : vector<8x64xf32>, vector<64x256xf32>, vector<8x256xf32> -> vector<8x256xf32>
    %263 = arith.addf %261, %262 : vector<8x256xf32>
    %264 = vector.extract_strided_slice %263 {offsets = [0, 0], sizes = [8, 192], strides = [1, 1]} : vector<8x256xf32> to vector<8x192xf32>
    %265 = arith.negf %264 : vector<8x192xf32>
    %266 = math.exp %265 : vector<8x192xf32>
    %cst_67 = arith.constant 1.000000e+00 : f32
    %267 = vector.broadcast %cst_67 : f32 to vector<8x192xf32>
    %268 = arith.addf %267, %266 : vector<8x192xf32>
    %269 = arith.divf %267, %268 : vector<8x192xf32>
    %270 = vector.extract_strided_slice %263 {offsets = [0, 192], sizes = [8, 64], strides = [1, 1]} : vector<8x256xf32> to vector<8x64xf32>
    %271 = math.tanh %270 : vector<8x64xf32>
    %272 = vector.extract_strided_slice %269 {offsets = [0, 64], sizes = [8, 64], strides = [1, 1]} : vector<8x192xf32> to vector<8x64xf32>
    %273 = arith.mulf %272, %253 : vector<8x64xf32>
    %274 = vector.extract_strided_slice %269 {offsets = [0, 0], sizes = [8, 64], strides = [1, 1]} : vector<8x192xf32> to vector<8x64xf32>
    %275 = arith.mulf %274, %271 : vector<8x64xf32>
    %276 = arith.addf %273, %275 : vector<8x64xf32>
    %277 = vector.extract_strided_slice %269 {offsets = [0, 128], sizes = [8, 64], strides = [1, 1]} : vector<8x192xf32> to vector<8x64xf32>
    %278 = math.tanh %276 : vector<8x64xf32>
    %279 = arith.mulf %277, %278 : vector<8x64xf32>
    %280 = vector.extract_strided_slice %279 {offsets = [0, 0], sizes = [8, 32], strides = [1, 1]} : vector<8x64xf32> to vector<8x32xf32>
    %c32_68 = arith.constant 32 : index
    %c0_69 = arith.constant 0 : index
    %281 = vector.load %arg7[%c32_68, %c0_69] : memref<64x64xf32, #tpu.memory_space<vmem>>, vector<8x32xf32>
    tpu.vector_store %arg7[%c32_68, %c0_69], %280 {strides = array<i32>} : memref<64x64xf32, #tpu.memory_space<vmem>>, vector<8x32xf32>,
    %282 = vector.extract_strided_slice %279 {offsets = [0, 32], sizes = [8, 32], strides = [1, 1]} : vector<8x64xf32> to vector<8x32xf32>
    %c24_70 = arith.constant 24 : index
    %c32_71 = arith.constant 32 : index
    %283 = vector.load %arg7[%c24_70, %c32_71] : memref<64x64xf32, #tpu.memory_space<vmem>>, vector<8x32xf32>
    tpu.vector_store %arg7[%c24_70, %c32_71], %282 {strides = array<i32>} : memref<64x64xf32, #tpu.memory_space<vmem>>, vector<8x32xf32>,
    %c40_72 = arith.constant 40 : index
    %c0_73 = arith.constant 0 : index
    %284 = vector.load %arg6[%c40_72, %c0_73] : memref<64x256xf32, #tpu.memory_space<vmem>>, vector<8x256xf32>
    %cst_74 = arith.constant dense<0.000000e+00> : vector<8x256xf32>
    %285 = tpu.matmul %279, %166, %cst_74 {dimension_numbers = #tpu.dot_dimension_numbers<[1], [0], [0], [1], [0, 0, 1, 1], [], []>} : vector<8x64xf32>, vector<64x256xf32>, vector<8x256xf32> -> vector<8x256xf32>
    %286 = arith.addf %284, %285 : vector<8x256xf32>
    %287 = vector.extract_strided_slice %286 {offsets = [0, 0], sizes = [8, 192], strides = [1, 1]} : vector<8x256xf32> to vector<8x192xf32>
    %288 = arith.negf %287 : vector<8x192xf32>
    %289 = math.exp %288 : vector<8x192xf32>
    %cst_75 = arith.constant 1.000000e+00 : f32
    %290 = vector.broadcast %cst_75 : f32 to vector<8x192xf32>
    %291 = arith.addf %290, %289 : vector<8x192xf32>
    %292 = arith.divf %290, %291 : vector<8x192xf32>
    %293 = vector.extract_strided_slice %286 {offsets = [0, 192], sizes = [8, 64], strides = [1, 1]} : vector<8x256xf32> to vector<8x64xf32>
    %294 = math.tanh %293 : vector<8x64xf32>
    %295 = vector.extract_strided_slice %292 {offsets = [0, 64], sizes = [8, 64], strides = [1, 1]} : vector<8x192xf32> to vector<8x64xf32>
    %296 = arith.mulf %295, %276 : vector<8x64xf32>
    %297 = vector.extract_strided_slice %292 {offsets = [0, 0], sizes = [8, 64], strides = [1, 1]} : vector<8x192xf32> to vector<8x64xf32>
    %298 = arith.mulf %297, %294 : vector<8x64xf32>
    %299 = arith.addf %296, %298 : vector<8x64xf32>
    %300 = vector.extract_strided_slice %292 {offsets = [0, 128], sizes = [8, 64], strides = [1, 1]} : vector<8x192xf32> to vector<8x64xf32>
    %301 = math.tanh %299 : vector<8x64xf32>
    %302 = arith.mulf %300, %301 : vector<8x64xf32>
    %303 = vector.extract_strided_slice %302 {offsets = [0, 0], sizes = [8, 32], strides = [1, 1]} : vector<8x64xf32> to vector<8x32xf32>
    %c40_76 = arith.constant 40 : index
    %c0_77 = arith.constant 0 : index
    %304 = vector.load %arg7[%c40_76, %c0_77] : memref<64x64xf32, #tpu.memory_space<vmem>>, vector<8x32xf32>
    tpu.vector_store %arg7[%c40_76, %c0_77], %303 {strides = array<i32>} : memref<64x64xf32, #tpu.memory_space<vmem>>, vector<8x32xf32>,
    %305 = vector.extract_strided_slice %302 {offsets = [0, 32], sizes = [8, 32], strides = [1, 1]} : vector<8x64xf32> to vector<8x32xf32>
    %c16_78 = arith.constant 16 : index
    %c32_79 = arith.constant 32 : index
    %306 = vector.load %arg7[%c16_78, %c32_79] : memref<64x64xf32, #tpu.memory_space<vmem>>, vector<8x32xf32>
    tpu.vector_store %arg7[%c16_78, %c32_79], %305 {strides = array<i32>} : memref<64x64xf32, #tpu.memory_space<vmem>>, vector<8x32xf32>,
    %c48_80 = arith.constant 48 : index
    %c0_81 = arith.constant 0 : index
    %307 = vector.load %arg6[%c48_80, %c0_81] : memref<64x256xf32, #tpu.memory_space<vmem>>, vector<8x256xf32>
    %cst_82 = arith.constant dense<0.000000e+00> : vector<8x256xf32>
    %308 = tpu.matmul %302, %166, %cst_82 {dimension_numbers = #tpu.dot_dimension_numbers<[1], [0], [0], [1], [0, 0, 1, 1], [], []>} : vector<8x64xf32>, vector<64x256xf32>, vector<8x256xf32> -> vector<8x256xf32>
    %309 = arith.addf %307, %308 : vector<8x256xf32>
    %310 = vector.extract_strided_slice %309 {offsets = [0, 0], sizes = [8, 192], strides = [1, 1]} : vector<8x256xf32> to vector<8x192xf32>
    %311 = arith.negf %310 : vector<8x192xf32>
    %312 = math.exp %311 : vector<8x192xf32>
    %cst_83 = arith.constant 1.000000e+00 : f32
    %313 = vector.broadcast %cst_83 : f32 to vector<8x192xf32>
    %314 = arith.addf %313, %312 : vector<8x192xf32>
    %315 = arith.divf %313, %314 : vector<8x192xf32>
    %316 = vector.extract_strided_slice %309 {offsets = [0, 192], sizes = [8, 64], strides = [1, 1]} : vector<8x256xf32> to vector<8x64xf32>
    %317 = math.tanh %316 : vector<8x64xf32>
    %318 = vector.extract_strided_slice %315 {offsets = [0, 64], sizes = [8, 64], strides = [1, 1]} : vector<8x192xf32> to vector<8x64xf32>
    %319 = arith.mulf %318, %299 : vector<8x64xf32>
    %320 = vector.extract_strided_slice %315 {offsets = [0, 0], sizes = [8, 64], strides = [1, 1]} : vector<8x192xf32> to vector<8x64xf32>
    %321 = arith.mulf %320, %317 : vector<8x64xf32>
    %322 = arith.addf %319, %321 : vector<8x64xf32>
    %323 = vector.extract_strided_slice %315 {offsets = [0, 128], sizes = [8, 64], strides = [1, 1]} : vector<8x192xf32> to vector<8x64xf32>
    %324 = math.tanh %322 : vector<8x64xf32>
    %325 = arith.mulf %323, %324 : vector<8x64xf32>
    %326 = vector.extract_strided_slice %325 {offsets = [0, 0], sizes = [8, 32], strides = [1, 1]} : vector<8x64xf32> to vector<8x32xf32>
    %c48_84 = arith.constant 48 : index
    %c0_85 = arith.constant 0 : index
    %327 = vector.load %arg7[%c48_84, %c0_85] : memref<64x64xf32, #tpu.memory_space<vmem>>, vector<8x32xf32>
    tpu.vector_store %arg7[%c48_84, %c0_85], %326 {strides = array<i32>} : memref<64x64xf32, #tpu.memory_space<vmem>>, vector<8x32xf32>,
    %328 = vector.extract_strided_slice %325 {offsets = [0, 32], sizes = [8, 32], strides = [1, 1]} : vector<8x64xf32> to vector<8x32xf32>
    %c8_86 = arith.constant 8 : index
    %c32_87 = arith.constant 32 : index
    %329 = vector.load %arg7[%c8_86, %c32_87] : memref<64x64xf32, #tpu.memory_space<vmem>>, vector<8x32xf32>
    tpu.vector_store %arg7[%c8_86, %c32_87], %328 {strides = array<i32>} : memref<64x64xf32, #tpu.memory_space<vmem>>, vector<8x32xf32>,
    %c56_88 = arith.constant 56 : index
    %c0_89 = arith.constant 0 : index
    %330 = vector.load %arg6[%c56_88, %c0_89] : memref<64x256xf32, #tpu.memory_space<vmem>>, vector<8x256xf32>
    %cst_90 = arith.constant dense<0.000000e+00> : vector<8x256xf32>
    %331 = tpu.matmul %325, %166, %cst_90 {dimension_numbers = #tpu.dot_dimension_numbers<[1], [0], [0], [1], [0, 0, 1, 1], [], []>} : vector<8x64xf32>, vector<64x256xf32>, vector<8x256xf32> -> vector<8x256xf32>
    %332 = arith.addf %330, %331 : vector<8x256xf32>
    %333 = vector.extract_strided_slice %332 {offsets = [0, 0], sizes = [8, 192], strides = [1, 1]} : vector<8x256xf32> to vector<8x192xf32>
    %334 = arith.negf %333 : vector<8x192xf32>
    %335 = math.exp %334 : vector<8x192xf32>
    %cst_91 = arith.constant 1.000000e+00 : f32
    %336 = vector.broadcast %cst_91 : f32 to vector<8x192xf32>
    %337 = arith.addf %336, %335 : vector<8x192xf32>
    %338 = arith.divf %336, %337 : vector<8x192xf32>
    %339 = vector.extract_strided_slice %332 {offsets = [0, 192], sizes = [8, 64], strides = [1, 1]} : vector<8x256xf32> to vector<8x64xf32>
    %340 = math.tanh %339 : vector<8x64xf32>
    %341 = vector.extract_strided_slice %338 {offsets = [0, 64], sizes = [8, 64], strides = [1, 1]} : vector<8x192xf32> to vector<8x64xf32>
    %342 = arith.mulf %341, %322 : vector<8x64xf32>
    %343 = vector.extract_strided_slice %338 {offsets = [0, 0], sizes = [8, 64], strides = [1, 1]} : vector<8x192xf32> to vector<8x64xf32>
    %344 = arith.mulf %343, %340 : vector<8x64xf32>
    %345 = arith.addf %342, %344 : vector<8x64xf32>
    %346 = vector.extract_strided_slice %338 {offsets = [0, 128], sizes = [8, 64], strides = [1, 1]} : vector<8x192xf32> to vector<8x64xf32>
    %347 = math.tanh %345 : vector<8x64xf32>
    %348 = arith.mulf %346, %347 : vector<8x64xf32>
    %349 = vector.extract_strided_slice %348 {offsets = [0, 0], sizes = [8, 32], strides = [1, 1]} : vector<8x64xf32> to vector<8x32xf32>
    %c56_92 = arith.constant 56 : index
    %c0_93 = arith.constant 0 : index
    %350 = vector.load %arg7[%c56_92, %c0_93] : memref<64x64xf32, #tpu.memory_space<vmem>>, vector<8x32xf32>
    tpu.vector_store %arg7[%c56_92, %c0_93], %349 {strides = array<i32>} : memref<64x64xf32, #tpu.memory_space<vmem>>, vector<8x32xf32>,
    %351 = vector.extract_strided_slice %348 {offsets = [0, 32], sizes = [8, 32], strides = [1, 1]} : vector<8x64xf32> to vector<8x32xf32>
    %c0_94 = arith.constant 0 : index
    %c32_95 = arith.constant 32 : index
    %352 = vector.load %arg7[%c0_94, %c32_95] : memref<64x64xf32, #tpu.memory_space<vmem>>, vector<8x32xf32>
    tpu.vector_store %arg7[%c0_94, %c32_95], %351 {strides = array<i32>} : memref<64x64xf32, #tpu.memory_space<vmem>>, vector<8x32xf32>,
    %c0_96 = arith.constant 0 : index
    %c0_97 = arith.constant 0 : index
    %353 = vector.load %arg7[%c0_96, %c0_97] : memref<64x64xf32, #tpu.memory_space<vmem>>, vector<64x64xf32>
    %354 = vector.extract_strided_slice %353 {offsets = [0, 0], sizes = [64, 32], strides = [1, 1]} : vector<64x64xf32> to vector<64x32xf32>
    %355 = vector.extract_strided_slice %353 {offsets = [0, 32], sizes = [64, 32], strides = [1, 1]} : vector<64x64xf32> to vector<64x32xf32>
    %356 = arith.addf %354, %355 : vector<64x32xf32>
    %cst_98 = arith.constant 5.000000e-01 : f32
    %357 = vector.broadcast %cst_98 : f32 to vector<64x32xf32>
    %358 = arith.mulf %356, %357 : vector<64x32xf32>
    %c0_99 = arith.constant 0 : index
    %c0_100 = arith.constant 0 : index
    %359 = vector.load %arg4[%c0_99, %c0_100] : memref<104x32xf32, #tpu.memory_space<vmem>>, vector<32x32xf32>
    %c96 = arith.constant 96 : index
    %c0_101 = arith.constant 0 : index
    %360 = vector.load %arg4[%c96, %c0_101] : memref<104x32xf32, #tpu.memory_space<vmem>>, vector<1x32xf32>
    %cst_102 = arith.constant dense<0.000000e+00> : vector<64x32xf32>
    %361 = tpu.matmul %358, %359, %cst_102 {dimension_numbers = #tpu.dot_dimension_numbers<[1], [0], [0], [1], [0, 0, 1, 1], [], []>} : vector<64x32xf32>, vector<32x32xf32>, vector<64x32xf32> -> vector<64x32xf32>
    %362 = vector.broadcast %360 : vector<1x32xf32> to vector<64x32xf32>
    %363 = arith.addf %361, %362 : vector<64x32xf32>
    %cst_103 = arith.constant 0.000000e+00 : f32
    %364 = vector.broadcast %cst_103 : f32 to vector<64x32xf32>
    %365 = arith.maximumf %363, %364 : vector<64x32xf32>
    %366 = vector.extract_strided_slice %365 {offsets = [0, 0], sizes = [8, 32], strides = [1, 1]} : vector<64x32xf32> to vector<8x32xf32>
    %367 = vector.extract_strided_slice %365 {offsets = [8, 0], sizes = [8, 32], strides = [1, 1]} : vector<64x32xf32> to vector<8x32xf32>
    %368 = vector.extract_strided_slice %365 {offsets = [16, 0], sizes = [8, 32], strides = [1, 1]} : vector<64x32xf32> to vector<8x32xf32>
    %369 = vector.extract_strided_slice %365 {offsets = [24, 0], sizes = [8, 32], strides = [1, 1]} : vector<64x32xf32> to vector<8x32xf32>
    %370 = vector.extract_strided_slice %365 {offsets = [32, 0], sizes = [8, 32], strides = [1, 1]} : vector<64x32xf32> to vector<8x32xf32>
    %371 = vector.extract_strided_slice %365 {offsets = [40, 0], sizes = [8, 32], strides = [1, 1]} : vector<64x32xf32> to vector<8x32xf32>
    %372 = vector.extract_strided_slice %365 {offsets = [48, 0], sizes = [8, 32], strides = [1, 1]} : vector<64x32xf32> to vector<8x32xf32>
    %373 = vector.extract_strided_slice %365 {offsets = [56, 0], sizes = [8, 32], strides = [1, 1]} : vector<64x32xf32> to vector<8x32xf32>
    %374 = arith.minimumf %366, %367 : vector<8x32xf32>
    %375 = arith.maximumf %366, %367 : vector<8x32xf32>
    %376 = arith.minimumf %368, %369 : vector<8x32xf32>
    %377 = arith.maximumf %368, %369 : vector<8x32xf32>
    %378 = arith.minimumf %370, %371 : vector<8x32xf32>
    %379 = arith.maximumf %370, %371 : vector<8x32xf32>
    %380 = arith.minimumf %372, %373 : vector<8x32xf32>
    %381 = arith.maximumf %372, %373 : vector<8x32xf32>
    %382 = arith.minimumf %374, %376 : vector<8x32xf32>
    %383 = arith.maximumf %374, %376 : vector<8x32xf32>
    %384 = arith.minimumf %375, %377 : vector<8x32xf32>
    %385 = arith.maximumf %375, %377 : vector<8x32xf32>
    %386 = arith.minimumf %378, %380 : vector<8x32xf32>
    %387 = arith.maximumf %378, %380 : vector<8x32xf32>
    %388 = arith.minimumf %379, %381 : vector<8x32xf32>
    %389 = arith.maximumf %379, %381 : vector<8x32xf32>
    %390 = arith.minimumf %384, %383 : vector<8x32xf32>
    %391 = arith.maximumf %384, %383 : vector<8x32xf32>
    %392 = arith.minimumf %388, %387 : vector<8x32xf32>
    %393 = arith.maximumf %388, %387 : vector<8x32xf32>
    %394 = arith.minimumf %382, %386 : vector<8x32xf32>
    %395 = arith.maximumf %382, %386 : vector<8x32xf32>
    %396 = arith.minimumf %390, %392 : vector<8x32xf32>
    %397 = arith.maximumf %390, %392 : vector<8x32xf32>
    %398 = arith.minimumf %391, %393 : vector<8x32xf32>
    %399 = arith.maximumf %391, %393 : vector<8x32xf32>
    %400 = arith.minimumf %385, %389 : vector<8x32xf32>
    %401 = arith.maximumf %385, %389 : vector<8x32xf32>
    %402 = arith.minimumf %398, %395 : vector<8x32xf32>
    %403 = arith.maximumf %398, %395 : vector<8x32xf32>
    %404 = arith.minimumf %400, %397 : vector<8x32xf32>
    %405 = arith.maximumf %400, %397 : vector<8x32xf32>
    %406 = arith.minimumf %396, %402 : vector<8x32xf32>
    %407 = arith.maximumf %396, %402 : vector<8x32xf32>
    %408 = arith.minimumf %404, %403 : vector<8x32xf32>
    %409 = arith.maximumf %404, %403 : vector<8x32xf32>
    %410 = arith.minimumf %405, %399 : vector<8x32xf32>
    %411 = arith.maximumf %405, %399 : vector<8x32xf32>
    %412 = tpu.concatenate %394, %406, %407, %408, %409, %410, %411, %401 in 0 : vector<8x32xf32>, vector<8x32xf32>, vector<8x32xf32>, vector<8x32xf32>, vector<8x32xf32>, vector<8x32xf32>, vector<8x32xf32>, vector<8x32xf32> -> vector<64x32xf32>
    %c0_104 = arith.constant 0 : index
    %c0_105 = arith.constant 0 : index
    %413 = vector.load %arg3[%c0_104, %c0_105] : memref<72x128xf32, #tpu.memory_space<vmem>>, vector<32x128xf32>
    %c32_106 = arith.constant 32 : index
    %c0_107 = arith.constant 0 : index
    %414 = vector.load %arg3[%c32_106, %c0_107] : memref<72x128xf32, #tpu.memory_space<vmem>>, vector<32x128xf32>
    %c64 = arith.constant 64 : index
    %c0_108 = arith.constant 0 : index
    %415 = vector.load %arg3[%c64, %c0_108] : memref<72x128xf32, #tpu.memory_space<vmem>>, vector<1x128xf32>
    %cst_109 = arith.constant dense<0.000000e+00> : vector<64x128xf32>
    %416 = tpu.matmul %412, %413, %cst_109 {dimension_numbers = #tpu.dot_dimension_numbers<[1], [0], [0], [1], [0, 0, 1, 1], [], []>} : vector<64x32xf32>, vector<32x128xf32>, vector<64x128xf32> -> vector<64x128xf32>
    %417 = vector.broadcast %415 : vector<1x128xf32> to vector<64x128xf32>
    %418 = arith.addf %416, %417 : vector<64x128xf32>
    %c0_110 = arith.constant 0 : index
    %c0_111 = arith.constant 0 : index
    %419 = vector.load %arg8[%c0_110, %c0_111] : memref<64x128xf32, #tpu.memory_space<vmem>>, vector<64x128xf32>
    tpu.vector_store %arg8[%c0_110, %c0_111], %418 {strides = array<i32>} : memref<64x128xf32, #tpu.memory_space<vmem>>, vector<64x128xf32>,
    %cst_112 = arith.constant 0.000000e+00 : f32
    %420 = vector.broadcast %cst_112 : f32 to vector<8x32xf32>
    %cst_113 = arith.constant 0.000000e+00 : f32
    %421 = vector.broadcast %cst_113 : f32 to vector<8x32xf32>
    %c0_114 = arith.constant 0 : index
    %c0_115 = arith.constant 0 : index
    %422 = vector.load %arg8[%c0_114, %c0_115] : memref<64x128xf32, #tpu.memory_space<vmem>>, vector<8x128xf32>
    %cst_116 = arith.constant dense<0.000000e+00> : vector<8x128xf32>
    %423 = tpu.matmul %420, %414, %cst_116 {dimension_numbers = #tpu.dot_dimension_numbers<[1], [0], [0], [1], [0, 0, 1, 1], [], []>} : vector<8x32xf32>, vector<32x128xf32>, vector<8x128xf32> -> vector<8x128xf32>
    %424 = arith.addf %422, %423 : vector<8x128xf32>
    %425 = vector.extract_strided_slice %424 {offsets = [0, 0], sizes = [8, 96], strides = [1, 1]} : vector<8x128xf32> to vector<8x96xf32>
    %426 = arith.negf %425 : vector<8x96xf32>
    %427 = math.exp %426 : vector<8x96xf32>
    %cst_117 = arith.constant 1.000000e+00 : f32
    %428 = vector.broadcast %cst_117 : f32 to vector<8x96xf32>
    %429 = arith.addf %428, %427 : vector<8x96xf32>
    %430 = arith.divf %428, %429 : vector<8x96xf32>
    %431 = vector.extract_strided_slice %424 {offsets = [0, 96], sizes = [8, 32], strides = [1, 1]} : vector<8x128xf32> to vector<8x32xf32>
    %432 = math.tanh %431 : vector<8x32xf32>
    %433 = vector.extract_strided_slice %430 {offsets = [0, 32], sizes = [8, 32], strides = [1, 1]} : vector<8x96xf32> to vector<8x32xf32>
    %434 = arith.mulf %433, %421 : vector<8x32xf32>
    %435 = vector.extract_strided_slice %430 {offsets = [0, 0], sizes = [8, 32], strides = [1, 1]} : vector<8x96xf32> to vector<8x32xf32>
    %436 = arith.mulf %435, %432 : vector<8x32xf32>
    %437 = arith.addf %434, %436 : vector<8x32xf32>
    %438 = vector.extract_strided_slice %430 {offsets = [0, 64], sizes = [8, 32], strides = [1, 1]} : vector<8x96xf32> to vector<8x32xf32>
    %439 = math.tanh %437 : vector<8x32xf32>
    %440 = arith.mulf %438, %439 : vector<8x32xf32>
    %c8_118 = arith.constant 8 : index
    %c0_119 = arith.constant 0 : index
    %441 = vector.load %arg8[%c8_118, %c0_119] : memref<64x128xf32, #tpu.memory_space<vmem>>, vector<8x128xf32>
    %cst_120 = arith.constant dense<0.000000e+00> : vector<8x128xf32>
    %442 = tpu.matmul %440, %414, %cst_120 {dimension_numbers = #tpu.dot_dimension_numbers<[1], [0], [0], [1], [0, 0, 1, 1], [], []>} : vector<8x32xf32>, vector<32x128xf32>, vector<8x128xf32> -> vector<8x128xf32>
    %443 = arith.addf %441, %442 : vector<8x128xf32>
    %444 = vector.extract_strided_slice %443 {offsets = [0, 0], sizes = [8, 96], strides = [1, 1]} : vector<8x128xf32> to vector<8x96xf32>
    %445 = arith.negf %444 : vector<8x96xf32>
    %446 = math.exp %445 : vector<8x96xf32>
    %cst_121 = arith.constant 1.000000e+00 : f32
    %447 = vector.broadcast %cst_121 : f32 to vector<8x96xf32>
    %448 = arith.addf %447, %446 : vector<8x96xf32>
    %449 = arith.divf %447, %448 : vector<8x96xf32>
    %450 = vector.extract_strided_slice %443 {offsets = [0, 96], sizes = [8, 32], strides = [1, 1]} : vector<8x128xf32> to vector<8x32xf32>
    %451 = math.tanh %450 : vector<8x32xf32>
    %452 = vector.extract_strided_slice %449 {offsets = [0, 32], sizes = [8, 32], strides = [1, 1]} : vector<8x96xf32> to vector<8x32xf32>
    %453 = arith.mulf %452, %437 : vector<8x32xf32>
    %454 = vector.extract_strided_slice %449 {offsets = [0, 0], sizes = [8, 32], strides = [1, 1]} : vector<8x96xf32> to vector<8x32xf32>
    %455 = arith.mulf %454, %451 : vector<8x32xf32>
    %456 = arith.addf %453, %455 : vector<8x32xf32>
    %457 = vector.extract_strided_slice %449 {offsets = [0, 64], sizes = [8, 32], strides = [1, 1]} : vector<8x96xf32> to vector<8x32xf32>
    %458 = math.tanh %456 : vector<8x32xf32>
    %459 = arith.mulf %457, %458 : vector<8x32xf32>
    %c16_122 = arith.constant 16 : index
    %c0_123 = arith.constant 0 : index
    %460 = vector.load %arg8[%c16_122, %c0_123] : memref<64x128xf32, #tpu.memory_space<vmem>>, vector<8x128xf32>
    %cst_124 = arith.constant dense<0.000000e+00> : vector<8x128xf32>
    %461 = tpu.matmul %459, %414, %cst_124 {dimension_numbers = #tpu.dot_dimension_numbers<[1], [0], [0], [1], [0, 0, 1, 1], [], []>} : vector<8x32xf32>, vector<32x128xf32>, vector<8x128xf32> -> vector<8x128xf32>
    %462 = arith.addf %460, %461 : vector<8x128xf32>
    %463 = vector.extract_strided_slice %462 {offsets = [0, 0], sizes = [8, 96], strides = [1, 1]} : vector<8x128xf32> to vector<8x96xf32>
    %464 = arith.negf %463 : vector<8x96xf32>
    %465 = math.exp %464 : vector<8x96xf32>
    %cst_125 = arith.constant 1.000000e+00 : f32
    %466 = vector.broadcast %cst_125 : f32 to vector<8x96xf32>
    %467 = arith.addf %466, %465 : vector<8x96xf32>
    %468 = arith.divf %466, %467 : vector<8x96xf32>
    %469 = vector.extract_strided_slice %462 {offsets = [0, 96], sizes = [8, 32], strides = [1, 1]} : vector<8x128xf32> to vector<8x32xf32>
    %470 = math.tanh %469 : vector<8x32xf32>
    %471 = vector.extract_strided_slice %468 {offsets = [0, 32], sizes = [8, 32], strides = [1, 1]} : vector<8x96xf32> to vector<8x32xf32>
    %472 = arith.mulf %471, %456 : vector<8x32xf32>
    %473 = vector.extract_strided_slice %468 {offsets = [0, 0], sizes = [8, 32], strides = [1, 1]} : vector<8x96xf32> to vector<8x32xf32>
    %474 = arith.mulf %473, %470 : vector<8x32xf32>
    %475 = arith.addf %472, %474 : vector<8x32xf32>
    %476 = vector.extract_strided_slice %468 {offsets = [0, 64], sizes = [8, 32], strides = [1, 1]} : vector<8x96xf32> to vector<8x32xf32>
    %477 = math.tanh %475 : vector<8x32xf32>
    %478 = arith.mulf %476, %477 : vector<8x32xf32>
    %c24_126 = arith.constant 24 : index
    %c0_127 = arith.constant 0 : index
    %479 = vector.load %arg8[%c24_126, %c0_127] : memref<64x128xf32, #tpu.memory_space<vmem>>, vector<8x128xf32>
    %cst_128 = arith.constant dense<0.000000e+00> : vector<8x128xf32>
    %480 = tpu.matmul %478, %414, %cst_128 {dimension_numbers = #tpu.dot_dimension_numbers<[1], [0], [0], [1], [0, 0, 1, 1], [], []>} : vector<8x32xf32>, vector<32x128xf32>, vector<8x128xf32> -> vector<8x128xf32>
    %481 = arith.addf %479, %480 : vector<8x128xf32>
    %482 = vector.extract_strided_slice %481 {offsets = [0, 0], sizes = [8, 96], strides = [1, 1]} : vector<8x128xf32> to vector<8x96xf32>
    %483 = arith.negf %482 : vector<8x96xf32>
    %484 = math.exp %483 : vector<8x96xf32>
    %cst_129 = arith.constant 1.000000e+00 : f32
    %485 = vector.broadcast %cst_129 : f32 to vector<8x96xf32>
    %486 = arith.addf %485, %484 : vector<8x96xf32>
    %487 = arith.divf %485, %486 : vector<8x96xf32>
    %488 = vector.extract_strided_slice %481 {offsets = [0, 96], sizes = [8, 32], strides = [1, 1]} : vector<8x128xf32> to vector<8x32xf32>
    %489 = math.tanh %488 : vector<8x32xf32>
    %490 = vector.extract_strided_slice %487 {offsets = [0, 32], sizes = [8, 32], strides = [1, 1]} : vector<8x96xf32> to vector<8x32xf32>
    %491 = arith.mulf %490, %475 : vector<8x32xf32>
    %492 = vector.extract_strided_slice %487 {offsets = [0, 0], sizes = [8, 32], strides = [1, 1]} : vector<8x96xf32> to vector<8x32xf32>
    %493 = arith.mulf %492, %489 : vector<8x32xf32>
    %494 = arith.addf %491, %493 : vector<8x32xf32>
    %495 = vector.extract_strided_slice %487 {offsets = [0, 64], sizes = [8, 32], strides = [1, 1]} : vector<8x96xf32> to vector<8x32xf32>
    %496 = math.tanh %494 : vector<8x32xf32>
    %497 = arith.mulf %495, %496 : vector<8x32xf32>
    %c32_130 = arith.constant 32 : index
    %c0_131 = arith.constant 0 : index
    %498 = vector.load %arg8[%c32_130, %c0_131] : memref<64x128xf32, #tpu.memory_space<vmem>>, vector<8x128xf32>
    %cst_132 = arith.constant dense<0.000000e+00> : vector<8x128xf32>
    %499 = tpu.matmul %497, %414, %cst_132 {dimension_numbers = #tpu.dot_dimension_numbers<[1], [0], [0], [1], [0, 0, 1, 1], [], []>} : vector<8x32xf32>, vector<32x128xf32>, vector<8x128xf32> -> vector<8x128xf32>
    %500 = arith.addf %498, %499 : vector<8x128xf32>
    %501 = vector.extract_strided_slice %500 {offsets = [0, 0], sizes = [8, 96], strides = [1, 1]} : vector<8x128xf32> to vector<8x96xf32>
    %502 = arith.negf %501 : vector<8x96xf32>
    %503 = math.exp %502 : vector<8x96xf32>
    %cst_133 = arith.constant 1.000000e+00 : f32
    %504 = vector.broadcast %cst_133 : f32 to vector<8x96xf32>
    %505 = arith.addf %504, %503 : vector<8x96xf32>
    %506 = arith.divf %504, %505 : vector<8x96xf32>
    %507 = vector.extract_strided_slice %500 {offsets = [0, 96], sizes = [8, 32], strides = [1, 1]} : vector<8x128xf32> to vector<8x32xf32>
    %508 = math.tanh %507 : vector<8x32xf32>
    %509 = vector.extract_strided_slice %506 {offsets = [0, 32], sizes = [8, 32], strides = [1, 1]} : vector<8x96xf32> to vector<8x32xf32>
    %510 = arith.mulf %509, %494 : vector<8x32xf32>
    %511 = vector.extract_strided_slice %506 {offsets = [0, 0], sizes = [8, 32], strides = [1, 1]} : vector<8x96xf32> to vector<8x32xf32>
    %512 = arith.mulf %511, %508 : vector<8x32xf32>
    %513 = arith.addf %510, %512 : vector<8x32xf32>
    %514 = vector.extract_strided_slice %506 {offsets = [0, 64], sizes = [8, 32], strides = [1, 1]} : vector<8x96xf32> to vector<8x32xf32>
    %515 = math.tanh %513 : vector<8x32xf32>
    %516 = arith.mulf %514, %515 : vector<8x32xf32>
    %c40_134 = arith.constant 40 : index
    %c0_135 = arith.constant 0 : index
    %517 = vector.load %arg8[%c40_134, %c0_135] : memref<64x128xf32, #tpu.memory_space<vmem>>, vector<8x128xf32>
    %cst_136 = arith.constant dense<0.000000e+00> : vector<8x128xf32>
    %518 = tpu.matmul %516, %414, %cst_136 {dimension_numbers = #tpu.dot_dimension_numbers<[1], [0], [0], [1], [0, 0, 1, 1], [], []>} : vector<8x32xf32>, vector<32x128xf32>, vector<8x128xf32> -> vector<8x128xf32>
    %519 = arith.addf %517, %518 : vector<8x128xf32>
    %520 = vector.extract_strided_slice %519 {offsets = [0, 0], sizes = [8, 96], strides = [1, 1]} : vector<8x128xf32> to vector<8x96xf32>
    %521 = arith.negf %520 : vector<8x96xf32>
    %522 = math.exp %521 : vector<8x96xf32>
    %cst_137 = arith.constant 1.000000e+00 : f32
    %523 = vector.broadcast %cst_137 : f32 to vector<8x96xf32>
    %524 = arith.addf %523, %522 : vector<8x96xf32>
    %525 = arith.divf %523, %524 : vector<8x96xf32>
    %526 = vector.extract_strided_slice %519 {offsets = [0, 96], sizes = [8, 32], strides = [1, 1]} : vector<8x128xf32> to vector<8x32xf32>
    %527 = math.tanh %526 : vector<8x32xf32>
    %528 = vector.extract_strided_slice %525 {offsets = [0, 32], sizes = [8, 32], strides = [1, 1]} : vector<8x96xf32> to vector<8x32xf32>
    %529 = arith.mulf %528, %513 : vector<8x32xf32>
    %530 = vector.extract_strided_slice %525 {offsets = [0, 0], sizes = [8, 32], strides = [1, 1]} : vector<8x96xf32> to vector<8x32xf32>
    %531 = arith.mulf %530, %527 : vector<8x32xf32>
    %532 = arith.addf %529, %531 : vector<8x32xf32>
    %533 = vector.extract_strided_slice %525 {offsets = [0, 64], sizes = [8, 32], strides = [1, 1]} : vector<8x96xf32> to vector<8x32xf32>
    %534 = math.tanh %532 : vector<8x32xf32>
    %535 = arith.mulf %533, %534 : vector<8x32xf32>
    %c48_138 = arith.constant 48 : index
    %c0_139 = arith.constant 0 : index
    %536 = vector.load %arg8[%c48_138, %c0_139] : memref<64x128xf32, #tpu.memory_space<vmem>>, vector<8x128xf32>
    %cst_140 = arith.constant dense<0.000000e+00> : vector<8x128xf32>
    %537 = tpu.matmul %535, %414, %cst_140 {dimension_numbers = #tpu.dot_dimension_numbers<[1], [0], [0], [1], [0, 0, 1, 1], [], []>} : vector<8x32xf32>, vector<32x128xf32>, vector<8x128xf32> -> vector<8x128xf32>
    %538 = arith.addf %536, %537 : vector<8x128xf32>
    %539 = vector.extract_strided_slice %538 {offsets = [0, 0], sizes = [8, 96], strides = [1, 1]} : vector<8x128xf32> to vector<8x96xf32>
    %540 = arith.negf %539 : vector<8x96xf32>
    %541 = math.exp %540 : vector<8x96xf32>
    %cst_141 = arith.constant 1.000000e+00 : f32
    %542 = vector.broadcast %cst_141 : f32 to vector<8x96xf32>
    %543 = arith.addf %542, %541 : vector<8x96xf32>
    %544 = arith.divf %542, %543 : vector<8x96xf32>
    %545 = vector.extract_strided_slice %538 {offsets = [0, 96], sizes = [8, 32], strides = [1, 1]} : vector<8x128xf32> to vector<8x32xf32>
    %546 = math.tanh %545 : vector<8x32xf32>
    %547 = vector.extract_strided_slice %544 {offsets = [0, 32], sizes = [8, 32], strides = [1, 1]} : vector<8x96xf32> to vector<8x32xf32>
    %548 = arith.mulf %547, %532 : vector<8x32xf32>
    %549 = vector.extract_strided_slice %544 {offsets = [0, 0], sizes = [8, 32], strides = [1, 1]} : vector<8x96xf32> to vector<8x32xf32>
    %550 = arith.mulf %549, %546 : vector<8x32xf32>
    %551 = arith.addf %548, %550 : vector<8x32xf32>
    %552 = vector.extract_strided_slice %544 {offsets = [0, 64], sizes = [8, 32], strides = [1, 1]} : vector<8x96xf32> to vector<8x32xf32>
    %553 = math.tanh %551 : vector<8x32xf32>
    %554 = arith.mulf %552, %553 : vector<8x32xf32>
    %c56_142 = arith.constant 56 : index
    %c0_143 = arith.constant 0 : index
    %555 = vector.load %arg8[%c56_142, %c0_143] : memref<64x128xf32, #tpu.memory_space<vmem>>, vector<8x128xf32>
    %cst_144 = arith.constant dense<0.000000e+00> : vector<8x128xf32>
    %556 = tpu.matmul %554, %414, %cst_144 {dimension_numbers = #tpu.dot_dimension_numbers<[1], [0], [0], [1], [0, 0, 1, 1], [], []>} : vector<8x32xf32>, vector<32x128xf32>, vector<8x128xf32> -> vector<8x128xf32>
    %557 = arith.addf %555, %556 : vector<8x128xf32>
    %558 = vector.extract_strided_slice %557 {offsets = [0, 0], sizes = [8, 96], strides = [1, 1]} : vector<8x128xf32> to vector<8x96xf32>
    %559 = arith.negf %558 : vector<8x96xf32>
    %560 = math.exp %559 : vector<8x96xf32>
    %cst_145 = arith.constant 1.000000e+00 : f32
    %561 = vector.broadcast %cst_145 : f32 to vector<8x96xf32>
    %562 = arith.addf %561, %560 : vector<8x96xf32>
    %563 = arith.divf %561, %562 : vector<8x96xf32>
    %564 = vector.extract_strided_slice %557 {offsets = [0, 96], sizes = [8, 32], strides = [1, 1]} : vector<8x128xf32> to vector<8x32xf32>
    %565 = math.tanh %564 : vector<8x32xf32>
    %566 = vector.extract_strided_slice %563 {offsets = [0, 32], sizes = [8, 32], strides = [1, 1]} : vector<8x96xf32> to vector<8x32xf32>
    %567 = arith.mulf %566, %551 : vector<8x32xf32>
    %568 = vector.extract_strided_slice %563 {offsets = [0, 0], sizes = [8, 32], strides = [1, 1]} : vector<8x96xf32> to vector<8x32xf32>
    %569 = arith.mulf %568, %565 : vector<8x32xf32>
    %570 = arith.addf %567, %569 : vector<8x32xf32>
    %571 = vector.extract_strided_slice %563 {offsets = [0, 64], sizes = [8, 32], strides = [1, 1]} : vector<8x96xf32> to vector<8x32xf32>
    %572 = math.tanh %570 : vector<8x32xf32>
    %573 = arith.mulf %571, %572 : vector<8x32xf32>
    %c32_146 = arith.constant 32 : index
    %c0_147 = arith.constant 0 : index
    %574 = vector.load %arg4[%c32_146, %c0_147] : memref<104x32xf32, #tpu.memory_space<vmem>>, vector<32x32xf32>
    %c97 = arith.constant 97 : index
    %c0_148 = arith.constant 0 : index
    %575 = vector.load %arg4[%c97, %c0_148] : memref<104x32xf32, #tpu.memory_space<vmem>>, vector<1x32xf32>
    %cst_149 = arith.constant dense<0.000000e+00> : vector<8x32xf32>
    %576 = tpu.matmul %573, %574, %cst_149 {dimension_numbers = #tpu.dot_dimension_numbers<[1], [0], [0], [1], [0, 0, 1, 1], [], []>} : vector<8x32xf32>, vector<32x32xf32>, vector<8x32xf32> -> vector<8x32xf32>
    %577 = vector.broadcast %575 : vector<1x32xf32> to vector<8x32xf32>
    %578 = arith.addf %576, %577 : vector<8x32xf32>
    %cst_150 = arith.constant 0.000000e+00 : f32
    %579 = vector.broadcast %cst_150 : f32 to vector<8x32xf32>
    %580 = arith.maximumf %578, %579 : vector<8x32xf32>
    %c64_151 = arith.constant 64 : index
    %c0_152 = arith.constant 0 : index
    %581 = vector.load %arg4[%c64_151, %c0_152] : memref<104x32xf32, #tpu.memory_space<vmem>>, vector<32x32xf32>
    %c98 = arith.constant 98 : index
    %c0_153 = arith.constant 0 : index
    %582 = vector.load %arg4[%c98, %c0_153] : memref<104x32xf32, #tpu.memory_space<vmem>>, vector<1x1xf32>
    %cst_154 = arith.constant dense<0.000000e+00> : vector<8x32xf32>
    %583 = tpu.matmul %580, %581, %cst_154 {dimension_numbers = #tpu.dot_dimension_numbers<[1], [0], [0], [1], [0, 0, 1, 1], [], []>} : vector<8x32xf32>, vector<32x32xf32>, vector<8x32xf32> -> vector<8x32xf32>
    %584 = vector.extract_strided_slice %583 {offsets = [0, 0], sizes = [8, 1], strides = [1, 1]} : vector<8x32xf32> to vector<8x1xf32>
    %585 = vector.broadcast %582 : vector<1x1xf32> to vector<8x1xf32>
    %586 = arith.addf %584, %585 : vector<8x1xf32>
    %587 = arith.negf %586 : vector<8x1xf32>
    %588 = math.exp %587 : vector<8x1xf32>
    %cst_155 = arith.constant 1.000000e+00 : f32
    %589 = vector.broadcast %cst_155 : f32 to vector<8x1xf32>
    %590 = arith.addf %589, %588 : vector<8x1xf32>
    %591 = arith.divf %589, %590 : vector<8x1xf32>
    %c0_156 = arith.constant 0 : index
    %c0_157 = arith.constant 0 : index
    %592 = vector.load %arg5[%c0_156, %c0_157] : memref<8x1xf32, #tpu.memory_space<vmem>>, vector<8x1xf32>
    tpu.vector_store %arg5[%c0_156, %c0_157], %591 {strides = array<i32>} : memref<8x1xf32, #tpu.memory_space<vmem>>, vector<8x1xf32>,
    return
  }
  func.func @transform_0(%arg0: i32) -> (i32, i32) {
    %c0_i32 = arith.constant 0 : i32
    %c0_i32_0 = arith.constant 0 : i32
    return %arg0, %c0_i32 : i32, i32
  }
  func.func @transform_1(%arg0: i32) -> (i32, i32) {
    %c0_i32 = arith.constant 0 : i32
    %c0_i32_0 = arith.constant 0 : i32
    %c0_i32_1 = arith.constant 0 : i32
    return %c0_i32, %c0_i32_0 : i32, i32
  }
  func.func @transform_2(%arg0: i32) -> (i32, i32) {
    %c0_i32 = arith.constant 0 : i32
    %c0_i32_0 = arith.constant 0 : i32
    %c0_i32_1 = arith.constant 0 : i32
    return %c0_i32, %c0_i32_0 : i32, i32
  }
  func.func @transform_3(%arg0: i32) -> (i32, i32) {
    %c0_i32 = arith.constant 0 : i32
    %c0_i32_0 = arith.constant 0 : i32
    %c0_i32_1 = arith.constant 0 : i32
    return %c0_i32, %c0_i32_0 : i32, i32
  }
  func.func @transform_4(%arg0: i32) -> (i32, i32) {
    %c0_i32 = arith.constant 0 : i32
    %c0_i32_0 = arith.constant 0 : i32
    return %arg0, %c0_i32 : i32, i32
  }
}

</mosaic_0001>

<bundles_post_ra>
// kernel: my_model_forward.1
= control target key start
LH: loop header
LB: loop body
LE: loop exit
PB: predicated region body
PF: predicated region fallthrough
CT: control target
= control target key end

     0   :  { %9 = vsyncpa [#allocation6], 0  ;;  %s2298_s18 = smov [#allocation5]   ;;  %s2299_s20 = smov 256   ;;  %s2911_s0 = inlined_call_operand.vmem [shape: s32[8,8], index: 0, kind: input, shape index: {}]   ;;  %s2912_s1 = inlined_call_operand.hbm [shape: f32[88,256], index: 1, kind: input, shape index: {}]   ;;  %s2913_s2 = inlined_call_operand.vmem [shape: f32[72,128], index: 2, kind: input, shape index: {}]   ;;  %s2914_s3 = inlined_call_operand.vmem [shape: f32[104,32], index: 3, kind: input, shape index: {}]   ;;  %s2915_s4 = inlined_call_operand.vmem [shape: f32[8,1], index: 4, kind: output, shape index: {}]  }
   0x1   :  { %s16_s17 = sshll.u32 %s2912_s1, 4  ;;  %s18_s19 = sshll.u32 %s2298_s18, 4  ;;  %s17_s17 = int_to_ptr.hbm [resolvable:$true] %s16_s17  ;;  %s19_s19 = int_to_ptr.vmem [resolvable:$true] %s18_s19 }
   0x2   :  { %s2300_s21 = smov 16  }
   0x3   :  { %24 = dma.hbm_to_vmem [thread:$0]  %s17_s17, 2816, %s19_s19, [#allocation6], %s2299_s20, %s2299_s20, %s2300_s21  }
   0x4   :  { %2296 = dma.done.wait [#allocation6], 2816  }
   0x5   :  { %2297 = vsyncadd [#allocation6], 4294964480  ;;  %v2301_v0 = vmov 0   ;;  %v2345_v1 = vld [vmem:[%s2911_s0] sm:$0xff]  ;;  %v2349_v3 = vld [vmem:[#allocation5 + $0xa8] sm:$0xff]  ;;  %v2302_v11 = vmov 7   ;;  %v34_v27 = vlaneseq }
   0x6   :  { %2089 = vset.pattern.permute.xlu0 %v2301_v0  ;;  %v2347_v2 = vld [vmem:[#allocation5 + $0xa0] sm:$0xff]  ;;  %v2353_v4 = vld [vmem:[#allocation5 + $0x90] sm:$0xff]  ;;  %v2355_v5 = vld [vmem:[#allocation5 + $0x98] sm:$0xff]  ;;  %324 = vmatpush.msra.mxu3 %v2349_v3  ;;  %v2370_v10 = vadd.s32 10, %v2345_v1  ;;  %v2303_v22 = vmov 0.0   ;;  %vm151_vm8 = vcmask 195584  }
   0x7   :  { %38 = vperm.xlu0 %2089, %v2345_v1   ;;  %304 = vmatpush.msra.mxu2 %v2347_v2  ;;  %v2358_v6 = vld [vmem:[#allocation5 + $0x80] sm:$0xff]  ;;  %v2360_v7 = vld [vmem:[#allocation5 + $0x88] sm:$0xff]  ;;  %v2364_v8 = vld [vmem:[#allocation5 + $0x70] sm:$0xff]  ;;  %v2445_v29 = vand.u32 127, %v34_v27  ;;  %s2304_s0 = smov 64   ;;  %v2305_v43 = vmov 6  }
   0x8   :  { %325 = vmatpush.msra.mxu3 %v2355_v5  ;;  %v2367_v9 = vld [vmem:[#allocation5 + $0x78] sm:$0xff]  ;;  %v2377_v12 = vld [vmem:[#allocation5 + $0x60] sm:$0xff]  ;;  %v2379_v13 = vld [vmem:[#allocation5 + $0x68] sm:$0xff]  ;;  %2092 = vset.pattern.permute.xlu1 %v2305_v43  ;;  %v2306_v56 = vmov 1   ;;  %s2311_s1 = smov 96   ;;  %s2312_s25 = smov 32  }
   0x9   :  { %305 = vmatpush.msra.mxu2 %v2353_v4  ;;  %v2383_v14 = vld [vmem:[#allocation5 + $0x50] sm:$0xff]  ;;  %v2385_v15 = vld [vmem:[#allocation5 + $0x58] sm:$0xff]  ;;  %v2387_v16 = vld [vmem:[#allocation5 + $0x40] sm:$0xff]  ;;  %vm42_vm0 = vcmp.ge.s32.totalorder %v2445_v29, 10  ;;  %vm43_vm1 = vcmp.lt.s32.totalorder %v2445_v29, 20  ;;  %vm36_vm2 = vcmp.lt.s32.totalorder %v2445_v29, 10  ;;  %2091 = vset.pattern.permute.xlu2 %v2306_v56 }
   0xa   :  { %326 = vmatpush.msra.mxu3 %v2360_v7  ;;  %v2391_v17 = vld [vmem:[#allocation5 + $0x48] sm:$0xff]  ;;  %v2393_v18 = vld [vmem:[#allocation5 + $0x30] sm:$0xff]  ;;  %v2395_v19 = vld [vmem:[#allocation5 + $0x38] sm:$0xff] }
   0xb   :  { %306 = vmatpush.msra.mxu2 %v2358_v6  ;;  %v149_v20 = vld [vmem:[#allocation5 + $0x20] sm:$0xff]  ;;  %v150_v21 = vld [vmem:[#allocation5 + $0x28] sm:$0xff]  ;;  %v147_v23 = vld [vmem:[#allocation5 + $0x10] sm:$0xff] }
   0xc   :  { %327 = vmatpush.msra.mxu3 %v2367_v9  ;;  %189 = vmatpush.msra.mxu0 %v149_v20  ;;  %v148_v24 = vld [vmem:[#allocation5 + $0x18] sm:$0xff]  ;;  %v145_v25 = vld [vmem:[#allocation5] sm:$0xff]  ;;  %v146_v26 = vld [vmem:[#allocation5 + $0x8] sm:$0xff] }
   0xd   :  { %307 = vmatpush.msra.mxu2 %v2364_v8  ;;  %230 = vmatpush.msra.mxu1 %v150_v21  ;;  %vm2457_vm4 = vmand %vm42_vm0, %vm43_vm1 }
   0xe   :  { %328 = vmatpush.msra.mxu3 %v2379_v13  ;;  %190 = vmatpush.msra.mxu0 %v147_v23 }
   0xf   :  { %2090 = vset.pattern.permute.xlu0 %v2302_v11  ;;  %308 = vmatpush.msra.mxu2 %v2377_v12 }
  0x10   :  { %47 = vperm.xlu0 %2090, %v2370_v10   ;;  %329 = vmatpush.msra.mxu3 %v2385_v15 }
  0x11   :  { %309 = vmatpush.msra.mxu2 %v2383_v14  ;;  %231 = vmatpush.msra.mxu1 %v148_v24 }
  0x12   :  { %330 = vmatpush.msra.mxu3 %v2391_v17  ;;  %191 = vmatpush.msra.mxu0 %v145_v25 }
  0x13   :  { %310 = vmatpush.msra.mxu2 %v2387_v16  ;;  %232 = vmatpush.msra.mxu1 %v146_v26 }
  0x14   :  { %331 = vmatpush.msra.mxu3 %v2395_v19  ;;  %726 = vmatpush.msrb.mxu0 %v2347_v2 }
  0x15   :  { %311 = vmatpush.msra.mxu2 %v2393_v18  ;;  %332 = vmatmul.f32.vlgmr.msra.gmra.mxu3 %v2303_v22 }
  0x16   :  { %312 = vmatmul.f32.vlgmr.msra.gmra.mxu2 %v2303_v22  ;;  %431 = vmatpush.msrb.mxu3 %v2349_v3 }
  0x17   :  { %411 = vmatpush.msrb.mxu2 %v2347_v2  ;;  %746 = vmatpush.msrb.mxu1 %v2349_v3 }
  0x18   :  { %432 = vmatpush.msrb.mxu3 %v2355_v5  ;;  %727 = vmatpush.msrb.mxu0 %v2353_v4 }
  0x19   :  { %412 = vmatpush.msrb.mxu2 %v2353_v4  ;;  %747 = vmatpush.msrb.mxu1 %v2355_v5 }
  0x1a   :  { %433 = vmatpush.msrb.mxu3 %v2360_v7  ;;  %728 = vmatpush.msrb.mxu0 %v2358_v6 }
  0x1b   :  { %413 = vmatpush.msrb.mxu2 %v2358_v6  ;;  %748 = vmatpush.msrb.mxu1 %v2360_v7 }
  0x1c   :  { %434 = vmatpush.msrb.mxu3 %v2367_v9  ;;  %729 = vmatpush.msrb.mxu0 %v2364_v8 }
  0x1d   :  { %414 = vmatpush.msrb.mxu2 %v2364_v8  ;;  %749 = vmatpush.msrb.mxu1 %v2367_v9 }
  0x1e   :  { %435 = vmatpush.msrb.mxu3 %v2379_v13  ;;  %730 = vmatpush.msrb.mxu0 %v2377_v12 }
  0x1f   :  { %415 = vmatpush.msrb.mxu2 %v2377_v12  ;;  %750 = vmatpush.msrb.mxu1 %v2379_v13 }
  0x20   :  { %436 = vmatpush.msrb.mxu3 %v2385_v15  ;;  %731 = vmatpush.msrb.mxu0 %v2383_v14 }
  0x21   :  { %416 = vmatpush.msrb.mxu2 %v2383_v14  ;;  %751 = vmatpush.msrb.mxu1 %v2385_v15 }
  0x22   :  { %437 = vmatpush.msrb.mxu3 %v2391_v17  ;;  %732 = vmatpush.msrb.mxu0 %v2387_v16 }
  0x23   :  { %417 = vmatpush.msrb.mxu2 %v2387_v16  ;;  %752 = vmatpush.msrb.mxu1 %v2391_v17 }
  0x24   :  { %438 = vmatpush.msrb.mxu3 %v2395_v19  ;;  %733 = vmatpush.msrb.mxu0 %v2393_v18 }
  0x25   :  { %418 = vmatpush.msrb.mxu2 %v2393_v18  ;;  %753 = vmatpush.msrb.mxu1 %v2395_v19 }
  0x26   :  { %536 = vmatpush.msra.mxu3 %v2349_v3 }
  0x27   :  { %516 = vmatpush.msra.mxu2 %v2347_v2 }
  0x28   :  { %537 = vmatpush.msra.mxu3 %v2355_v5 }
  0x29   :  { %517 = vmatpush.msra.mxu2 %v2353_v4 }
  0x2a   :  { %538 = vmatpush.msra.mxu3 %v2360_v7 }
  0x2b   :  { %518 = vmatpush.msra.mxu2 %v2358_v6 }
  0x2c   :  { %539 = vmatpush.msra.mxu3 %v2367_v9 }
  0x2d   :  { %519 = vmatpush.msra.mxu2 %v2364_v8 }
  0x2e   :  { %540 = vmatpush.msra.mxu3 %v2379_v13 }
  0x2f   :  { %520 = vmatpush.msra.mxu2 %v2377_v12 }
  0x30   :  { %541 = vmatpush.msra.mxu3 %v2385_v15 }
  0x31   :  { %521 = vmatpush.msra.mxu2 %v2383_v14 }
  0x32   :  { %542 = vmatpush.msra.mxu3 %v2391_v17 }
  0x33   :  { %522 = vmatpush.msra.mxu2 %v2387_v16 }
  0x34   :  { %543 = vmatpush.msra.mxu3 %v2395_v19 }
  0x35   :  { %523 = vmatpush.msra.mxu2 %v2393_v18 }
  0x79   :  { %v39_v28 = vpop.permute.xlu0 %38 }
  0x7a   :  { %vm40_vm3 = vcmp.eq.s32.totalorder %v2445_v29, %v39_v28 }
  0x7b   :  { %vm41_vm5 = vmand %vm36_vm2, %vm40_vm3  ;;  %vm394_vm3 = vcmask 261120  }
  0x82   :  { %v48_v31 = vpop.permute.xlu0 %47 }
  0x83   :  { %vm49_vm6 = vcmp.eq.s32.totalorder %v2445_v29, %v48_v31 }
  0x84   :  { %vm50_vm7 = vmand %vm2457_vm4, %vm49_vm6  ;;  %vm396_vm6 = vcmask 523520  }
  0x85   :  { %vm51_vm9 = vmor %vm41_vm5, %vm50_vm7  ;;  %vm292_vm5 = vcmask 523264  }
  0x86   :  { %v1986_v32 = vsel %vm51_vm9, 1.0, %v2303_v22 }
  0x87   :  { %1994 = vmatmul.msk.f32.vlgmr.msra.gmra.mxu0 %vm151_vm8, %v1986_v32  ;;  %2002 = vmatmul.msk.f32.vlgmr.msra.gmra.mxu1 %vm151_vm8, %v1986_v32 }
  0x88   :  { %936 = vmatpush.msra.mxu0 %v2347_v2  ;;  %956 = vmatpush.msra.mxu1 %v2349_v3 }
  0x8a   :  { %937 = vmatpush.msra.mxu0 %v2353_v4  ;;  %957 = vmatpush.msra.mxu1 %v2355_v5 }
  0x8c   :  { %938 = vmatpush.msra.mxu0 %v2358_v6  ;;  %958 = vmatpush.msra.mxu1 %v2360_v7 }
  0x8e   :  { %939 = vmatpush.msra.mxu0 %v2364_v8  ;;  %959 = vmatpush.msra.mxu1 %v2367_v9 }
  0x90   :  { %940 = vmatpush.msra.mxu0 %v2377_v12  ;;  %960 = vmatpush.msra.mxu1 %v2379_v13 }
  0x92   :  { %941 = vmatpush.msra.mxu0 %v2383_v14  ;;  %961 = vmatpush.msra.mxu1 %v2385_v15 }
  0x94   :  { %942 = vmatpush.msra.mxu0 %v2387_v16  ;;  %962 = vmatpush.msra.mxu1 %v2391_v17 }
  0x96   :  { %943 = vmatpush.msra.mxu0 %v2393_v18  ;;  %963 = vmatpush.msra.mxu1 %v2395_v19 }
  0x98   :  { %v333_v33 = vpop.f32.mrf.mxu3 }
  0x99   :  { %v313_v38 = vpop.f32.mrf.mxu2 }
 0x104   :  { %v234_v34 = vpop.f32.mrf.mxu1  ;;  %v193_v37 = vpop.f32.mrf.mxu0 }
 0x105   :  { %v337_v35 = vadd.f32 %v333_v33, %v234_v34  ;;  %v336_v39 = vadd.f32 %v313_v38, %v193_v37 }
 0x107   :  { %2108 = vtanh.f32 %v337_v35  ;;  %v2010_v40 = vmul.f32 -1.442695, %v336_v39  ;;  %v2011_v61 = vmul.f32 -1.442695, %v337_v35 }
 0x109   :  { %2110 = vpow2.f32 %v2010_v40 }
 0x10d   :  { %v2109_v36 = vpop.eup %2108 }
 0x10e   :  { %379 = vrot.lane.b32.xlu1 %v2109_v36, %s2304_s0 }
 0x10f   :  { %v2111_v41 = vpop.eup %2110 }
 0x110   :  { %v344_v42 = vadd.f32 1.0, %v2111_v41 }
 0x112   :  { %2112 = vrcp.f32 %v344_v42  ;;  %v357_v49 = vand.u32 2147483648, %v344_v42  ;;  %vm351_vm11 = vweird.f32 %v344_v42  ;;  %v355_v50 = vand.u32 2147483647, %v344_v42 }
 0x114   :  { %v358_v52 = vor.u32 1.1754944e-38, %v357_v49  ;;  %vm356_vm13 = vcmp.eq.f32.partialorder %v355_v50, 8.507059e+37 }
 0x118   :  { %v2113_v44 = vpop.eup %2112 }
 0x119   :  { %v347_v45 = vmul.f32 %v2113_v44, %v344_v42  ;;  %vm352_vm10 = vweird.f32 %v2113_v44 }
 0x11a   :  { %vm353_vm12 = vmor %vm351_vm11, %vm352_vm10 }
 0x11b   :  { %v348_v46 = vsub.f32 1.0, %v347_v45 }
 0x11d   :  { %v349_v47 = vmul.f32 %v2113_v44, %v348_v46 }
 0x11f   :  { %v350_v48 = vadd.f32 %v2113_v44, %v349_v47 }
 0x121   :  { %v354_v51 = vsel %vm353_vm12, %v2113_v44, %v350_v48 }
 0x122   :  { %v359_v54 = vsel %vm356_vm13, %v358_v52, %v354_v51 }
 0x123   :  { %v377_v57 = vmul.f32 0.0, %v359_v54 }
 0x180   :  { %v380_v53 = vpop.permute.xlu1 %379 }
 0x181   :  { %v382_v55 = vmul.f32 %v380_v53, %v359_v54 }
 0x183   :  { %384 = vrot.lane.b32.xlu1 %v382_v55, %s2304_s0 }
 0x18b   :  { %60 = vperm.xlu1 %2092, %v2370_v10  }
 0x1f5   :  { %v385_v58 = vpop.permute.xlu1 %384 }
 0x1f6   :  { %v2490_v59 = vadd.f32 %v385_v58, %v377_v57 }
 0x1f8   :  { %2114 = vtanh.f32 %v2490_v59 }
 0x1f9   :  { %2116 = vpow2.f32 %v2011_v61 }
 0x1fd   :  { %v61_v35 = vpop.permute.xlu1 %60 }
 0x1fe   :  { %v2115_v60 = vpop.eup %2114  ;;  %vm62_vm7 = vcmp.eq.s32.totalorder %v2445_v29, %v61_v35 }
 0x1ff   :  { %390 = vrot.lane.b32.xlu2 %v2115_v60, %s2304_s0  ;;  %v2117_v62 = vpop.eup %2116  ;;  %vm63_vm9 = vmand %vm2457_vm4, %vm62_vm7 }
 0x200   :  { %v345_v63 = vadd.f32 1.0, %v2117_v62 }
 0x202   :  { %2118 = vrcp.f32 %v345_v63  ;;  %v372_v26 = vand.u32 2147483648, %v345_v63  ;;  %vm366_vm15 = vweird.f32 %v345_v63  ;;  %v370_v27 = vand.u32 2147483647, %v345_v63 }
 0x204   :  { %v373_v31 = vor.u32 1.1754944e-38, %v372_v26  ;;  %vm371_vm1 = vcmp.eq.f32.partialorder %v370_v27, 8.507059e+37 }
 0x207   :  { %55 = vperm.xlu2 %2091, %v2345_v1  }
 0x208   :  { %v2119_v20 = vpop.eup %2118 }
 0x209   :  { %v362_v21 = vmul.f32 %v2119_v20, %v345_v63  ;;  %vm367_vm14 = vweird.f32 %v2119_v20  ;;  %v2307_v63 = vmov 5  }
 0x20a   :  { %vm368_vm0 = vmor %vm366_vm15, %vm367_vm14  ;;  %2094 = vset.pattern.permute.xlu0 %v2307_v63 }
 0x20b   :  { %v363_v23 = vsub.f32 1.0, %v362_v21 }
 0x20d   :  { %v364_v24 = vmul.f32 %v2119_v20, %v363_v23 }
 0x20f   :  { %v365_v25 = vadd.f32 %v2119_v20, %v364_v24 }
 0x211   :  { %v369_v28 = vsel %vm368_vm0, %v2119_v20, %v365_v25  ;;  %v2308_v20 = vmov 2  }
 0x212   :  { %v374_v32 = vsel %vm371_vm1, %v373_v31, %v369_v28  ;;  %2093 = vset.pattern.permute.xlu2 %v2308_v20 }
 0x259   :  { %v391_v33 = vpop.permute.xlu2 %390 }
 0x25a   :  { %v393_v34 = vmul.f32 %v391_v33, %v374_v32 }
 0x25c   :  { %395 = vst.msk [vmem:[#allocation3] sm:$0xff] %vm394_vm3, %v393_v34  ;;  %2012 = vmatmul.msk.f32.vlgmr.msrb.gmra.mxu2 %vm292_vm5, %v393_v34  ;;  %2013 = vmatmul.msk.f32.vlgmr.msrb.gmra.mxu3 %vm292_vm5, %v393_v34 }
 0x25d   :  { %397 = vst.msk [vmem:[#allocation3 + $0x38] sm:$0xff] %vm396_vm6, %v393_v34  ;;  %621 = vmatpush.msrb.mxu2 %v2347_v2  ;;  %641 = vmatpush.msrb.mxu3 %v2349_v3 }
 0x25f   :  { %622 = vmatpush.msrb.mxu2 %v2353_v4  ;;  %642 = vmatpush.msrb.mxu3 %v2355_v5 }
 0x261   :  { %v56_v36 = vpop.permute.xlu2 %55  ;;  %623 = vmatpush.msrb.mxu2 %v2358_v6  ;;  %643 = vmatpush.msrb.mxu3 %v2360_v7 }
 0x262   :  { %vm57_vm10 = vcmp.eq.s32.totalorder %v2445_v29, %v56_v36 }
 0x263   :  { %vm58_vm11 = vmand %vm36_vm2, %vm57_vm10  ;;  %624 = vmatpush.msrb.mxu2 %v2364_v8  ;;  %644 = vmatpush.msrb.mxu3 %v2367_v9 }
 0x264   :  { %vm64_vm12 = vmor %vm58_vm11, %vm63_vm9 }
 0x265   :  { %v1987_v37 = vsel %vm64_vm12, 1.0, %v2303_v22  ;;  %625 = vmatpush.msrb.mxu2 %v2377_v12  ;;  %645 = vmatpush.msrb.mxu3 %v2379_v13 }
 0x266   :  { %1995 = vmatmul.msk.f32.gmra.mxu0 %vm151_vm8, %v1987_v37  ;;  %2003 = vmatmul.msk.f32.gmra.mxu1 %vm151_vm8, %v1987_v37 }
 0x267   :  { %626 = vmatpush.msrb.mxu2 %v2383_v14  ;;  %646 = vmatpush.msrb.mxu3 %v2385_v15 }
 0x269   :  { %627 = vmatpush.msrb.mxu2 %v2387_v16  ;;  %647 = vmatpush.msrb.mxu3 %v2391_v17 }
 0x26b   :  { %628 = vmatpush.msrb.mxu2 %v2393_v18  ;;  %648 = vmatpush.msrb.mxu3 %v2395_v19 }
 0x2df   :  { %v440_v38 = vpop.f32.mrf.mxu3  ;;  %v420_v44 = vpop.f32.mrf.mxu2 }
 0x2e3   :  { %v237_v39 = vpop.f32.mrf.mxu1  ;;  %v196_v42 = vpop.f32.mrf.mxu0 }
 0x2e4   :  { %v444_v40 = vadd.f32 %v440_v38, %v237_v39  ;;  %v443_v45 = vadd.f32 %v420_v44, %v196_v42 }
 0x2e6   :  { %2120 = vtanh.f32 %v444_v40  ;;  %v2014_v46 = vmul.f32 -1.442695, %v443_v45  ;;  %v2015_v26 = vmul.f32 -1.442695, %v444_v40 }
 0x2e8   :  { %2122 = vpow2.f32 %v2014_v46 }
 0x2ec   :  { %v2121_v41 = vpop.eup %2120 }
 0x2ed   :  { %486 = vrot.lane.b32.xlu2 %v2121_v41, %s2304_s0 }
 0x2ee   :  { %v2123_v47 = vpop.eup %2122 }
 0x2ef   :  { %v451_v48 = vadd.f32 1.0, %v2123_v47 }
 0x2f1   :  { %2124 = vrcp.f32 %v451_v48  ;;  %v464_v54 = vand.u32 2147483648, %v451_v48  ;;  %vm458_vm14 = vweird.f32 %v451_v48  ;;  %v462_v55 = vand.u32 2147483647, %v451_v48 }
 0x2f3   :  { %v465_v58 = vor.u32 1.1754944e-38, %v464_v54  ;;  %vm463_vm0 = vcmp.eq.f32.partialorder %v462_v55, 8.507059e+37 }
 0x2f5   :  { %68 = vperm.xlu2 %2093, %v2345_v1  }
 0x2f7   :  { %v2125_v49 = vpop.eup %2124 }
 0x2f8   :  { %v454_v50 = vmul.f32 %v2125_v49, %v451_v48  ;;  %vm459_vm13 = vweird.f32 %v2125_v49 }
 0x2f9   :  { %vm460_vm15 = vmor %vm458_vm14, %vm459_vm13 }
 0x2fa   :  { %v455_v51 = vsub.f32 1.0, %v454_v50 }
 0x2fc   :  { %v456_v52 = vmul.f32 %v2125_v49, %v455_v51 }
 0x2fe   :  { %v457_v53 = vadd.f32 %v2125_v49, %v456_v52 }
 0x300   :  { %v461_v57 = vsel %vm460_vm15, %v2125_v49, %v457_v53 }
 0x301   :  { %v466_v61 = vsel %vm463_vm0, %v465_v58, %v461_v57 }
 0x302   :  { %v484_v21 = vmul.f32 %v466_v61, %v2490_v59 }
 0x347   :  { %v487_v60 = vpop.permute.xlu2 %486 }
 0x348   :  { %v489_v62 = vmul.f32 %v487_v60, %v466_v61 }
 0x34a   :  { %491 = vrot.lane.b32.xlu0 %v489_v62, %s2304_s0 }
 0x34f   :  { %v69_v31 = vpop.permute.xlu2 %68 }
 0x350   :  { %vm70_vm1 = vcmp.eq.s32.totalorder %v2445_v29, %v69_v31 }
 0x351   :  { %vm71_vm9 = vmand %vm36_vm2, %vm70_vm1 }
 0x352   :  { %73 = vperm.xlu0 %2094, %v2370_v10  }
 0x3bc   :  { %v492_v23 = vpop.permute.xlu0 %491 }
 0x3bd   :  { %v2531_v24 = vadd.f32 %v492_v23, %v484_v21 }
 0x3bf   :  { %2126 = vtanh.f32 %v2531_v24 }
 0x3c0   :  { %2128 = vpow2.f32 %v2015_v26 }
 0x3c4   :  { %v74_v32 = vpop.permute.xlu0 %73 }
 0x3c5   :  { %v2127_v25 = vpop.eup %2126  ;;  %vm75_vm7 = vcmp.eq.s32.totalorder %v2445_v29, %v74_v32  ;;  %v2309_v32 = vmov 4  }
 0x3c6   :  { %497 = vrot.lane.b32.xlu1 %v2127_v25, %s2304_s0  ;;  %v2129_v27 = vpop.eup %2128  ;;  %vm76_vm10 = vmand %vm2457_vm4, %vm75_vm7  ;;  %2096 = vset.pattern.permute.xlu0 %v2309_v32 }
 0x3c7   :  { %v452_v28 = vadd.f32 1.0, %v2129_v27  ;;  %vm77_vm11 = vmor %vm71_vm9, %vm76_vm10  ;;  %86 = vperm.xlu0 %2096, %v2370_v10   ;;  %2097 = vset.pattern.permute.xlu1 %v2309_v32 }
 0x3c8   :  { %v1988_v59 = vsel %vm77_vm11, 1.0, %v2303_v22 }
 0x3c9   :  { %2130 = vrcp.f32 %v452_v28  ;;  %1996 = vmatmul.msk.f32.gmra.mxu0 %vm151_vm8, %v1988_v59  ;;  %2004 = vmatmul.msk.f32.gmra.mxu1 %vm151_vm8, %v1988_v59  ;;  %v479_v38 = vand.u32 2147483648, %v452_v28  ;;  %vm473_vm13 = vweird.f32 %v452_v28  ;;  %v477_v39 = vand.u32 2147483647, %v452_v28 }
 0x3ca   :  { %v2310_v59 = vmov 3  }
 0x3cb   :  { %v480_v41 = vor.u32 1.1754944e-38, %v479_v38  ;;  %vm478_vm15 = vcmp.eq.f32.partialorder %v477_v39, 8.507059e+37  ;;  %2095 = vset.pattern.permute.xlu2 %v2310_v59 }
 0x3cf   :  { %v2131_v33 = vpop.eup %2130  ;;  %2098 = vset.pattern.permute.xlu0 %v2307_v63 }
 0x3d0   :  { %v469_v34 = vmul.f32 %v2131_v33, %v452_v28  ;;  %vm474_vm12 = vweird.f32 %v2131_v33  ;;  %107 = vperm.xlu0 %2098, %v2345_v1  }
 0x3d1   :  { %vm475_vm14 = vmor %vm473_vm13, %vm474_vm12 }
 0x3d2   :  { %v470_v35 = vsub.f32 1.0, %v469_v34 }
 0x3d4   :  { %v471_v36 = vmul.f32 %v2131_v33, %v470_v35 }
 0x3d6   :  { %v472_v37 = vadd.f32 %v2131_v33, %v471_v36 }
 0x3d8   :  { %v476_v40 = vsel %vm475_vm14, %v2131_v33, %v472_v37  ;;  %2103 = vset.pattern.permute.xlu0 %v2301_v0 }
 0x3d9   :  { %v481_v42 = vsel %vm478_vm15, %v480_v41, %v476_v40  ;;  %138 = vperm.xlu0 %2103, %v2370_v10  }
 0x438   :  { %v498_v44 = vpop.permute.xlu1 %497 }
 0x439   :  { %v500_v45 = vmul.f32 %v498_v44, %v481_v42  ;;  %v87_v39 = vpop.permute.xlu0 %86 }
 0x43a   :  { %vm88_vm10 = vcmp.eq.s32.totalorder %v2445_v29, %v87_v39 }
 0x43b   :  { %501 = vst.msk [vmem:[#allocation3 + $0x8] sm:$0xff] %vm394_vm3, %v500_v45  ;;  %2016 = vmatmul.msk.f32.vlgmr.msra.gmra.mxu2 %vm292_vm5, %v500_v45  ;;  %2017 = vmatmul.msk.f32.vlgmr.msra.gmra.mxu3 %vm292_vm5, %v500_v45  ;;  %vm89_vm12 = vmand %vm2457_vm4, %vm88_vm10 }
 0x43c   :  { %502 = vst.msk [vmem:[#allocation3 + $0x30] sm:$0xff] %vm396_vm6, %v500_v45  ;;  %831 = vmatpush.msra.mxu2 %v2347_v2  ;;  %851 = vmatpush.msra.mxu3 %v2349_v3 }
 0x43e   :  { %832 = vmatpush.msra.mxu2 %v2353_v4  ;;  %852 = vmatpush.msra.mxu3 %v2355_v5 }
 0x440   :  { %833 = vmatpush.msra.mxu2 %v2358_v6  ;;  %853 = vmatpush.msra.mxu3 %v2360_v7 }
 0x442   :  { %834 = vmatpush.msra.mxu2 %v2364_v8  ;;  %854 = vmatpush.msra.mxu3 %v2367_v9 }
 0x444   :  { %835 = vmatpush.msra.mxu2 %v2377_v12  ;;  %855 = vmatpush.msra.mxu3 %v2379_v13 }
 0x446   :  { %836 = vmatpush.msra.mxu2 %v2383_v14  ;;  %856 = vmatpush.msra.mxu3 %v2385_v15  ;;  %v240_v46 = vpop.f32.mrf.mxu1  ;;  %v199_v50 = vpop.f32.mrf.mxu0 }
 0x448   :  { %837 = vmatpush.msra.mxu2 %v2387_v16  ;;  %857 = vmatpush.msra.mxu3 %v2391_v17 }
 0x44a   :  { %838 = vmatpush.msra.mxu2 %v2393_v18  ;;  %858 = vmatpush.msra.mxu3 %v2395_v19 }
 0x4be   :  { %v545_v47 = vpop.f32.mrf.mxu3  ;;  %v525_v51 = vpop.f32.mrf.mxu2 }
 0x4bf   :  { %v549_v48 = vadd.f32 %v545_v47, %v240_v46  ;;  %v548_v52 = vadd.f32 %v525_v51, %v199_v50 }
 0x4c1   :  { %2132 = vtanh.f32 %v549_v48  ;;  %v2018_v53 = vmul.f32 -1.442695, %v548_v52  ;;  %v2019_v37 = vmul.f32 -1.442695, %v549_v48 }
 0x4c3   :  { %2134 = vpow2.f32 %v2018_v53 }
 0x4c7   :  { %v2133_v49 = vpop.eup %2132 }
 0x4c8   :  { %591 = vrot.lane.b32.xlu1 %v2133_v49, %s2304_s0 }
 0x4c9   :  { %v2135_v54 = vpop.eup %2134 }
 0x4ca   :  { %v556_v55 = vadd.f32 1.0, %v2135_v54 }
 0x4cc   :  { %2136 = vrcp.f32 %v556_v55  ;;  %v569_v21 = vand.u32 2147483648, %v556_v55  ;;  %vm563_vm1 = vweird.f32 %v556_v55  ;;  %v567_v23 = vand.u32 2147483647, %v556_v55 }
 0x4ce   :  { %v570_v26 = vor.u32 1.1754944e-38, %v569_v21  ;;  %vm568_vm9 = vcmp.eq.f32.partialorder %v567_v23, 8.507059e+37  ;;  %v108_v21 = vpop.permute.xlu0 %107 }
 0x4d2   :  { %v2137_v57 = vpop.eup %2136 }
 0x4d3   :  { %v559_v58 = vmul.f32 %v2137_v57, %v556_v55  ;;  %vm564_vm0 = vweird.f32 %v2137_v57 }
 0x4d4   :  { %vm565_vm7 = vmor %vm563_vm1, %vm564_vm0 }
 0x4d5   :  { %v560_v60 = vsub.f32 1.0, %v559_v58 }
 0x4d7   :  { %v561_v61 = vmul.f32 %v2137_v57, %v560_v60 }
 0x4d9   :  { %v562_v62 = vadd.f32 %v2137_v57, %v561_v61 }
 0x4db   :  { %v566_v25 = vsel %vm565_vm7, %v2137_v57, %v562_v62 }
 0x4dc   :  { %v571_v28 = vsel %vm568_vm9, %v570_v26, %v566_v25 }
 0x4dd   :  { %v589_v33 = vmul.f32 %v571_v28, %v2531_v24 }
 0x53a   :  { %v592_v27 = vpop.permute.xlu1 %591 }
 0x53b   :  { %v594_v31 = vmul.f32 %v592_v27, %v571_v28  ;;  %v139_v27 = vpop.permute.xlu0 %138 }
 0x53d   :  { %596 = vrot.lane.b32.xlu2 %v594_v31, %s2304_s0 }
 0x545   :  { %81 = vperm.xlu2 %2095, %v2345_v1  }
 0x597   :  { %v597_v34 = vpop.permute.xlu2 %596 }
 0x598   :  { %v2573_v35 = vadd.f32 %v597_v34, %v589_v33 }
 0x59a   :  { %2138 = vtanh.f32 %v2573_v35 }
 0x59b   :  { %2140 = vpow2.f32 %v2019_v37 }
 0x59f   :  { %v82_v40 = vpop.permute.xlu2 %81 }
 0x5a0   :  { %v2139_v36 = vpop.eup %2138  ;;  %vm83_vm11 = vcmp.eq.s32.totalorder %v2445_v29, %v82_v40 }
 0x5a1   :  { %602 = vrot.lane.b32.xlu1 %v2139_v36, %s2304_s0  ;;  %v2141_v38 = vpop.eup %2140  ;;  %vm84_vm13 = vmand %vm36_vm2, %vm83_vm11 }
 0x5a2   :  { %v557_v63 = vadd.f32 1.0, %v2141_v38  ;;  %vm90_vm14 = vmor %vm84_vm13, %vm89_vm12 }
 0x5a3   :  { %v1989_v0 = vsel %vm90_vm14, 1.0, %v2303_v22  ;;  %vm109_vm14 = vcmp.eq.s32.totalorder %v2445_v29, %v108_v21 }
 0x5a4   :  { %2142 = vrcp.f32 %v557_v63  ;;  %1997 = vmatmul.msk.f32.gmra.mxu0 %vm151_vm8, %v1989_v0  ;;  %2005 = vmatmul.msk.f32.gmra.mxu1 %vm151_vm8, %v1989_v0  ;;  %v584_v46 = vand.u32 2147483648, %v557_v63  ;;  %vm578_vm0 = vweird.f32 %v557_v63  ;;  %v582_v47 = vand.u32 2147483647, %v557_v63 }
 0x5a6   :  { %v585_v49 = vor.u32 1.1754944e-38, %v584_v46  ;;  %vm583_vm7 = vcmp.eq.f32.partialorder %v582_v47, 8.507059e+37 }
 0x5aa   :  { %v2143_v24 = vpop.eup %2142 }
 0x5ab   :  { %v574_v41 = vmul.f32 %v2143_v24, %v557_v63  ;;  %vm579_vm15 = vweird.f32 %v2143_v24 }
 0x5ac   :  { %vm580_vm1 = vmor %vm578_vm0, %vm579_vm15 }
 0x5ad   :  { %v575_v42 = vsub.f32 1.0, %v574_v41 }
 0x5af   :  { %v576_v44 = vmul.f32 %v2143_v24, %v575_v42 }
 0x5b1   :  { %v577_v45 = vadd.f32 %v2143_v24, %v576_v44 }
 0x5b3   :  { %v581_v48 = vsel %vm580_vm1, %v2143_v24, %v577_v45  ;;  %vm110_vm1 = vmand %vm36_vm2, %vm109_vm14 }
 0x5b4   :  { %v586_v50 = vsel %vm583_vm7, %v585_v49, %v581_v48 }
 0x613   :  { %v603_v51 = vpop.permute.xlu1 %602 }
 0x614   :  { %v605_v52 = vmul.f32 %v603_v51, %v586_v50 }
 0x616   :  { %606 = vst.msk [vmem:[#allocation3 + $0x10] sm:$0xff] %vm394_vm3, %v605_v52  ;;  %2020 = vmatmul.msk.f32.vlgmr.msrb.gmra.mxu2 %vm292_vm5, %v605_v52  ;;  %2021 = vmatmul.msk.f32.vlgmr.msrb.gmra.mxu3 %vm292_vm5, %v605_v52 }
 0x617   :  { %607 = vst.msk [vmem:[#allocation3 + $0x28] sm:$0xff] %vm396_vm6, %v605_v52  ;;  %1041 = vmatpush.msrb.mxu2 %v2347_v2  ;;  %1061 = vmatpush.msrb.mxu3 %v2349_v3 }
 0x619   :  { %1042 = vmatpush.msrb.mxu2 %v2353_v4  ;;  %1062 = vmatpush.msrb.mxu3 %v2355_v5 }
 0x61b   :  { %1043 = vmatpush.msrb.mxu2 %v2358_v6  ;;  %1063 = vmatpush.msrb.mxu3 %v2360_v7 }
 0x61d   :  { %1044 = vmatpush.msrb.mxu2 %v2364_v8  ;;  %1064 = vmatpush.msrb.mxu3 %v2367_v9 }
 0x61f   :  { %1045 = vmatpush.msrb.mxu2 %v2377_v12  ;;  %1065 = vmatpush.msrb.mxu3 %v2379_v13 }
 0x621   :  { %1046 = vmatpush.msrb.mxu2 %v2383_v14  ;;  %1066 = vmatpush.msrb.mxu3 %v2385_v15  ;;  %v243_v2 = vpop.f32.mrf.mxu1  ;;  %v202_v6 = vpop.f32.mrf.mxu0 }
 0x623   :  { %1047 = vmatpush.msrb.mxu2 %v2387_v16  ;;  %1067 = vmatpush.msrb.mxu3 %v2391_v17 }
 0x625   :  { %1048 = vmatpush.msrb.mxu2 %v2393_v18  ;;  %1068 = vmatpush.msrb.mxu3 %v2395_v19 }
 0x699   :  { %v650_v3 = vpop.f32.mrf.mxu3  ;;  %v630_v7 = vpop.f32.mrf.mxu2 }
 0x69a   :  { %v2606_v4 = vadd.f32 %v650_v3, %v243_v2  ;;  %v653_v8 = vadd.f32 %v630_v7, %v202_v6 }
 0x69c   :  { %2144 = vtanh.f32 %v2606_v4  ;;  %v2022_v9 = vmul.f32 -1.442695, %v653_v8  ;;  %v2023_v59 = vmul.f32 -1.442695, %v2606_v4 }
 0x69e   :  { %2146 = vpow2.f32 %v2022_v9 }
 0x6a2   :  { %v2145_v5 = vpop.eup %2144 }
 0x6a3   :  { %696 = vrot.lane.b32.xlu1 %v2145_v5, %s2304_s0 }
 0x6a4   :  { %v2147_v12 = vpop.eup %2146 }
 0x6a5   :  { %v661_v13 = vadd.f32 1.0, %v2147_v12 }
 0x6a7   :  { %2148 = vrcp.f32 %v661_v13  ;;  %v674_v19 = vand.u32 2147483648, %v661_v13  ;;  %vm668_vm10 = vweird.f32 %v661_v13 }
 0x6a9   :  { %v675_v53 = vor.u32 1.1754944e-38, %v674_v19 }
 0x6ab   :  { %94 = vperm.xlu1 %2097, %v2345_v1  }
 0x6ad   :  { %v2149_v14 = vpop.eup %2148 }
 0x6ae   :  { %v664_v15 = vmul.f32 %v2149_v14, %v661_v13  ;;  %vm669_vm9 = vweird.f32 %v2149_v14 }
 0x6af   :  { %vm670_vm11 = vmor %vm668_vm10, %vm669_vm9 }
 0x6b0   :  { %v665_v16 = vsub.f32 1.0, %v664_v15 }
 0x6b2   :  { %v666_v17 = vmul.f32 %v2149_v14, %v665_v16 }
 0x6b3   :  { %2099 = vset.pattern.permute.xlu1 %v2308_v20  ;;  %v672_v20 = vand.u32 2147483647, %v661_v13 }
 0x6b4   :  { %112 = vperm.xlu1 %2099, %v2370_v10   ;;  %v667_v18 = vadd.f32 %v2149_v14, %v666_v17 }
 0x6b5   :  { %vm673_vm12 = vcmp.eq.f32.partialorder %v672_v20, 8.507059e+37 }
 0x6bc   :  { %2101 = vset.pattern.permute.xlu1 %v2306_v56  ;;  %v671_v56 = vsel %vm670_vm11, %v2149_v14, %v667_v18 }
 0x6bd   :  { %125 = vperm.xlu1 %2101, %v2370_v10   ;;  %v676_v55 = vsel %vm673_vm12, %v675_v53, %v671_v56 }
 0x6be   :  { %v694_v60 = vmul.f32 %v676_v55, %v2573_v35 }
 0x715   :  { %v697_v54 = vpop.permute.xlu1 %696 }
 0x716   :  { %v699_v57 = vmul.f32 %v697_v54, %v676_v55 }
 0x718   :  { %701 = vrot.lane.b32.xlu2 %v699_v57, %s2304_s0 }
 0x71d   :  { %v95_v58 = vpop.permute.xlu1 %94 }
 0x71e   :  { %vm96_vm13 = vcmp.eq.s32.totalorder %v2445_v29, %v95_v58 }
 0x71f   :  { %vm97_vm15 = vmand %vm36_vm2, %vm96_vm13 }
 0x720   :  { %99 = vperm.xlu2 %2095, %v2370_v10  }
 0x726   :  { %v113_v23 = vpop.permute.xlu1 %112 }
 0x727   :  { %vm114_vm7 = vcmp.eq.s32.totalorder %v2445_v29, %v113_v23 }
 0x728   :  { %2100 = vset.pattern.permute.xlu2 %v2305_v43  ;;  %vm115_vm11 = vmand %vm2457_vm4, %vm114_vm7 }
 0x729   :  { %120 = vperm.xlu2 %2100, %v2345_v1   ;;  %vm116_vm12 = vmor %vm110_vm1, %vm115_vm11  ;;  %vm140_vm1 = vcmp.eq.s32.totalorder %v2445_v29, %v139_v27 }
 0x72a   :  { %v1991_v26 = vsel %vm116_vm12, 1.0, %v2303_v22 }
 0x72f   :  { %v126_v43 = vpop.permute.xlu1 %125 }
 0x730   :  { %vm127_vm13 = vcmp.eq.s32.totalorder %v2445_v29, %v126_v43 }
 0x731   :  { %2102 = vset.pattern.permute.xlu2 %v2302_v11 }
 0x732   :  { %133 = vperm.xlu2 %2102, %v2345_v1  }
 0x772   :  { %v702_v61 = vpop.permute.xlu2 %701 }
 0x773   :  { %v2622_v62 = vadd.f32 %v702_v61, %v694_v60 }
 0x775   :  { %2150 = vtanh.f32 %v2622_v62 }
 0x776   :  { %2152 = vpow2.f32 %v2023_v59 }
 0x77a   :  { %v100_v10 = vpop.permute.xlu2 %99 }
 0x77b   :  { %v2151_v11 = vpop.eup %2150  ;;  %vm101_vm0 = vcmp.eq.s32.totalorder %v2445_v29, %v100_v10 }
 0x77c   :  { %vm102_vm9 = vmand %vm2457_vm4, %vm101_vm0  ;;  %707 = vrot.lane.b32.xlu1 %v2151_v11, %s2304_s0  ;;  %v2153_v30 = vpop.eup %2152 }
 0x77d   :  { %vm103_vm10 = vmor %vm97_vm15, %vm102_vm9  ;;  %v662_v33 = vadd.f32 1.0, %v2153_v30 }
 0x77e   :  { %v1990_v1 = vsel %vm103_vm10, 1.0, %v2303_v22  ;;  %vm128_vm15 = vmand %vm2457_vm4, %vm127_vm13 }
 0x77f   :  { %1998 = vmatmul.msk.f32.gmra.mxu0 %vm151_vm8, %v1990_v1  ;;  %2006 = vmatmul.msk.f32.gmra.mxu1 %vm151_vm8, %v1990_v1  ;;  %vm141_vm9 = vmand %vm2457_vm4, %vm140_vm1  ;;  %2154 = vrcp.f32 %v662_v33  ;;  %v689_v38 = vand.u32 2147483648, %v662_v33  ;;  %vm683_vm4 = vweird.f32 %v662_v33  ;;  %v687_v63 = vand.u32 2147483647, %v662_v33 }
 0x781   :  { %v690_v40 = vor.u32 1.1754944e-38, %v689_v38 }
 0x783   :  { %v121_v25 = vpop.permute.xlu2 %120 }
 0x784   :  { %vm122_vm14 = vcmp.eq.s32.totalorder %v2445_v29, %v121_v25 }
 0x785   :  { %vm123_vm0 = vmand %vm36_vm2, %vm122_vm14  ;;  %v2155_v34 = vpop.eup %2154  ;;  %vm688_vm14 = vcmp.eq.f32.partialorder %v687_v63, 8.507059e+37 }
 0x786   :  { %vm129_vm7 = vmor %vm123_vm0, %vm128_vm15 }
 0x787   :  { %1999 = vmatmul.msk.f32.gmra.mxu0 %vm151_vm8, %v1991_v26  ;;  %2007 = vmatmul.msk.f32.gmra.mxu1 %vm151_vm8, %v1991_v26  ;;  %v1992_v28 = vsel %vm129_vm7, 1.0, %v2303_v22 }
 0x78c   :  { %v134_v31 = vpop.permute.xlu2 %133 }
 0x78d   :  { %vm135_vm10 = vcmp.eq.s32.totalorder %v2445_v29, %v134_v31  ;;  %v679_v29 = vmul.f32 %v2155_v34, %v662_v33 }
 0x78e   :  { %vm136_vm11 = vmand %vm36_vm2, %vm135_vm10  ;;  %vm684_vm2 = vweird.f32 %v2155_v34 }
 0x78f   :  { %2000 = vmatmul.msk.f32.gmra.mxu0 %vm151_vm8, %v1992_v28  ;;  %2008 = vmatmul.msk.f32.gmra.mxu1 %vm151_vm8, %v1992_v28  ;;  %vm142_vm12 = vmor %vm136_vm11, %vm141_vm9  ;;  %v680_v35 = vsub.f32 1.0, %v679_v29 }
 0x790   :  { %v1993_v32 = vsel %vm142_vm12, 1.0, %v2303_v22  ;;  %vm685_vm13 = vmor %vm683_vm4, %vm684_vm2 }
 0x791   :  { %v681_v36 = vmul.f32 %v2155_v34, %v680_v35 }
 0x793   :  { %v682_v37 = vadd.f32 %v2155_v34, %v681_v36 }
 0x795   :  { %v686_v39 = vsel %vm685_vm13, %v2155_v34, %v682_v37 }
 0x796   :  { %v691_v0 = vsel %vm688_vm14, %v690_v40, %v686_v39 }
 0x797   :  { %2001 = vmatmul.msk.f32.gmra.mxu0 %vm151_vm8, %v1993_v32  ;;  %2009 = vmatmul.msk.f32.gmra.mxu1 %vm151_vm8, %v1993_v32 }
 0x7ee   :  { %v708_v24 = vpop.permute.xlu1 %707 }
 0x7ef   :  { %v710_v41 = vmul.f32 %v708_v24, %v691_v0 }
 0x7f1   :  { %711 = vst.msk [vmem:[#allocation3 + $0x18] sm:$0xff] %vm394_vm3, %v710_v41  ;;  %2024 = vmatmul.msk.f32.vlgmr.msrb.gmra.mxu0 %vm292_vm5, %v710_v41  ;;  %2025 = vmatmul.msk.f32.vlgmr.msrb.gmra.mxu1 %vm292_vm5, %v710_v41 }
 0x7f2   :  { %712 = vst.msk [vmem:[#allocation3 + $0x20] sm:$0xff] %vm396_vm6, %v710_v41 }
 0x7fc   :  { %v246_v42 = vpop.f32.mrf.mxu1  ;;  %v205_v50 = vpop.f32.mrf.mxu0 }
 0x804   :  { %v2667_v44 = vpop.f32.mrf.mxu1  ;;  %v2674_v51 = vpop.f32.mrf.mxu0 }
 0x80c   :  { %v2669_v45 = vpop.f32.mrf.mxu1  ;;  %v2676_v52 = vpop.f32.mrf.mxu0 }
 0x814   :  { %v2671_v46 = vpop.f32.mrf.mxu1  ;;  %v2678_v2 = vpop.f32.mrf.mxu0 }
 0x86e   :  { %v755_v47 = vpop.f32.mrf.mxu1  ;;  %v735_v3 = vpop.f32.mrf.mxu0 }
 0x86f   :  { %v759_v48 = vadd.f32 %v755_v47, %v246_v42  ;;  %v758_v4 = vadd.f32 %v735_v3, %v205_v50 }
 0x871   :  { %2156 = vtanh.f32 %v759_v48  ;;  %v2026_v5 = vmul.f32 -1.442695, %v758_v4  ;;  %v2027_v58 = vmul.f32 -1.442695, %v759_v48 }
 0x873   :  { %2158 = vpow2.f32 %v2026_v5 }
 0x877   :  { %v2157_v49 = vpop.eup %2156 }
 0x878   :  { %801 = vrot.lane.b32.xlu2 %v2157_v49, %s2304_s0 }
 0x879   :  { %v2159_v6 = vpop.eup %2158 }
 0x87a   :  { %v766_v7 = vadd.f32 1.0, %v2159_v6 }
 0x87c   :  { %2160 = vrcp.f32 %v766_v7  ;;  %v779_v15 = vand.u32 2147483648, %v766_v7  ;;  %vm773_vm15 = vweird.f32 %v766_v7  ;;  %v777_v16 = vand.u32 2147483647, %v766_v7 }
 0x87e   :  { %v780_v18 = vor.u32 1.1754944e-38, %v779_v15  ;;  %vm778_vm7 = vcmp.eq.f32.partialorder %v777_v16, 8.507059e+37 }
 0x882   :  { %v2161_v8 = vpop.eup %2160 }
 0x883   :  { %v769_v9 = vmul.f32 %v2161_v8, %v766_v7  ;;  %vm774_vm8 = vweird.f32 %v2161_v8 }
 0x884   :  { %vm775_vm0 = vmor %vm773_vm15, %vm774_vm8 }
 0x885   :  { %v770_v12 = vsub.f32 1.0, %v769_v9 }
 0x887   :  { %v771_v13 = vmul.f32 %v2161_v8, %v770_v12 }
 0x889   :  { %v772_v14 = vadd.f32 %v2161_v8, %v771_v13 }
 0x88b   :  { %v776_v17 = vsel %vm775_vm0, %v2161_v8, %v772_v14 }
 0x88c   :  { %v781_v20 = vsel %vm778_vm7, %v780_v18, %v776_v17 }
 0x88d   :  { %v799_v53 = vmul.f32 %v781_v20, %v2622_v62 }
 0x8d2   :  { %v802_v19 = vpop.permute.xlu2 %801 }
 0x8d3   :  { %v804_v56 = vmul.f32 %v802_v19, %v781_v20 }
 0x8d5   :  { %806 = vrot.lane.b32.xlu1 %v804_v56, %s2304_s0 }
 0x947   :  { %v807_v54 = vpop.permute.xlu1 %806 }
 0x948   :  { %v809_v55 = vadd.f32 %v807_v54, %v799_v53 }
 0x94a   :  { %2162 = vtanh.f32 %v809_v55 }
 0x94b   :  { %2164 = vpow2.f32 %v2027_v58 }
 0x950   :  { %v2163_v57 = vpop.eup %2162 }
 0x951   :  { %812 = vrot.lane.b32.xlu2 %v2163_v57, %s2304_s0  ;;  %v2165_v60 = vpop.eup %2164 }
 0x952   :  { %v767_v61 = vadd.f32 1.0, %v2165_v60 }
 0x954   :  { %2166 = vrcp.f32 %v767_v61  ;;  %v794_v43 = vand.u32 2147483648, %v767_v61  ;;  %vm788_vm9 = vweird.f32 %v767_v61  ;;  %v792_v62 = vand.u32 2147483647, %v767_v61 }
 0x956   :  { %v795_v26 = vor.u32 1.1754944e-38, %v794_v43  ;;  %vm793_vm11 = vcmp.eq.f32.partialorder %v792_v62, 8.507059e+37 }
 0x95a   :  { %v2167_v21 = vpop.eup %2166 }
 0x95b   :  { %v784_v23 = vmul.f32 %v2167_v21, %v767_v61  ;;  %vm789_vm1 = vweird.f32 %v2167_v21 }
 0x95c   :  { %vm790_vm10 = vmor %vm788_vm9, %vm789_vm1 }
 0x95d   :  { %v785_v10 = vsub.f32 1.0, %v784_v23 }
 0x95f   :  { %v786_v11 = vmul.f32 %v2167_v21, %v785_v10 }
 0x961   :  { %v787_v1 = vadd.f32 %v2167_v21, %v786_v11 }
 0x963   :  { %v791_v25 = vsel %vm790_vm10, %v2167_v21, %v787_v1 }
 0x964   :  { %v796_v27 = vsel %vm793_vm11, %v795_v26, %v791_v25 }
 0x9ab   :  { %v813_v28 = vpop.permute.xlu2 %812 }
 0x9ac   :  { %v815_v31 = vmul.f32 %v813_v28, %v796_v27 }
 0x9ae   :  { %816 = vst.msk [vmem:[#allocation3 + $0x20] sm:$0xff] %vm394_vm3, %v815_v31  ;;  %2028 = vmatmul.msk.f32.vlgmr.msra.gmra.mxu2 %vm292_vm5, %v815_v31  ;;  %2029 = vmatmul.msk.f32.vlgmr.msra.gmra.mxu3 %vm292_vm5, %v815_v31 }
 0x9af   :  { %817 = vst.msk [vmem:[#allocation3 + $0x18] sm:$0xff] %vm396_vm6, %v815_v31 }
 0xa31   :  { %v860_v32 = vpop.f32.mrf.mxu3  ;;  %v840_v33 = vpop.f32.mrf.mxu2 }
 0xa32   :  { %v864_v59 = vadd.f32 %v860_v32, %v2667_v44  ;;  %v863_v34 = vadd.f32 %v840_v33, %v2674_v51 }
 0xa34   :  { %2168 = vtanh.f32 %v864_v59  ;;  %v2030_v29 = vmul.f32 -1.442695, %v863_v34  ;;  %v2031_v4 = vmul.f32 -1.442695, %v864_v59 }
 0xa36   :  { %2170 = vpow2.f32 %v2030_v29 }
 0xa3a   :  { %v2169_v30 = vpop.eup %2168 }
 0xa3b   :  { %906 = vrot.lane.b32.xlu0 %v2169_v30, %s2304_s0 }
 0xa3c   :  { %v2171_v35 = vpop.eup %2170 }
 0xa3d   :  { %v871_v36 = vadd.f32 1.0, %v2171_v35 }
 0xa3f   :  { %2172 = vrcp.f32 %v871_v36  ;;  %v884_v0 = vand.u32 2147483648, %v871_v36  ;;  %vm878_vm2 = vweird.f32 %v871_v36  ;;  %v882_v24 = vand.u32 2147483647, %v871_v36 }
 0xa41   :  { %v885_v42 = vor.u32 1.1754944e-38, %v884_v0  ;;  %vm883_vm13 = vcmp.eq.f32.partialorder %v882_v24, 8.507059e+37 }
 0xa45   :  { %v2173_v37 = vpop.eup %2172 }
 0xa46   :  { %v874_v38 = vmul.f32 %v2173_v37, %v871_v36  ;;  %vm879_vm12 = vweird.f32 %v2173_v37 }
 0xa47   :  { %vm880_vm4 = vmor %vm878_vm2, %vm879_vm12 }
 0xa48   :  { %v875_v63 = vsub.f32 1.0, %v874_v38 }
 0xa4a   :  { %v876_v39 = vmul.f32 %v2173_v37, %v875_v63 }
 0xa4c   :  { %v877_v40 = vadd.f32 %v2173_v37, %v876_v39 }
 0xa4e   :  { %v881_v41 = vsel %vm880_vm4, %v2173_v37, %v877_v40 }
 0xa4f   :  { %v886_v47 = vsel %vm883_vm13, %v885_v42, %v881_v41 }
 0xa50   :  { %v904_v49 = vmul.f32 %v886_v47, %v809_v55 }
 0xaad   :  { %v907_v44 = vpop.permute.xlu0 %906 }
 0xaae   :  { %v909_v48 = vmul.f32 %v907_v44, %v886_v47 }
 0xab0   :  { %911 = vrot.lane.b32.xlu1 %v909_v48, %s2304_s0 }
 0xb22   :  { %v912_v50 = vpop.permute.xlu1 %911 }
 0xb23   :  { %v914_v51 = vadd.f32 %v912_v50, %v904_v49 }
 0xb25   :  { %2174 = vtanh.f32 %v914_v51 }
 0xb26   :  { %2176 = vpow2.f32 %v2031_v4 }
 0xb2b   :  { %v2175_v3 = vpop.eup %2174 }
 0xb2c   :  { %917 = vrot.lane.b32.xlu2 %v2175_v3, %s2304_s0  ;;  %v2177_v5 = vpop.eup %2176 }
 0xb2d   :  { %v872_v6 = vadd.f32 1.0, %v2177_v5 }
 0xb2f   :  { %2178 = vrcp.f32 %v872_v6  ;;  %v899_v14 = vand.u32 2147483648, %v872_v6  ;;  %vm893_vm8 = vweird.f32 %v872_v6  ;;  %v897_v15 = vand.u32 2147483647, %v872_v6 }
 0xb31   :  { %v900_v17 = vor.u32 1.1754944e-38, %v899_v14  ;;  %vm898_vm0 = vcmp.eq.f32.partialorder %v897_v15, 8.507059e+37 }
 0xb35   :  { %v2179_v7 = vpop.eup %2178 }
 0xb36   :  { %v889_v8 = vmul.f32 %v2179_v7, %v872_v6  ;;  %vm894_vm14 = vweird.f32 %v2179_v7 }
 0xb37   :  { %vm895_vm15 = vmor %vm893_vm8, %vm894_vm14 }
 0xb38   :  { %v890_v9 = vsub.f32 1.0, %v889_v8 }
 0xb3a   :  { %v891_v12 = vmul.f32 %v2179_v7, %v890_v9 }
 0xb3c   :  { %v892_v13 = vadd.f32 %v2179_v7, %v891_v12 }
 0xb3e   :  { %v896_v16 = vsel %vm895_vm15, %v2179_v7, %v892_v13 }
 0xb3f   :  { %v901_v18 = vsel %vm898_vm0, %v900_v17, %v896_v16 }
 0xb86   :  { %v918_v19 = vpop.permute.xlu2 %917 }
 0xb87   :  { %v920_v20 = vmul.f32 %v918_v19, %v901_v18  ;;  %v2713_v18 = vld [vmem:[#allocation3 + $0x20] sm:$0xff] }
 0xb89   :  { %921 = vst.msk [vmem:[#allocation3 + $0x28] sm:$0xff] %vm394_vm3, %v920_v20  ;;  %2032 = vmatmul.msk.f32.vlgmr.msra.gmra.mxu0 %vm292_vm5, %v920_v20  ;;  %2033 = vmatmul.msk.f32.vlgmr.msra.gmra.mxu1 %vm292_vm5, %v920_v20 }
 0xb8a   :  { %922 = vst.msk [vmem:[#allocation3 + $0x10] sm:$0xff] %vm396_vm6, %v920_v20 }
 0xc06   :  { %v965_v56 = vpop.f32.mrf.mxu1  ;;  %v945_v55 = vpop.f32.mrf.mxu0 }
 0xc07   :  { %v969_v53 = vadd.f32 %v965_v56, %v2669_v45  ;;  %v968_v57 = vadd.f32 %v945_v55, %v2676_v52  ;;  %v1138_v55 = vld [vmem:[#allocation3 + $0x28] sm:$0xff] }
 0xc09   :  { %2180 = vtanh.f32 %v969_v53  ;;  %v2034_v58 = vmul.f32 -1.442695, %v968_v57  ;;  %v2035_v30 = vmul.f32 -1.442695, %v969_v53 }
 0xc0b   :  { %2182 = vpow2.f32 %v2034_v58 }
 0xc0f   :  { %v2181_v54 = vpop.eup %2180 }
 0xc10   :  { %1011 = vrot.lane.b32.xlu0 %v2181_v54, %s2304_s0  ;;  %v1135_v54 = vld [vmem:[#allocation3 + $0x10] sm:$0xff] }
 0xc11   :  { %v2183_v60 = vpop.eup %2182 }
 0xc12   :  { %v976_v61 = vadd.f32 1.0, %v2183_v60 }
 0xc14   :  { %2184 = vrcp.f32 %v976_v61  ;;  %v989_v43 = vand.u32 2147483648, %v976_v61  ;;  %vm983_vm1 = vweird.f32 %v976_v61  ;;  %v987_v45 = vand.u32 2147483647, %v976_v61 }
 0xc16   :  { %v990_v25 = vor.u32 1.1754944e-38, %v989_v43  ;;  %vm988_vm10 = vcmp.eq.f32.partialorder %v987_v45, 8.507059e+37  ;;  %v1192_v45 = vld [vmem:[%s2914_s3 + $0x18] sm:$0xff] }
 0xc17   :  { %1231 = vmatpush.msrb.mxu0 %v1192_v45 }
 0xc1a   :  { %v2185_v21 = vpop.eup %2184 }
 0xc1b   :  { %v979_v23 = vmul.f32 %v2185_v21, %v976_v61  ;;  %vm984_vm7 = vweird.f32 %v2185_v21 }
 0xc1c   :  { %vm985_vm9 = vmor %vm983_vm1, %vm984_vm7 }
 0xc1d   :  { %v980_v10 = vsub.f32 1.0, %v979_v23 }
 0xc1f   :  { %v981_v11 = vmul.f32 %v2185_v21, %v980_v10 }
 0xc21   :  { %v982_v1 = vadd.f32 %v2185_v21, %v981_v11 }
 0xc23   :  { %v986_v62 = vsel %vm985_vm9, %v2185_v21, %v982_v1 }
 0xc24   :  { %v991_v52 = vsel %vm988_vm10, %v990_v25, %v986_v62  ;;  %v1191_v62 = vld [vmem:[%s2914_s3 + $0x10] sm:$0xff] }
 0xc25   :  { %v1009_v28 = vmul.f32 %v991_v52, %v914_v51  ;;  %1232 = vmatpush.msrb.mxu0 %v1191_v62 }
 0xc82   :  { %v1012_v26 = vpop.permute.xlu0 %1011 }
 0xc83   :  { %v1014_v27 = vmul.f32 %v1012_v26, %v991_v52 }
 0xc85   :  { %1016 = vrot.lane.b32.xlu1 %v1014_v27, %s2304_s0 }
 0xcf7   :  { %v1017_v31 = vpop.permute.xlu1 %1016 }
 0xcf8   :  { %v2700_v32 = vadd.f32 %v1017_v31, %v1009_v28 }
 0xcfa   :  { %2186 = vtanh.f32 %v2700_v32 }
 0xcfb   :  { %2188 = vpow2.f32 %v2035_v30 }
 0xd00   :  { %v2187_v59 = vpop.eup %2186 }
 0xd01   :  { %1022 = vrot.lane.b32.xlu2 %v2187_v59, %s2304_s0  ;;  %v2189_v33 = vpop.eup %2188  ;;  %v1136_v59 = vld [vmem:[#allocation3 + $0x18] sm:$0xff] }
 0xd02   :  { %v977_v34 = vadd.f32 1.0, %v2189_v33  ;;  %v1190_v33 = vld [vmem:[%s2914_s3 + $0x8] sm:$0xff] }
 0xd03   :  { %1233 = vmatpush.msrb.mxu0 %v1190_v33 }
 0xd04   :  { %2190 = vrcp.f32 %v977_v34  ;;  %v1004_v63 = vand.u32 2147483648, %v977_v34  ;;  %vm998_vm12 = vweird.f32 %v977_v34  ;;  %v1002_v39 = vand.u32 2147483647, %v977_v34 }
 0xd06   :  { %v1005_v0 = vor.u32 1.1754944e-38, %v1004_v63  ;;  %vm1003_vm4 = vcmp.eq.f32.partialorder %v1002_v39, 8.507059e+37 }
 0xd0a   :  { %v2191_v29 = vpop.eup %2190 }
 0xd0b   :  { %v994_v35 = vmul.f32 %v2191_v29, %v977_v34  ;;  %vm999_vm11 = vweird.f32 %v2191_v29  ;;  %v1189_v34 = vld [vmem:[%s2914_s3] sm:$0xff] }
 0xd0c   :  { %vm1000_vm2 = vmor %vm998_vm12, %vm999_vm11  ;;  %1234 = vmatpush.msrb.mxu0 %v1189_v34 }
 0xd0d   :  { %v995_v36 = vsub.f32 1.0, %v994_v35 }
 0xd0f   :  { %v996_v37 = vmul.f32 %v2191_v29, %v995_v36 }
 0xd11   :  { %v997_v38 = vadd.f32 %v2191_v29, %v996_v37 }
 0xd13   :  { %v1001_v40 = vsel %vm1000_vm2, %v2191_v29, %v997_v38 }
 0xd14   :  { %v1006_v24 = vsel %vm1003_vm4, %v1005_v0, %v1001_v40 }
 0xd5b   :  { %v1023_v41 = vpop.permute.xlu2 %1022 }
 0xd5c   :  { %v1025_v42 = vmul.f32 %v1023_v41, %v1006_v24 }
 0xd5e   :  { %1026 = vst.msk [vmem:[#allocation3 + $0x30] sm:$0xff] %vm394_vm3, %v1025_v42  ;;  %2036 = vmatmul.msk.f32.vlgmr.msrb.gmra.mxu2 %vm292_vm5, %v1025_v42  ;;  %2037 = vmatmul.msk.f32.vlgmr.msrb.gmra.mxu3 %vm292_vm5, %v1025_v42 }
 0xd5f   :  { %1027 = vst.msk [vmem:[#allocation3 + $0x8] sm:$0xff] %vm396_vm6, %v1025_v42 }
 0xd65   :  { %v1139_v30 = vld [vmem:[#allocation3 + $0x30] sm:$0xff] }
 0xd66   :  { %v1134_v17 = vld [vmem:[#allocation3 + $0x8] sm:$0xff] }
 0xde1   :  { %v1070_v44 = vpop.f32.mrf.mxu3  ;;  %v1050_v49 = vpop.f32.mrf.mxu2 }
 0xde2   :  { %v1074_v47 = vadd.f32 %v1070_v44, %v2671_v46  ;;  %v1073_v50 = vadd.f32 %v1050_v49, %v2678_v2 }
 0xde4   :  { %2192 = vtanh.f32 %v1074_v47  ;;  %v2038_v51 = vmul.f32 -1.442695, %v1073_v50  ;;  %v2039_v57 = vmul.f32 -1.442695, %v1074_v47 }
 0xde6   :  { %2194 = vpow2.f32 %v2038_v51 }
 0xdea   :  { %v2193_v48 = vpop.eup %2192 }
 0xdeb   :  { %1116 = vrot.lane.b32.xlu0 %v2193_v48, %s2304_s0 }
 0xdec   :  { %v2195_v3 = vpop.eup %2194 }
 0xded   :  { %v1081_v4 = vadd.f32 1.0, %v2195_v3 }
 0xdef   :  { %2196 = vrcp.f32 %v1081_v4  ;;  %v1094_v12 = vand.u32 2147483648, %v1081_v4  ;;  %vm1088_vm13 = vweird.f32 %v1081_v4  ;;  %v1092_v46 = vand.u32 2147483647, %v1081_v4 }
 0xdf1   :  { %v1095_v14 = vor.u32 1.1754944e-38, %v1094_v12  ;;  %vm1093_vm8 = vcmp.eq.f32.partialorder %v1092_v46, 8.507059e+37 }
 0xdf5   :  { %v2197_v5 = vpop.eup %2196 }
 0xdf6   :  { %v1084_v6 = vmul.f32 %v2197_v5, %v1081_v4  ;;  %vm1089_vm5 = vweird.f32 %v2197_v5 }
 0xdf7   :  { %vm1090_vm14 = vmor %vm1088_vm13, %vm1089_vm5 }
 0xdf8   :  { %v1085_v7 = vsub.f32 1.0, %v1084_v6 }
 0xdfa   :  { %v1086_v8 = vmul.f32 %v2197_v5, %v1085_v7 }
 0xdfc   :  { %v1087_v9 = vadd.f32 %v2197_v5, %v1086_v8 }
 0xdfe   :  { %v1091_v13 = vsel %vm1090_vm14, %v2197_v5, %v1087_v9 }
 0xdff   :  { %v1096_v2 = vsel %vm1093_vm8, %v1095_v14, %v1091_v13  ;;  %v2751_v13 = vld [vmem:[%s2913_s2 + $0x38] sm:$0xff] }
 0xe00   :  { %v1114_v19 = vmul.f32 %v1096_v2, %v2700_v32  ;;  %1404 = vmatpush.msra.mxu2 %v2751_v13  ;;  %1468 = vmatpush.msra.mxu3 %v2751_v13 }
 0xe5d   :  { %v1117_v15 = vpop.permute.xlu0 %1116 }
 0xe5e   :  { %v1119_v16 = vmul.f32 %v1117_v15, %v1096_v2  ;;  %v2758_v15 = vld [vmem:[%s2913_s2 + $0x30] sm:$0xff]  ;;  %v1309_v2 = vld [vmem:[%s2913_s2 + $0x18] sm:$0xff] }
 0xe5f   :  { %1405 = vmatpush.msra.mxu2 %v2758_v15  ;;  %1469 = vmatpush.msra.mxu3 %v2758_v15 }
 0xe60   :  { %1121 = vrot.lane.b32.xlu1 %v1119_v16, %s2304_s0  ;;  %v2768_v16 = vld [vmem:[%s2913_s2 + $0x28] sm:$0xff]  ;;  %1352 = vmatpush.msrb.mxu1 %v1309_v2 }
 0xe61   :  { %1406 = vmatpush.msra.mxu2 %v2768_v16  ;;  %1470 = vmatpush.msra.mxu3 %v2768_v16 }
 0xe68   :  { %1151 = vrot.lane.b32.xlu1 %v1134_v17, %s2311_s1 }
 0xe70   :  { %1157 = vrot.lane.b32.xlu1 %v2713_v18, %s2311_s1 }
 0xed2   :  { %v1122_v20 = vpop.permute.xlu1 %1121 }
 0xed3   :  { %v1124_v56 = vadd.f32 %v1122_v20, %v1114_v19  ;;  %v1307_v20 = vld [vmem:[%s2913_s2 + $0x8] sm:$0xff] }
 0xed5   :  { %2198 = vtanh.f32 %v1124_v56  ;;  %v1306_v56 = vld [vmem:[%s2913_s2] sm:$0xff] }
 0xed6   :  { %2200 = vpow2.f32 %v2039_v57 }
 0xeda   :  { %v1152_v37 = vpop.permute.xlu1 %1151 }
 0xedb   :  { %v2199_v53 = vpop.eup %2198  ;;  %v1174_v38 = vadd.f32 %v1152_v37, %v1134_v17  ;;  %v1308_v17 = vld [vmem:[%s2913_s2 + $0x10] sm:$0xff] }
 0xedc   :  { %1127 = vrot.lane.b32.xlu2 %v2199_v53, %s2304_s0  ;;  %v2201_v58 = vpop.eup %2200  ;;  %1353 = vmatpush.msrb.mxu1 %v1308_v17 }
 0xedd   :  { %v1082_v60 = vadd.f32 1.0, %v2201_v58  ;;  %v1182_v63 = vmul.f32 0.5, %v1174_v38 }
 0xede   :  { %1354 = vmatpush.msrb.mxu1 %v1307_v20  ;;  %v2815_v20 = vld [vmem:[%s2913_s2 + $0x40] ss:$0 sm:$0xff] }
 0xedf   :  { %2202 = vrcp.f32 %v1082_v60  ;;  %v1109_v1 = vand.u32 2147483648, %v1082_v60  ;;  %vm1103_vm0 = vweird.f32 %v1082_v60  ;;  %v1107_v43 = vand.u32 2147483647, %v1082_v60 }
 0xee0   :  { %1355 = vmatpush.msrb.mxu1 %v1306_v56 }
 0xee1   :  { %v1110_v26 = vor.u32 1.1754944e-38, %v1109_v1  ;;  %vm1108_vm1 = vcmp.eq.f32.partialorder %v1107_v43, 8.507059e+37 }
 0xee2   :  { %v1158_v44 = vpop.permute.xlu1 %1157 }
 0xee3   :  { %v1177_v47 = vadd.f32 %v1158_v44, %v2713_v18  ;;  %v2777_v18 = vld [vmem:[%s2913_s2 + $0x20] sm:$0xff] }
 0xee4   :  { %1153 = vrot.lane.b32.xlu2 %v1135_v54, %s2311_s1  ;;  %1407 = vmatpush.msra.mxu2 %v2777_v18 }
 0xee5   :  { %v2203_v61 = vpop.eup %2202  ;;  %v1185_v48 = vmul.f32 0.5, %v1177_v47  ;;  %1471 = vmatpush.msra.mxu3 %v2777_v18  ;;  %1408 = vmatmul.f32.vlgmr.msra.gmra.mxu2 %v2303_v22  ;;  %v2104_v22 = vld [vmem:[%s2914_s3 + $0x60] ss:$0 sm:$0xff] }
 0xee6   :  { %v1099_v21 = vmul.f32 %v2203_v61, %v1082_v60  ;;  %vm1104_vm15 = vweird.f32 %v2203_v61  ;;  %1532 = vmatpush.msrb.mxu2 %v2751_v13 }
 0xee7   :  { %vm1105_vm7 = vmor %vm1103_vm0, %vm1104_vm15  ;;  %1596 = vmatpush.msrb.mxu3 %v2751_v13 }
 0xee8   :  { %v1100_v23 = vsub.f32 1.0, %v1099_v21  ;;  %1533 = vmatpush.msrb.mxu2 %v2758_v15 }
 0xee9   :  { %1597 = vmatpush.msrb.mxu3 %v2758_v15 }
 0xeea   :  { %v1101_v10 = vmul.f32 %v2203_v61, %v1100_v23  ;;  %1534 = vmatpush.msrb.mxu2 %v2768_v16 }
 0xeeb   :  { %1598 = vmatpush.msrb.mxu3 %v2768_v16 }
 0xeec   :  { %1159 = vrot.lane.b32.xlu2 %v1138_v55, %s2311_s1  ;;  %v1102_v11 = vadd.f32 %v2203_v61, %v1101_v10  ;;  %1535 = vmatpush.msrb.mxu2 %v2777_v18 }
 0xeed   :  { %1599 = vmatpush.msrb.mxu3 %v2777_v18 }
 0xeee   :  { %v1106_v25 = vsel %vm1105_vm7, %v2203_v61, %v1102_v11  ;;  %1660 = vmatpush.msra.mxu2 %v2751_v13 }
 0xeef   :  { %v1111_v52 = vsel %vm1108_vm1, %v1110_v26, %v1106_v25 }
 0xef0   :  { %1661 = vmatpush.msra.mxu2 %v2758_v15 }
 0xef2   :  { %1662 = vmatpush.msra.mxu2 %v2768_v16 }
 0xef4   :  { %1663 = vmatpush.msra.mxu2 %v2777_v18 }
 0xf36   :  { %v1128_v27 = vpop.permute.xlu2 %1127 }
 0xf37   :  { %v1130_v28 = vmul.f32 %v1128_v27, %v1111_v52 }
 0xf39   :  { %1131 = vst.msk [vmem:[#allocation3 + $0x38] sm:$0xff] %vm394_vm3, %v1130_v28 }
 0xf3a   :  { %1132 = vst.msk [vmem:[#allocation3] sm:$0xff] %vm396_vm6, %v1130_v28 }
 0xf3e   :  { %v1154_v39 = vpop.permute.xlu2 %1153 }
 0xf3f   :  { %v1175_v40 = vadd.f32 %v1154_v39, %v1135_v54 }
 0xf40   :  { %v1140_v31 = vld [vmem:[#allocation3 + $0x38] sm:$0xff] }
 0xf41   :  { %v1133_v32 = vld [vmem:[#allocation3] sm:$0xff]  ;;  %1163 = vrot.lane.b32.xlu1 %v1140_v31, %s2311_s1  ;;  %v1183_v0 = vmul.f32 0.5, %v1175_v40 }
 0xf42   :  { %1149 = vrot.lane.b32.xlu0 %v1133_v32, %s2311_s1 }
 0xf46   :  { %v1160_v49 = vpop.permute.xlu2 %1159 }
 0xf47   :  { %v1178_v50 = vadd.f32 %v1160_v49, %v1138_v55 }
 0xf49   :  { %v1186_v51 = vmul.f32 0.5, %v1178_v50 }
 0xf4a   :  { %1155 = vrot.lane.b32.xlu0 %v1136_v59, %s2311_s1 }
 0xf52   :  { %1161 = vrot.lane.b32.xlu0 %v1139_v30, %s2311_s1 }
 0xfb3   :  { %v1164_v6 = vpop.permute.xlu1 %1163 }
 0xfb4   :  { %v1150_v29 = vpop.permute.xlu0 %1149  ;;  %v1180_v7 = vadd.f32 %v1164_v6, %v1140_v31 }
 0xfb5   :  { %v1173_v35 = vadd.f32 %v1150_v29, %v1133_v32 }
 0xfb6   :  { %v1188_v8 = vmul.f32 0.5, %v1180_v7 }
 0xfb7   :  { %v1181_v36 = vmul.f32 0.5, %v1173_v35 }
 0xfb9   :  { %2040 = vmatmul.msk.f32.vlgmr.msrb.gmra.mxu0 %vm394_vm3, %v1181_v36 }
 0xfbc   :  { %v1156_v24 = vpop.permute.xlu0 %1155 }
 0xfbd   :  { %v1176_v41 = vadd.f32 %v1156_v24, %v1136_v59 }
 0xfbf   :  { %v1184_v42 = vmul.f32 0.5, %v1176_v41 }
 0xfc1   :  { %2041 = vmatmul.msk.f32.gmra.mxu0 %vm394_vm3, %v1182_v63 }
 0xfc4   :  { %v1162_v3 = vpop.permute.xlu0 %1161 }
 0xfc5   :  { %v1179_v4 = vadd.f32 %v1162_v3, %v1139_v30 }
 0xfc7   :  { %v1187_v5 = vmul.f32 0.5, %v1179_v4 }
 0xfc9   :  { %2042 = vmatmul.msk.f32.gmra.mxu0 %vm394_vm3, %v1183_v0 }
 0xfd1   :  { %2043 = vmatmul.msk.f32.gmra.mxu0 %vm394_vm3, %v1184_v42 }
 0xfd9   :  { %2044 = vmatmul.msk.f32.gmra.mxu0 %vm394_vm3, %v1185_v48 }
 0xfe1   :  { %2045 = vmatmul.msk.f32.gmra.mxu0 %vm394_vm3, %v1186_v51 }
 0xfe9   :  { %2046 = vmatmul.msk.f32.gmra.mxu0 %vm394_vm3, %v1187_v5 }
 0xff1   :  { %2047 = vmatmul.msk.f32.gmra.mxu0 %vm394_vm3, %v1188_v8 }
0x1036   :  { %v1236_v9 = vpop.f32.mrf.mxu0 }
0x1037   :  { %v1237_v60 = vadd.f32 %v2104_v22, %v1236_v9 }
0x1039   :  { %v1260_v43 = vmax.f32 %v1237_v60, 0.0 }
0x103e   :  { %v1239_v12 = vpop.f32.mrf.mxu0 }
0x103f   :  { %v1240_v57 = vadd.f32 %v2104_v22, %v1239_v12 }
0x1041   :  { %v1261_v23 = vmax.f32 %v1240_v57, 0.0 }
0x1043   :  { %v1268_v27 = vmin.f32 %v1260_v43, %v1261_v23  ;;  %v1269_v28 = vmax.f32 %v1260_v43, %v1261_v23 }
0x1046   :  { %v1242_v46 = vpop.f32.mrf.mxu0 }
0x1047   :  { %v1243_v58 = vadd.f32 %v2104_v22, %v1242_v46 }
0x1049   :  { %v1262_v10 = vmax.f32 %v1243_v58, 0.0 }
0x104e   :  { %v1245_v14 = vpop.f32.mrf.mxu0 }
0x104f   :  { %v1246_v54 = vadd.f32 %v2104_v22, %v1245_v14 }
0x1051   :  { %v1263_v61 = vmax.f32 %v1246_v54, 0.0 }
0x1053   :  { %v1270_v45 = vmin.f32 %v1262_v10, %v1263_v61  ;;  %v1271_v62 = vmax.f32 %v1262_v10, %v1263_v61 }
0x1055   :  { %v1277_v30 = vmax.f32 %v1268_v27, %v1270_v45  ;;  %v1278_v33 = vmin.f32 %v1269_v28, %v1271_v62  ;;  %v1276_v37 = vmin.f32 %v1268_v27, %v1270_v45  ;;  %v1279_v3 = vmax.f32 %v1269_v28, %v1271_v62 }
0x1056   :  { %v1248_v19 = vpop.f32.mrf.mxu0 }
0x1057   :  { %v1249_v11 = vadd.f32 %v2104_v22, %v1248_v19  ;;  %v1285_v40 = vmax.f32 %v1278_v33, %v1277_v30  ;;  %v1284_v47 = vmin.f32 %v1278_v33, %v1277_v30 }
0x1059   :  { %v1264_v31 = vmax.f32 %v1249_v11, 0.0 }
0x105e   :  { %v1251_v53 = vpop.f32.mrf.mxu0 }
0x105f   :  { %v1252_v21 = vadd.f32 %v2104_v22, %v1251_v53  ;;  %v1409_v53 = vpop.f32.mrf.mxu2 }
0x1061   :  { %v1265_v26 = vmax.f32 %v1252_v21, 0.0 }
0x1063   :  { %v1272_v34 = vmin.f32 %v1264_v31, %v1265_v26  ;;  %v1273_v29 = vmax.f32 %v1264_v31, %v1265_v26 }
0x1066   :  { %v1254_v55 = vpop.f32.mrf.mxu0 }
0x1067   :  { %v1255_v1 = vadd.f32 %v2104_v22, %v1254_v55 }
0x1069   :  { %v1266_v32 = vmax.f32 %v1255_v1, 0.0 }
0x106e   :  { %v1257_v25 = vpop.f32.mrf.mxu0 }
0x106f   :  { %v1258_v52 = vadd.f32 %v2104_v22, %v1257_v25 }
0x1071   :  { %v1267_v59 = vmax.f32 %v1258_v52, 0.0 }
0x1073   :  { %v1274_v35 = vmin.f32 %v1266_v32, %v1267_v59  ;;  %v1275_v36 = vmax.f32 %v1266_v32, %v1267_v59 }
0x1075   :  { %v1280_v38 = vmin.f32 %v1272_v34, %v1274_v35  ;;  %v1281_v63 = vmax.f32 %v1272_v34, %v1274_v35  ;;  %v1282_v39 = vmin.f32 %v1273_v29, %v1275_v36  ;;  %v1283_v51 = vmax.f32 %v1273_v29, %v1275_v36 }
0x1077   :  { %v1287_v0 = vmax.f32 %v1282_v39, %v1281_v63  ;;  %v1288_v24 = vmin.f32 %v1276_v37, %v1280_v38  ;;  %v1286_v41 = vmin.f32 %v1282_v39, %v1281_v63  ;;  %v1289_v42 = vmax.f32 %v1276_v37, %v1280_v38 }
0x1078   :  { %v1294_v6 = vmin.f32 %v1279_v3, %v1283_v51  ;;  %v1295_v19 = vmax.f32 %v1279_v3, %v1283_v51 }
0x1079   :  { %2048 = vmatmul.msk.f32.vlgmr.msrb.gmra.mxu1 %vm394_vm3, %v1288_v24  ;;  %v1292_v44 = vmin.f32 %v1285_v40, %v1287_v0  ;;  %v1290_v49 = vmin.f32 %v1284_v47, %v1286_v41  ;;  %v1291_v5 = vmax.f32 %v1284_v47, %v1286_v41  ;;  %v1293_v14 = vmax.f32 %v1285_v40, %v1287_v0 }
0x107b   :  { %v1296_v48 = vmin.f32 %v1292_v44, %v1289_v42  ;;  %v1297_v7 = vmax.f32 %v1292_v44, %v1289_v42  ;;  %v1298_v8 = vmin.f32 %v1294_v6, %v1291_v5  ;;  %v1299_v46 = vmax.f32 %v1294_v6, %v1291_v5 }
0x107d   :  { %v1300_v50 = vmin.f32 %v1290_v49, %v1296_v48  ;;  %v1301_v4 = vmax.f32 %v1290_v49, %v1296_v48  ;;  %v1302_v9 = vmin.f32 %v1298_v8, %v1297_v7  ;;  %v1303_v12 = vmax.f32 %v1298_v8, %v1297_v7 }
0x107e   :  { %v1304_v2 = vmin.f32 %v1299_v46, %v1293_v14  ;;  %v1305_v17 = vmax.f32 %v1299_v46, %v1293_v14 }
0x1081   :  { %2049 = vmatmul.msk.f32.gmra.mxu1 %vm394_vm3, %v1300_v50 }
0x1089   :  { %2050 = vmatmul.msk.f32.gmra.mxu1 %vm394_vm3, %v1301_v4 }
0x1091   :  { %2051 = vmatmul.msk.f32.gmra.mxu1 %vm394_vm3, %v1302_v9 }
0x1099   :  { %2052 = vmatmul.msk.f32.gmra.mxu1 %vm394_vm3, %v1303_v12 }
0x10a1   :  { %2053 = vmatmul.msk.f32.gmra.mxu1 %vm394_vm3, %v1304_v2 }
0x10a9   :  { %2054 = vmatmul.msk.f32.gmra.mxu1 %vm394_vm3, %v1305_v17 }
0x10b1   :  { %2055 = vmatmul.msk.f32.gmra.mxu1 %vm394_vm3, %v1295_v19 }
0x10f6   :  { %v1357_v56 = vpop.f32.mrf.mxu1 }
0x10f7   :  { %v1358_v22 = vadd.f32 %v2815_v20, %v1357_v56 }
0x10f9   :  { %v1412_v54 = vadd.f32 %v1409_v53, %v1358_v22 }
0x10fb   :  { %2204 = vtanh.f32 %v1412_v54  ;;  %v2056_v57 = vmul.f32 -1.442695, %v1412_v54 }
0x10fd   :  { %2206 = vpow2.f32 %v2056_v57 }
0x10fe   :  { %v1360_v34 = vpop.f32.mrf.mxu1 }
0x10ff   :  { %v1361_v29 = vadd.f32 %v2815_v20, %v1360_v34 }
0x1101   :  { %v2205_v55 = vpop.eup %2204 }
0x1102   :  { %1435 = vrot.lane.b32.xlu2 %v2205_v55, %s2312_s25 }
0x1103   :  { %v2207_v58 = vpop.eup %2206 }
0x1104   :  { %v1416_v60 = vadd.f32 1.0, %v2207_v58 }
0x1106   :  { %2208 = vrcp.f32 %v1416_v60  ;;  %v1428_v1 = vand.u32 2147483648, %v1416_v60  ;;  %vm1422_vm9 = vweird.f32 %v1416_v60  ;;  %v1426_v43 = vand.u32 2147483647, %v1416_v60  ;;  %v1363_v46 = vpop.f32.mrf.mxu1 }
0x1107   :  { %v1364_v14 = vadd.f32 %v2815_v20, %v1363_v46 }
0x1108   :  { %v1429_v62 = vor.u32 1.1754944e-38, %v1428_v1  ;;  %vm1427_vm11 = vcmp.eq.f32.partialorder %v1426_v43, 8.507059e+37 }
0x110c   :  { %v2209_v61 = vpop.eup %2208 }
0x110d   :  { %v1418_v21 = vmul.f32 %v2209_v61, %v1416_v60  ;;  %vm1423_vm6 = vweird.f32 %v2209_v61 }
0x110e   :  { %vm1424_vm10 = vmor %vm1422_vm9, %vm1423_vm6 }
0x110f   :  { %v1419_v23 = vsub.f32 1.0, %v1418_v21 }
0x1111   :  { %v1420_v10 = vmul.f32 %v2209_v61, %v1419_v23 }
0x1113   :  { %v1421_v11 = vadd.f32 %v2209_v61, %v1420_v10 }
0x1115   :  { %v1425_v45 = vsel %vm1424_vm10, %v2209_v61, %v1421_v11 }
0x1116   :  { %v1430_v26 = vsel %vm1427_vm11, %v1429_v62, %v1425_v45 }
0x1117   :  { %v1433_v27 = vmul.f32 0.0, %v1430_v26 }
0x115c   :  { %v1436_v25 = vpop.permute.xlu2 %1435 }
0x115d   :  { %v1438_v52 = vmul.f32 %v1436_v25, %v1430_v26 }
0x115f   :  { %1440 = vrot.lane.b32.xlu0 %v1438_v52, %s2312_s25 }
0x11d1   :  { %v1441_v28 = vpop.permute.xlu0 %1440 }
0x11d2   :  { %v1443_v31 = vadd.f32 %v1441_v28, %v1433_v27 }
0x11d4   :  { %2210 = vtanh.f32 %v1443_v31 }
0x11da   :  { %v2211_v32 = vpop.eup %2210 }
0x11db   :  { %1446 = vrot.lane.b32.xlu1 %v2211_v32, %s2312_s25 }
0x124d   :  { %v1447_v59 = vpop.permute.xlu1 %1446 }
0x124e   :  { %v1449_v30 = vmul.f32 %v1447_v59, %v1430_v26 }
0x1250   :  { %1452 = vrot.lane.b32.xlu2 %v1449_v30, %s2304_s0 }
0x12aa   :  { %v1453_v33 = vpop.permute.xlu2 %1452 }
0x12ab   :  { %2057 = vmatmul.msk.f32.vlgmr.msra.gmra.mxu3 %vm394_vm3, %v1453_v33 }
0x12ac   :  { %1724 = vmatpush.msra.mxu3 %v2751_v13 }
0x12ae   :  { %1725 = vmatpush.msra.mxu3 %v2758_v15 }
0x12b0   :  { %1726 = vmatpush.msra.mxu3 %v2768_v16 }
0x12b2   :  { %1727 = vmatpush.msra.mxu3 %v2777_v18 }
0x132e   :  { %v1473_v35 = vpop.f32.mrf.mxu3 }
0x132f   :  { %v1476_v36 = vadd.f32 %v1473_v35, %v1361_v29 }
0x1331   :  { %2212 = vtanh.f32 %v1476_v36  ;;  %v2058_v38 = vmul.f32 -1.442695, %v1476_v36 }
0x1333   :  { %2214 = vpow2.f32 %v2058_v38 }
0x1337   :  { %v2213_v37 = vpop.eup %2212 }
0x1338   :  { %1499 = vrot.lane.b32.xlu0 %v2213_v37, %s2312_s25 }
0x1339   :  { %v2215_v63 = vpop.eup %2214 }
0x133a   :  { %v1480_v39 = vadd.f32 1.0, %v2215_v63 }
0x133c   :  { %2216 = vrcp.f32 %v1480_v39  ;;  %v1492_v44 = vand.u32 2147483648, %v1480_v39  ;;  %vm1486_vm2 = vweird.f32 %v1480_v39  ;;  %v1490_v47 = vand.u32 2147483647, %v1480_v39 }
0x133e   :  { %v1493_v49 = vor.u32 1.1754944e-38, %v1492_v44  ;;  %vm1491_vm5 = vcmp.eq.f32.partialorder %v1490_v47, 8.507059e+37 }
0x1342   :  { %v2217_v40 = vpop.eup %2216 }
0x1343   :  { %v1482_v0 = vmul.f32 %v2217_v40, %v1480_v39  ;;  %vm1487_vm12 = vweird.f32 %v2217_v40 }
0x1344   :  { %vm1488_vm4 = vmor %vm1486_vm2, %vm1487_vm12 }
0x1345   :  { %v1483_v24 = vsub.f32 1.0, %v1482_v0 }
0x1347   :  { %v1484_v41 = vmul.f32 %v2217_v40, %v1483_v24 }
0x1349   :  { %v1485_v42 = vadd.f32 %v2217_v40, %v1484_v41 }
0x134b   :  { %v1489_v48 = vsel %vm1488_vm4, %v2217_v40, %v1485_v42 }
0x134c   :  { %v1494_v51 = vsel %vm1491_vm5, %v1493_v49, %v1489_v48 }
0x134d   :  { %v1497_v4 = vmul.f32 %v1494_v51, %v1443_v31  ;;  %v1366_v31 = vpop.f32.mrf.mxu1 }
0x134e   :  { %v1367_v32 = vadd.f32 %v2815_v20, %v1366_v31 }
0x13aa   :  { %v1500_v50 = vpop.permute.xlu0 %1499 }
0x13ab   :  { %v1502_v3 = vmul.f32 %v1500_v50, %v1494_v51 }
0x13ad   :  { %1504 = vrot.lane.b32.xlu1 %v1502_v3, %s2312_s25 }
0x141f   :  { %v1505_v5 = vpop.permute.xlu1 %1504 }
0x1420   :  { %v1507_v6 = vadd.f32 %v1505_v5, %v1497_v4 }
0x1422   :  { %2218 = vtanh.f32 %v1507_v6 }
0x1428   :  { %v2219_v7 = vpop.eup %2218 }
0x1429   :  { %1510 = vrot.lane.b32.xlu2 %v2219_v7, %s2312_s25 }
0x1483   :  { %v1511_v8 = vpop.permute.xlu2 %1510 }
0x1484   :  { %v1513_v9 = vmul.f32 %v1511_v8, %v1494_v51  ;;  %v1369_v51 = vpop.f32.mrf.mxu1 }
0x1485   :  { %v1370_v3 = vadd.f32 %v2815_v20, %v1369_v51 }
0x1486   :  { %1516 = vrot.lane.b32.xlu0 %v1513_v9, %s2304_s0 }
0x14f8   :  { %v1517_v12 = vpop.permute.xlu0 %1516 }
0x14f9   :  { %2059 = vmatmul.msk.f32.vlgmr.msrb.gmra.mxu2 %vm394_vm3, %v1517_v12 }
0x14fa   :  { %1788 = vmatpush.msrb.mxu2 %v2751_v13 }
0x14fc   :  { %1789 = vmatpush.msrb.mxu2 %v2758_v15 }
0x14fe   :  { %1790 = vmatpush.msrb.mxu2 %v2768_v16 }
0x1500   :  { %1791 = vmatpush.msrb.mxu2 %v2777_v18 }
0x157c   :  { %v1537_v2 = vpop.f32.mrf.mxu2 }
0x157d   :  { %v1540_v17 = vadd.f32 %v1537_v2, %v1364_v14 }
0x157f   :  { %2220 = vtanh.f32 %v1540_v17  ;;  %v2060_v56 = vmul.f32 -1.442695, %v1540_v17 }
0x1581   :  { %2222 = vpow2.f32 %v2060_v56 }
0x1585   :  { %v2221_v19 = vpop.eup %2220 }
0x1586   :  { %1563 = vrot.lane.b32.xlu1 %v2221_v19, %s2312_s25 }
0x1587   :  { %v2223_v53 = vpop.eup %2222 }
0x1588   :  { %v1544_v22 = vadd.f32 1.0, %v2223_v53 }
0x158a   :  { %2224 = vrcp.f32 %v1544_v22  ;;  %v1556_v61 = vand.u32 2147483648, %v1544_v22  ;;  %vm1550_vm14 = vweird.f32 %v1544_v22  ;;  %v1554_v21 = vand.u32 2147483647, %v1544_v22 }
0x158c   :  { %v1557_v10 = vor.u32 1.1754944e-38, %v1556_v61  ;;  %vm1555_vm15 = vcmp.eq.f32.partialorder %v1554_v21, 8.507059e+37 }
0x1590   :  { %v2225_v54 = vpop.eup %2224 }
0x1591   :  { %v1546_v55 = vmul.f32 %v2225_v54, %v1544_v22  ;;  %vm1551_vm13 = vweird.f32 %v2225_v54 }
0x1592   :  { %vm1552_vm8 = vmor %vm1550_vm14, %vm1551_vm13 }
0x1593   :  { %v1547_v57 = vsub.f32 1.0, %v1546_v55 }
0x1595   :  { %v1548_v58 = vmul.f32 %v2225_v54, %v1547_v57 }
0x1597   :  { %v1549_v60 = vadd.f32 %v2225_v54, %v1548_v58 }
0x1599   :  { %v1553_v23 = vsel %vm1552_vm8, %v2225_v54, %v1549_v60 }
0x159a   :  { %v1558_v1 = vsel %vm1555_vm15, %v1557_v10, %v1553_v23 }
0x159b   :  { %v1561_v45 = vmul.f32 %v1558_v1, %v1507_v6 }
0x15f8   :  { %v1564_v11 = vpop.permute.xlu1 %1563 }
0x15f9   :  { %v1566_v43 = vmul.f32 %v1564_v11, %v1558_v1 }
0x15fb   :  { %1568 = vrot.lane.b32.xlu2 %v1566_v43, %s2312_s25 }
0x1655   :  { %v1569_v62 = vpop.permute.xlu2 %1568 }
0x1656   :  { %v1571_v25 = vadd.f32 %v1569_v62, %v1561_v45 }
0x1658   :  { %2226 = vtanh.f32 %v1571_v25 }
0x165e   :  { %v2227_v26 = vpop.eup %2226 }
0x165f   :  { %1574 = vrot.lane.b32.xlu0 %v2227_v26, %s2312_s25 }
0x16d1   :  { %v1575_v52 = vpop.permute.xlu0 %1574 }
0x16d2   :  { %v1577_v27 = vmul.f32 %v1575_v52, %v1558_v1  ;;  %v1372_v1 = vpop.f32.mrf.mxu1 }
0x16d3   :  { %v1373_v43 = vadd.f32 %v2815_v20, %v1372_v1 }
0x16d4   :  { %1580 = vrot.lane.b32.xlu1 %v1577_v27, %s2304_s0 }
0x1746   :  { %v1581_v28 = vpop.permute.xlu1 %1580 }
0x1747   :  { %2061 = vmatmul.msk.f32.vlgmr.msrb.gmra.mxu3 %vm394_vm3, %v1581_v28 }
0x1748   :  { %1852 = vmatpush.msrb.mxu3 %v2751_v13 }
0x174a   :  { %1853 = vmatpush.msrb.mxu3 %v2758_v15 }
0x174c   :  { %1854 = vmatpush.msrb.mxu3 %v2768_v16 }
0x174e   :  { %1855 = vmatpush.msrb.mxu3 %v2777_v18 }
0x17ca   :  { %v1601_v59 = vpop.f32.mrf.mxu3 }
0x17cb   :  { %v1604_v30 = vadd.f32 %v1601_v59, %v1367_v32 }
0x17cd   :  { %2228 = vtanh.f32 %v1604_v30  ;;  %v2062_v34 = vmul.f32 -1.442695, %v1604_v30 }
0x17cf   :  { %2230 = vpow2.f32 %v2062_v34 }
0x17d3   :  { %v2229_v33 = vpop.eup %2228 }
0x17d4   :  { %1627 = vrot.lane.b32.xlu2 %v2229_v33, %s2312_s25 }
0x17d5   :  { %v2231_v29 = vpop.eup %2230 }
0x17d6   :  { %v1608_v35 = vadd.f32 1.0, %v2231_v29 }
0x17d8   :  { %2232 = vrcp.f32 %v1608_v35  ;;  %v1620_v18 = vand.u32 2147483648, %v1608_v35  ;;  %vm1614_vm7 = vweird.f32 %v1608_v35  ;;  %v1618_v38 = vand.u32 2147483647, %v1608_v35 }
0x17da   :  { %v1621_v39 = vor.u32 1.1754944e-38, %v1620_v18  ;;  %vm1619_vm6 = vcmp.eq.f32.partialorder %v1618_v38, 8.507059e+37 }
0x17de   :  { %v2233_v13 = vpop.eup %2232 }
0x17df   :  { %v1610_v15 = vmul.f32 %v2233_v13, %v1608_v35  ;;  %vm1615_vm0 = vweird.f32 %v2233_v13 }
0x17e0   :  { %vm1616_vm1 = vmor %vm1614_vm7, %vm1615_vm0 }
0x17e1   :  { %v1611_v36 = vsub.f32 1.0, %v1610_v15 }
0x17e3   :  { %v1612_v16 = vmul.f32 %v2233_v13, %v1611_v36 }
0x17e5   :  { %v1613_v37 = vadd.f32 %v2233_v13, %v1612_v16 }
0x17e7   :  { %v1617_v63 = vsel %vm1616_vm1, %v2233_v13, %v1613_v37 }
0x17e8   :  { %v1622_v0 = vsel %vm1619_vm6, %v1621_v39, %v1617_v63 }
0x17e9   :  { %v1625_v41 = vmul.f32 %v1622_v0, %v1571_v25 }
0x182e   :  { %v1628_v40 = vpop.permute.xlu2 %1627 }
0x182f   :  { %v1630_v24 = vmul.f32 %v1628_v40, %v1622_v0 }
0x1831   :  { %1632 = vrot.lane.b32.xlu0 %v1630_v24, %s2312_s25 }
0x18a3   :  { %v1633_v42 = vpop.permute.xlu0 %1632 }
0x18a4   :  { %v1635_v44 = vadd.f32 %v1633_v42, %v1625_v41 }
0x18a6   :  { %2234 = vtanh.f32 %v1635_v44 }
0x18ac   :  { %v2235_v47 = vpop.eup %2234 }
0x18ad   :  { %1638 = vrot.lane.b32.xlu1 %v2235_v47, %s2312_s25 }
0x191f   :  { %v1639_v48 = vpop.permute.xlu1 %1638 }
0x1920   :  { %v1641_v49 = vmul.f32 %v1639_v48, %v1622_v0  ;;  %v1375_v0 = vpop.f32.mrf.mxu1 }
0x1921   :  { %v1376_v24 = vadd.f32 %v2815_v20, %v1375_v0 }
0x1922   :  { %1644 = vrot.lane.b32.xlu2 %v1641_v49, %s2304_s0 }
0x197c   :  { %v1645_v50 = vpop.permute.xlu2 %1644 }
0x197d   :  { %2063 = vmatmul.msk.f32.vlgmr.msra.gmra.mxu2 %vm394_vm3, %v1645_v50 }
0x1a00   :  { %v1665_v4 = vpop.f32.mrf.mxu2 }
0x1a01   :  { %v1668_v5 = vadd.f32 %v1665_v4, %v1370_v3 }
0x1a03   :  { %2236 = vtanh.f32 %v1668_v5  ;;  %v2064_v7 = vmul.f32 -1.442695, %v1668_v5 }
0x1a05   :  { %2238 = vpow2.f32 %v2064_v7 }
0x1a09   :  { %v2237_v6 = vpop.eup %2236 }
0x1a0a   :  { %1691 = vrot.lane.b32.xlu0 %v2237_v6, %s2312_s25 }
0x1a0b   :  { %v2239_v8 = vpop.eup %2238 }
0x1a0c   :  { %v1672_v9 = vadd.f32 1.0, %v2239_v8 }
0x1a0e   :  { %2240 = vrcp.f32 %v1672_v9  ;;  %v1684_v19 = vand.u32 2147483648, %v1672_v9  ;;  %vm1678_vm10 = vweird.f32 %v1672_v9  ;;  %v1682_v56 = vand.u32 2147483647, %v1672_v9 }
0x1a10   :  { %v1685_v22 = vor.u32 1.1754944e-38, %v1684_v19  ;;  %vm1683_vm12 = vcmp.eq.f32.partialorder %v1682_v56, 8.507059e+37 }
0x1a14   :  { %v2241_v12 = vpop.eup %2240 }
0x1a15   :  { %v1674_v46 = vmul.f32 %v2241_v12, %v1672_v9  ;;  %vm1679_vm9 = vweird.f32 %v2241_v12 }
0x1a16   :  { %vm1680_vm11 = vmor %vm1678_vm10, %vm1679_vm9 }
0x1a17   :  { %v1675_v14 = vsub.f32 1.0, %v1674_v46 }
0x1a19   :  { %v1676_v2 = vmul.f32 %v2241_v12, %v1675_v14 }
0x1a1b   :  { %v1677_v17 = vadd.f32 %v2241_v12, %v1676_v2 }
0x1a1d   :  { %v1681_v53 = vsel %vm1680_vm11, %v2241_v12, %v1677_v17 }
0x1a1e   :  { %v1686_v55 = vsel %vm1683_vm12, %v1685_v22, %v1681_v53  ;;  %vm1979_vm12 = vcmask 7168  }
0x1a1f   :  { %v1689_v58 = vmul.f32 %v1686_v55, %v1635_v44 }
0x1a7c   :  { %v1692_v54 = vpop.permute.xlu0 %1691 }
0x1a7d   :  { %v1694_v57 = vmul.f32 %v1692_v54, %v1686_v55 }
0x1a7f   :  { %1696 = vrot.lane.b32.xlu1 %v1694_v57, %s2312_s25 }
0x1af1   :  { %v1697_v60 = vpop.permute.xlu1 %1696 }
0x1af2   :  { %v1699_v61 = vadd.f32 %v1697_v60, %v1689_v58 }
0x1af4   :  { %2242 = vtanh.f32 %v1699_v61 }
0x1afa   :  { %v2243_v21 = vpop.eup %2242 }
0x1afb   :  { %1702 = vrot.lane.b32.xlu2 %v2243_v21, %s2312_s25 }
0x1b55   :  { %v1703_v23 = vpop.permute.xlu2 %1702 }
0x1b56   :  { %v1705_v10 = vmul.f32 %v1703_v23, %v1686_v55  ;;  %v1378_v55 = vpop.f32.mrf.mxu1 }
0x1b57   :  { %v1379_v57 = vadd.f32 %v2815_v20, %v1378_v55 }
0x1b58   :  { %1708 = vrot.lane.b32.xlu0 %v1705_v10, %s2304_s0 }
0x1bca   :  { %v1709_v11 = vpop.permute.xlu0 %1708 }
0x1bcb   :  { %2065 = vmatmul.msk.f32.vlgmr.msra.gmra.mxu3 %vm394_vm3, %v1709_v11 }
0x1c4e   :  { %v1729_v45 = vpop.f32.mrf.mxu3 }
0x1c4f   :  { %v1732_v62 = vadd.f32 %v1729_v45, %v1373_v43 }
0x1c51   :  { %2244 = vtanh.f32 %v1732_v62  ;;  %v2066_v26 = vmul.f32 -1.442695, %v1732_v62 }
0x1c53   :  { %2246 = vpow2.f32 %v2066_v26 }
0x1c57   :  { %v2245_v25 = vpop.eup %2244 }
0x1c58   :  { %1755 = vrot.lane.b32.xlu1 %v2245_v25, %s2312_s25 }
0x1c59   :  { %v2247_v52 = vpop.eup %2246 }
0x1c5a   :  { %v1736_v27 = vadd.f32 1.0, %v2247_v52 }
0x1c5c   :  { %2248 = vrcp.f32 %v1736_v27  ;;  %v1748_v33 = vand.u32 2147483648, %v1736_v27  ;;  %vm1742_vm4 = vweird.f32 %v1736_v27  ;;  %v1746_v34 = vand.u32 2147483647, %v1736_v27 }
0x1c5e   :  { %v1749_v35 = vor.u32 1.1754944e-38, %v1748_v33  ;;  %vm1747_vm13 = vcmp.eq.f32.partialorder %v1746_v34, 8.507059e+37  ;;  %v1901_v34 = vld [vmem:[%s2914_s3 + $0x38] sm:$0xff] }
0x1c5f   :  { %1921 = vmatpush.msra.mxu2 %v1901_v34 }
0x1c62   :  { %v2249_v28 = vpop.eup %2248 }
0x1c63   :  { %v1738_v31 = vmul.f32 %v2249_v28, %v1736_v27  ;;  %vm1743_vm2 = vweird.f32 %v2249_v28 }
0x1c64   :  { %vm1744_vm5 = vmor %vm1742_vm4, %vm1743_vm2 }
0x1c65   :  { %v1739_v32 = vsub.f32 1.0, %v1738_v31 }
0x1c67   :  { %v1740_v59 = vmul.f32 %v2249_v28, %v1739_v32 }
0x1c69   :  { %v1741_v30 = vadd.f32 %v2249_v28, %v1740_v59 }
0x1c6b   :  { %v1745_v29 = vsel %vm1744_vm5, %v2249_v28, %v1741_v30 }
0x1c6c   :  { %v1750_v15 = vsel %vm1747_vm13, %v1749_v35, %v1745_v29  ;;  %v1900_v29 = vld [vmem:[%s2914_s3 + $0x30] sm:$0xff]  ;;  %v1899_v35 = vld [vmem:[%s2914_s3 + $0x28] sm:$0xff] }
0x1c6d   :  { %v1753_v16 = vmul.f32 %v1750_v15, %v1699_v61  ;;  %1922 = vmatpush.msra.mxu2 %v1900_v29 }
0x1c6f   :  { %1923 = vmatpush.msra.mxu2 %v1899_v35 }
0x1cca   :  { %v1756_v13 = vpop.permute.xlu1 %1755 }
0x1ccb   :  { %v1758_v36 = vmul.f32 %v1756_v13, %v1750_v15  ;;  %v1898_v13 = vld [vmem:[%s2914_s3 + $0x20] sm:$0xff] }
0x1ccc   :  { %1924 = vmatpush.msra.mxu2 %v1898_v13 }
0x1ccd   :  { %1760 = vrot.lane.b32.xlu2 %v1758_v36, %s2312_s25 }
0x1d27   :  { %v1761_v37 = vpop.permute.xlu2 %1760 }
0x1d28   :  { %v1763_v18 = vadd.f32 %v1761_v37, %v1753_v16  ;;  %v1933_v16 = vld [vmem:[%s2914_s3 + $0x58] sm:$0xff]  ;;  %v1932_v37 = vld [vmem:[%s2914_s3 + $0x50] sm:$0xff] }
0x1d29   :  { %1950 = vmatpush.msra.mxu3 %v1933_v16 }
0x1d2a   :  { %2250 = vtanh.f32 %v1763_v18 }
0x1d2b   :  { %1951 = vmatpush.msra.mxu3 %v1932_v37 }
0x1d30   :  { %v2251_v38 = vpop.eup %2250 }
0x1d31   :  { %1766 = vrot.lane.b32.xlu0 %v2251_v38, %s2312_s25  ;;  %v1931_v38 = vld [vmem:[%s2914_s3 + $0x48] sm:$0xff] }
0x1d32   :  { %1952 = vmatpush.msra.mxu3 %v1931_v38 }
0x1da3   :  { %v1767_v63 = vpop.permute.xlu0 %1766 }
0x1da4   :  { %v1769_v39 = vmul.f32 %v1767_v63, %v1750_v15  ;;  %v1930_v63 = vld [vmem:[%s2914_s3 + $0x40] sm:$0xff] }
0x1da5   :  { %1953 = vmatpush.msra.mxu3 %v1930_v63 }
0x1da6   :  { %1772 = vrot.lane.b32.xlu1 %v1769_v39, %s2304_s0  ;;  %v2106_v39 = vld [vmem:[%s2914_s3 + $0x61] ss:$0 sm:$0xff] }
0x1e18   :  { %v1773_v40 = vpop.permute.xlu1 %1772 }
0x1e19   :  { %2067 = vmatmul.msk.f32.vlgmr.msrb.gmra.mxu2 %vm394_vm3, %v1773_v40 }
0x1e9c   :  { %v1793_v41 = vpop.f32.mrf.mxu2 }
0x1e9d   :  { %v1796_v42 = vadd.f32 %v1793_v41, %v1376_v24  ;;  %v2107_v41 = vld [vmem:[%s2914_s3 + $0x62] ss:$0 sm:$0xff] }
0x1e9f   :  { %2252 = vtanh.f32 %v1796_v42  ;;  %v2068_v47 = vmul.f32 -1.442695, %v1796_v42 }
0x1ea1   :  { %2254 = vpow2.f32 %v2068_v47 }
0x1ea5   :  { %v2253_v44 = vpop.eup %2252 }
0x1ea6   :  { %1819 = vrot.lane.b32.xlu2 %v2253_v44, %s2312_s25 }
0x1ea7   :  { %v2255_v48 = vpop.eup %2254 }
0x1ea8   :  { %v1800_v49 = vadd.f32 1.0, %v2255_v48 }
0x1eaa   :  { %2256 = vrcp.f32 %v1800_v49  ;;  %v1812_v6 = vand.u32 2147483648, %v1800_v49  ;;  %vm1806_vm8 = vweird.f32 %v1800_v49  ;;  %v1810_v7 = vand.u32 2147483647, %v1800_v49 }
0x1eac   :  { %v1813_v9 = vor.u32 1.1754944e-38, %v1812_v6  ;;  %vm1811_vm0 = vcmp.eq.f32.partialorder %v1810_v7, 8.507059e+37 }
0x1eb0   :  { %v2257_v50 = vpop.eup %2256 }
0x1eb1   :  { %v1802_v51 = vmul.f32 %v2257_v50, %v1800_v49  ;;  %vm1807_vm14 = vweird.f32 %v2257_v50 }
0x1eb2   :  { %vm1808_vm15 = vmor %vm1806_vm8, %vm1807_vm14 }
0x1eb3   :  { %v1803_v3 = vsub.f32 1.0, %v1802_v51 }
0x1eb5   :  { %v1804_v4 = vmul.f32 %v2257_v50, %v1803_v3 }
0x1eb7   :  { %v1805_v5 = vadd.f32 %v2257_v50, %v1804_v4 }
0x1eb9   :  { %v1809_v8 = vsel %vm1808_vm15, %v2257_v50, %v1805_v5 }
0x1eba   :  { %v1814_v46 = vsel %vm1811_vm0, %v1813_v9, %v1809_v8 }
0x1ebb   :  { %v1817_v2 = vmul.f32 %v1814_v46, %v1763_v18 }
0x1f00   :  { %v1820_v12 = vpop.permute.xlu2 %1819 }
0x1f01   :  { %v1822_v14 = vmul.f32 %v1820_v12, %v1814_v46 }
0x1f03   :  { %1824 = vrot.lane.b32.xlu0 %v1822_v14, %s2312_s25 }
0x1f75   :  { %v1825_v17 = vpop.permute.xlu0 %1824 }
0x1f76   :  { %v1827_v19 = vadd.f32 %v1825_v17, %v1817_v2 }
0x1f78   :  { %2258 = vtanh.f32 %v1827_v19 }
0x1f7e   :  { %v2259_v56 = vpop.eup %2258 }
0x1f7f   :  { %1830 = vrot.lane.b32.xlu1 %v2259_v56, %s2312_s25 }
0x1ff1   :  { %v1831_v53 = vpop.permute.xlu1 %1830 }
0x1ff2   :  { %v1833_v22 = vmul.f32 %v1831_v53, %v1814_v46 }
0x1ff4   :  { %1836 = vrot.lane.b32.xlu2 %v1833_v22, %s2304_s0 }
0x204e   :  { %v1837_v54 = vpop.permute.xlu2 %1836 }
0x204f   :  { %2069 = vmatmul.msk.f32.vlgmr.msrb.gmra.mxu3 %vm394_vm3, %v1837_v54 }
0x20d2   :  { %v1857_v58 = vpop.f32.mrf.mxu3 }
0x20d3   :  { %v1860_v60 = vadd.f32 %v1857_v58, %v1379_v57 }
0x20d5   :  { %2260 = vtanh.f32 %v1860_v60  ;;  %v2070_v21 = vmul.f32 -1.442695, %v1860_v60 }
0x20d7   :  { %2262 = vpow2.f32 %v2070_v21 }
0x20db   :  { %v2261_v61 = vpop.eup %2260 }
0x20dc   :  { %1883 = vrot.lane.b32.xlu0 %v2261_v61, %s2312_s25 }
0x20dd   :  { %v2263_v23 = vpop.eup %2262 }
0x20de   :  { %v1864_v10 = vadd.f32 1.0, %v2263_v23 }
0x20e0   :  { %2264 = vrcp.f32 %v1864_v10  ;;  %v1876_v25 = vand.u32 2147483648, %v1864_v10  ;;  %vm1870_vm1 = vweird.f32 %v1864_v10  ;;  %v1874_v20 = vand.u32 2147483647, %v1864_v10 }
0x20e2   :  { %v1877_v52 = vor.u32 1.1754944e-38, %v1876_v25  ;;  %vm1875_vm9 = vcmp.eq.f32.partialorder %v1874_v20, 8.507059e+37 }
0x20e6   :  { %v2265_v11 = vpop.eup %2264 }
0x20e7   :  { %v1866_v1 = vmul.f32 %v2265_v11, %v1864_v10  ;;  %vm1871_vm7 = vweird.f32 %v2265_v11 }
0x20e8   :  { %vm1872_vm6 = vmor %vm1870_vm1, %vm1871_vm7 }
0x20e9   :  { %v1867_v43 = vsub.f32 1.0, %v1866_v1 }
0x20eb   :  { %v1868_v45 = vmul.f32 %v2265_v11, %v1867_v43 }
0x20ed   :  { %v1869_v62 = vadd.f32 %v2265_v11, %v1868_v45 }
0x20ef   :  { %v1873_v26 = vsel %vm1872_vm6, %v2265_v11, %v1869_v62 }
0x20f0   :  { %v1878_v28 = vsel %vm1875_vm9, %v1877_v52, %v1873_v26 }
0x20f1   :  { %v1881_v32 = vmul.f32 %v1878_v28, %v1827_v19 }
0x214e   :  { %v1884_v27 = vpop.permute.xlu0 %1883 }
0x214f   :  { %v1886_v31 = vmul.f32 %v1884_v27, %v1878_v28 }
0x2151   :  { %1888 = vrot.lane.b32.xlu1 %v1886_v31, %s2312_s25 }
0x21c3   :  { %v1889_v59 = vpop.permute.xlu1 %1888 }
0x21c4   :  { %v1891_v30 = vadd.f32 %v1889_v59, %v1881_v32 }
0x21c6   :  { %2266 = vtanh.f32 %v1891_v30 }
0x21cc   :  { %v2267_v33 = vpop.eup %2266 }
0x21cd   :  { %1894 = vrot.lane.b32.xlu2 %v2267_v33, %s2312_s25 }
0x2227   :  { %v1895_v15 = vpop.permute.xlu2 %1894 }
0x2228   :  { %v1897_v36 = vmul.f32 %v1895_v15, %v1878_v28 }
0x222a   :  { %1905 = vrot.lane.b32.xlu0 %v1897_v36, %s2304_s0 }
0x229c   :  { %v1906_v18 = vpop.permute.xlu0 %1905 }
0x229d   :  { %2071 = vmatmul.msk.f32.vlgmr.msra.gmra.mxu2 %vm394_vm3, %v1906_v18 }
0x2320   :  { %v1926_v40 = vpop.f32.mrf.mxu2 }
0x2321   :  { %v1927_v0 = vadd.f32 %v2106_v39, %v1926_v40 }
0x2323   :  { %v1929_v24 = vmax.f32 %v1927_v0, 0.0 }
0x2325   :  { %2072 = vmatmul.msk.f32.vlgmr.msra.gmra.mxu3 %vm394_vm3, %v1929_v24 }
0x23a8   :  { %v1955_v42 = vpop.f32.mrf.mxu3 }
0x23a9   :  { %v1959_v44 = vadd.f32 %v2107_v41, %v1955_v42 }
0x23ab   :  { %v2073_v47 = vmul.f32 -1.442695, %v1959_v44 }
0x23ad   :  { %2268 = vpow2.f32 %v2073_v47 }
0x23b3   :  { %v2269_v48 = vpop.eup %2268 }
0x23b4   :  { %v1963_v49 = vadd.f32 1.0, %v2269_v48 }
0x23b6   :  { %2270 = vrcp.f32 %v1963_v49  ;;  %v1975_v4 = vand.u32 2147483648, %v1963_v49  ;;  %v1973_v6 = vand.u32 2147483647, %v1963_v49  ;;  %vm1969_vm3 = vweird.f32 %v1963_v49 }
0x23b8   :  { %v1976_v8 = vor.u32 1.1754944e-38, %v1975_v4  ;;  %vm1974_vm2 = vcmp.eq.f32.partialorder %v1973_v6, 8.507059e+37 }
0x23bc   :  { %v2271_v50 = vpop.eup %2270 }
0x23bd   :  { %v1965_v51 = vmul.f32 %v2271_v50, %v1963_v49  ;;  %vm1970_vm10 = vweird.f32 %v2271_v50 }
0x23be   :  { %vm1971_vm11 = vmor %vm1969_vm3, %vm1970_vm10 }
0x23bf   :  { %v1966_v3 = vsub.f32 1.0, %v1965_v51 }
0x23c1   :  { %v1967_v5 = vmul.f32 %v2271_v50, %v1966_v3 }
0x23c3   :  { %v1968_v7 = vadd.f32 %v2271_v50, %v1967_v5 }
0x23c5   :  { %v1972_v9 = vsel %vm1971_vm11, %v2271_v50, %v1968_v7 }
0x23c6   :  { %v1977_v12 = vsel %vm1974_vm2, %v1976_v8, %v1972_v9 }
0x23c7   :  { %1980 = vst.msk [vmem:[%s2915_s4] sm:$0xff] %vm1979_vm12, %v1977_v12 }
0x23c8   :  { %1985 = vsyncpa [#allocation6], 1 }

</bundles_post_ra>
